<compile_context>
chip_gen: v6e
topology: v6e:2x2x1
jax: 0.10.0
libtpu: 0.0.40
codegen_flags: <defaults>
</compile_context>

<pallas_src>
import functools

import jax
import jax.numpy as jnp
from jax import lax
from jax.experimental import pallas as pl
from jax.experimental.pallas import tpu as pltpu


_BN_EPS = 1e-5


def _round_up(x, m):
    return (x + m - 1) // m * m


def _itemsize(dt):
    return jnp.zeros((), dt).dtype.itemsize


# --------------------------- fused Pallas kernel -----------------------------

def _fused_ir_kernel(*refs, do_expand, use_res, taps, wc, row_tile, w_out,
                     hidden, tw, tw_pad, mx_dtype):
    """Fused expand(1x1) -> depthwise 3x3 -> project(1x1) (+ residual)."""
    it = iter(refs)
    xt_ref = next(it)                      # (M_in, Cin[+1])   compute dtype
    if do_expand:
        w1_ref = next(it)                  # (Cin+1, hidden)   compute dtype
    wdw_ref = next(it)                     # (9, hidden)       f32 (BN folded)
    b2_ref = next(it)                      # (1, hidden)       f32
    w3t_ref = next(it)                     # (oup, hidden)     compute dtype
    b3_ref = next(it)                      # (oup, 1)          f32
    if use_res:
        res_ref = next(it)                 # (oup, tw_pad)     compute dtype
    o_ref = next(it)                       # (oup, tw_pad)     f32

    # ---- 1x1 expand + BN + ReLU6.  BN scale is folded into w1; the BN bias
    # rides in the extra all-ones input channel, so spatial zero-padding of
    # the hidden tensor falls out exactly (padded rows/cols are all-zero -> 0).
    if do_expand:
        h2d = jnp.dot(xt_ref[...], w1_ref[...],
                      preferred_element_type=jnp.float32)       # (M_in, hidden)
        h2d = jnp.clip(h2d, 0.0, 6.0)
    else:
        h2d = xt_ref[...].astype(jnp.float32)

    # ---- 3x3 depthwise on the flattened tile.  Column-shifted copies are
    # materialized once per distinct column offset; every remaining tap slice
    # starts at a multiple of wc (wc % 8 == 0), i.e. is sublane-aligned.
    span = (row_tile - 1) * wc + w_out
    w_dw = wdw_ref[...]                                         # (9, hidden)
    shifted = {}
    for _, co in taps:
        if co not in shifted:
            shifted[co] = h2d if co == 0 else h2d[co:, :]
    acc = None
    for k, (ro, co) in enumerate(taps):
        term = shifted[co][ro * wc: ro * wc + span, :] * w_dw[k:k + 1, :]
        acc = term if acc is None else acc + term

    # ---- row compaction fused with BN bias + ReLU6 + cast to matmul dtype,
    # padded to tw_pad rows so the projection stores lane-dense blocks.
    b2 = b2_ref[...]
    rows = []
    for i in range(row_tile):
        ri = jnp.clip(acc[i * wc: i * wc + w_out, :] + b2, 0.0, 6.0)
        rows.append(ri.astype(mx_dtype))
    if tw_pad > tw:
        rows.append(jnp.zeros((tw_pad - tw, hidden), mx_dtype))
    dw2d = jnp.concatenate(rows, axis=0)                        # (tw_pad, hid)

    # ---- 1x1 project + BN (+ residual); channels-first lane-dense store.
    y = lax.dot_general(w3t_ref[...], dw2d, (((1,), (1,)), ((), ())),
                        preferred_element_type=jnp.float32)     # (oup, tw_pad)
    y = y + b3_ref[...]
    if use_res:
        y = y + res_ref[...].astype(jnp.float32)
    o_ref[...] = y.astype(o_ref.dtype)


# --------------------------- wrapper helpers ---------------------------------

def _tile_geometry(stride, h, w, row_tile):
    """Returns (wc, rows_in, w_out, we_p) for the flattened-tile layout."""
    if stride == 1:
        w_out = w
        wc = _round_up(w + 2, 8)
        rows_in = row_tile + 2
        we_p = 0
    else:
        w_out = w // 2
        we_p = _round_up(w_out + 1, 8)
        wc = 2 * we_p
        rows_in = 2 * row_tile + 1
    return wc, rows_in, w_out, we_p


def _vmem_budget_bytes():
    """(row-tile selection budget, vmem_limit_bytes), generation aware."""
    cap = 64 * 1024 * 1024            # conservative default (v7x per-core VMEM)
    try:
        cap = int(pltpu.get_tpu_info().vmem_capacity_bytes)
    except Exception:
        pass
    limit = (cap * 3) // 4            # ~48 MiB on v7x, ~96 MiB on v5e/v6e
    budget = (limit * 4) // 5         # headroom: the estimate below is rough
    return budget, limit


def _vmem_estimate(row_tile, *, stride, h, w, cin, hidden, oup,
                   in_bytes, mx_bytes, use_res):
    wc, rows_in, w_out, _ = _tile_geometry(stride, h, w, row_tile)
    m_in = rows_in * wc
    tw_pad = _round_up(row_tile * w_out, 128)
    est = 2 * m_in * cin * in_bytes          # double-buffered input tile
    est += 4 * m_in * hidden * 4             # hidden + shifted copies + dw acc
    est += tw_pad * hidden * mx_bytes        # compacted depthwise output
    est += 2 * oup * tw_pad * 4              # double-buffered f32 output
    if use_res:
        est += 2 * oup * tw_pad * mx_bytes   # double-buffered residual
    est += (cin + oup) * hidden * mx_bytes + 16 * hidden * 4
    return est


def _pick_row_tile(h_out, w_out, budget, est_fn, prefer_multi_tile=False):
    """Largest divisor T of h_out that fits the VMEM budget, preferring
    lane-exact tiles ((T*w_out) % 128 == 0); optionally keep >= 2 tiles so a
    batch-1 grid can still feed both v7x TensorCores."""
    divisors = [t for t in range(1, h_out + 1) if h_out % t == 0]
    fits = [t for t in divisors if est_fn(t) <= budget] or [1]
    lane_exact = [t for t in fits if (t * w_out) % 128 == 0]
    pool = lane_exact or fits
    if prefer_multi_tile:
        multi = [t for t in pool if h_out // t >= 2]
        if multi:
            pool = multi
    return max(pool)


def _build_tiles(x_nhwc, stride, row_tile):
    """Pre-pad and gather overlapping row tiles so the kernel only needs
    contiguous static slices.  Stride-2 de-interleaves rows/cols by parity.

    Returns (tiles (N, nt, M_in, C), nt, M_in, wc, w_out, we_p)."""
    n, h, w, c = x_nhwc.shape
    wc, rows_in, w_out, we_p = _tile_geometry(stride, h, w, row_tile)

    if stride == 1:
        xp = jnp.pad(x_nhwc, ((0, 0), (1, 1), (1, wc - w - 1), (0, 0)))
        nt = h // row_tile
        tiles = jnp.stack(
            [xp[:, r * row_tile: r * row_tile + rows_in] for r in range(nt)],
            axis=1)                                     # (N, nt, rows_in, wc, C)
    else:
        assert h % 2 == 0 and w % 2 == 0, "stride-2 path assumes even H, W"
        h_out = h // 2
        we = w_out + 1
        xp = jnp.pad(x_nhwc, ((0, 0), (1, 1), (1, 1), (0, 0)))
        ev = jnp.pad(xp[:, :, 0::2, :], ((0, 0), (0, 0), (0, we_p - we), (0, 0)))
        od = jnp.pad(xp[:, :, 1::2, :], ((0, 0), (0, 0), (0, we_p - we), (0, 0)))
        xp = jnp.concatenate([ev, od], axis=2)          # (N, H+2, wc, C)
        nt = h_out // row_tile
        tl = []
        for r in range(nt):
            base = 2 * r * row_tile
            evr = xp[:, base: base + 2 * row_tile + 1: 2]   # (N, T+1, wc, C)
            odr = xp[:, base + 1: base + 2 * row_tile: 2]   # (N, T,   wc, C)
            tl.append(jnp.concatenate([evr, odr], axis=1))
        tiles = jnp.stack(tl, axis=1)                   # (N, nt, rows_in, wc, C)

    m_in = rows_in * wc
    tiles = tiles.reshape(n, nt, m_in, c)
    return tiles, nt, m_in, wc, w_out, we_p


def _fold_bn(gamma, beta, mean, var, eps=_BN_EPS):
    scale = gamma / jnp.sqrt(var + eps)
    bias = beta - mean * scale
    return scale, bias


# --------------------------- forward ------------------------------------------

def inverted_residual_forward(x_nchw, params, *, inp, oup, stride, expand_ratio,
                              compute_dtype=jnp.bfloat16):
    """Eval-mode InvertedResidual forward.  compute_dtype controls the MXU
    operand dtype of the two 1x1 convolutions (bf16 default on every TPU
    generation; accumulation is always f32)."""
    assert stride in (1, 2)
    n, c, h, w = x_nchw.shape
    assert c == inp
    hidden = int(round(inp * expand_ratio))
    do_expand = expand_ratio != 1
    use_res = (stride == 1) and (inp == oup)
    h_out = (h - 1) // stride + 1
    w_out = (w - 1) // stride + 1

    in_dtype = compute_dtype if do_expand else jnp.float32
    cin_k = inp + 1 if do_expand else inp        # +1 = folded expand BN bias
    in_bytes = _itemsize(in_dtype)
    mx_bytes = _itemsize(compute_dtype)

    budget, vmem_limit = _vmem_budget_bytes()
    est_fn = functools.partial(
        _vmem_estimate, stride=stride, h=h, w=w, cin=cin_k, hidden=hidden,
        oup=oup, in_bytes=in_bytes, mx_bytes=mx_bytes, use_res=use_res)
    row_tile = _pick_row_tile(h_out, w_out, budget, est_fn,
                              prefer_multi_tile=(n == 1))

    # ---- plain-JAX glue: layout, halo row tiles, BN folding (cheap, fused) ---
    x_nhwc = jnp.transpose(x_nchw, (0, 2, 3, 1))
    if do_expand:
        ones = jnp.ones((n, h, w, 1), x_nhwc.dtype)
        x_nhwc = jnp.concatenate([x_nhwc, ones], axis=-1)
    x_nhwc = x_nhwc.astype(in_dtype)
    tiles, nt, m_in, wc, w_out2, we_p = _build_tiles(x_nhwc, stride, row_tile)
    assert w_out2 == w_out
    tw = row_tile * w_out
    tw_pad = _round_up(tw, 128)

    s2, b2 = _fold_bn(*params["bn2"])
    wdw9 = (params["w_dw"] * s2).reshape(9, hidden).astype(jnp.float32)
    b2 = b2.reshape(1, hidden).astype(jnp.float32)
    s3, b3 = _fold_bn(*params["bn3"])
    w3t = (params["w_proj"] * s3[None, :]).T.astype(compute_dtype)  # (oup, hid)
    b3 = b3.reshape(oup, 1).astype(jnp.float32)

    in_specs = [pl.BlockSpec((None, None, m_in, cin_k),
                             lambda b, r: (b, r, 0, 0))]
    args = [tiles]
    if do_expand:
        s1, b1 = _fold_bn(*params["bn1"])
        w1 = params["w_expand"] * s1[None, :]                    # (inp, hidden)
        w1_aug = jnp.concatenate([w1, b1[None, :]], axis=0)      # (inp+1, hid)
        in_specs.append(pl.BlockSpec((cin_k, hidden), lambda b, r: (0, 0)))
        args.append(w1_aug.astype(compute_dtype))
    in_specs += [
        pl.BlockSpec((9, hidden), lambda b, r: (0, 0)),
        pl.BlockSpec((1, hidden), lambda b, r: (0, 0)),
        pl.BlockSpec((oup, hidden), lambda b, r: (0, 0)),
        pl.BlockSpec((oup, 1), lambda b, r: (0, 0)),
    ]
    args += [wdw9, b2, w3t, b3]
    if use_res:
        res = x_nchw.astype(compute_dtype).reshape(n, inp, nt, tw)
        if tw_pad != tw:
            res = jnp.pad(res, ((0, 0), (0, 0), (0, 0), (0, tw_pad - tw)))
        res = res.reshape(n, inp, nt * tw_pad)
        in_specs.append(pl.BlockSpec((None, oup, tw_pad),
                                     lambda b, r: (b, 0, r)))
        args.append(res)

    if stride == 1:
        row_offs, col_offs = (0, 1, 2), (0, 1, 2)
    else:
        row_offs, col_offs = (0, row_tile + 1, 1), (0, we_p, 1)
    taps = tuple((row_offs[kh], col_offs[kw])
                 for kh in range(3) for kw in range(3))

    kernel = functools.partial(
        _fused_ir_kernel, do_expand=do_expand, use_res=use_res, taps=taps,
        wc=wc, row_tile=row_tile, w_out=w_out, hidden=hidden,
        tw=tw, tw_pad=tw_pad, mx_dtype=compute_dtype)

    flops = 2 * n * h_out * w_out * hidden * (oup + 9)
    if do_expand:
        flops += 2 * n * h * w * cin_k * hidden
    bytes_accessed = n * oup * nt * tw_pad * 4
    bytes_accessed += sum(int(a.size) * a.dtype.itemsize for a in args)

    out_flat = pl.pallas_call(
        kernel,
        out_shape=jax.ShapeDtypeStruct((n, oup, nt * tw_pad), jnp.float32),
        grid=(n, nt),
        in_specs=in_specs,
        out_specs=pl.BlockSpec((None, oup, tw_pad), lambda b, r: (b, 0, r)),
        compiler_params=pltpu.CompilerParams(
            dimension_semantics=("parallel", "parallel"),
            vmem_limit_bytes=int(vmem_limit)),
        cost_estimate=pl.CostEstimate(flops=int(flops), transcendentals=0,
                                      bytes_accessed=int(bytes_accessed)),
    )(*args)

    # Output is already NCHW over a flattened (possibly lane-padded) spatial
    # axis; strip the lane padding (if any) and reshape.
    if tw_pad != tw:
        out = out_flat.reshape(n, oup, nt, tw_pad)[..., :tw]
        return out.reshape(n, oup, h_out, w_out)
    return out_flat.reshape(n, oup, h_out, w_out)


# --------------------------- params + pure-JAX reference ----------------------

def _bn_params(key, c):
    k1, k2, k3, k4 = jax.random.split(key, 4)
    gamma = 1.0 + 0.1 * jax.random.normal(k1, (c,), jnp.float32)
    beta = 0.1 * jax.random.normal(k2, (c,), jnp.float32)
    mean = 0.1 * jax.random.normal(k3, (c,), jnp.float32)
    var = 1.0 + 0.1 * jax.random.uniform(k4, (c,), jnp.float32)
    return (gamma, beta, mean, var)


def init_params(key, inp, oup, expand_ratio):
    """Deterministic synthetic parameters matching the PyTorch module shapes."""
    hidden = int(round(inp * expand_ratio))
    k0, k1, k2, k3, k4, k5 = jax.random.split(key, 6)
    params = {}
    if expand_ratio != 1:
        params["w_expand"] = 0.1 * jax.random.normal(k0, (inp, hidden),
                                                     jnp.float32)
        params["bn1"] = _bn_params(k1, hidden)
    params["w_dw"] = 0.1 * jax.random.normal(k2, (3, 3, hidden), jnp.float32)
    params["bn2"] = _bn_params(k3, hidden)
    params["w_proj"] = 0.1 * jax.random.normal(k4, (hidden, oup), jnp.float32)
    params["bn3"] = _bn_params(k5, oup)
    return params


def reference_forward(x_nchw, params, *, inp, oup, stride, expand_ratio):
    hidden = int(round(inp * expand_ratio))
    use_res = (stride == 1) and (inp == oup)
    x = jnp.transpose(x_nchw, (0, 2, 3, 1)).astype(jnp.float32)
    h = x
    if expand_ratio != 1:
        we = params["w_expand"].reshape(1, 1, inp, hidden)
        h = lax.conv_general_dilated(h, we, (1, 1), "VALID",
                                     dimension_numbers=("NHWC", "HWIO", "NHWC"))
        s, b = _fold_bn(*params["bn1"])
        h = jnp.clip(h * s + b, 0.0, 6.0)
    wdw = params["w_dw"].reshape(3, 3, 1, hidden)
    h = lax.conv_general_dilated(h, wdw, (stride, stride), [(1, 1), (1, 1)],
                                 dimension_numbers=("NHWC", "HWIO", "NHWC"),
                                 feature_group_count=hidden)
    s, b = _fold_bn(*params["bn2"])
    h = jnp.clip(h * s + b, 0.0, 6.0)
    wp = params["w_proj"].reshape(1, 1, hidden, oup)
    h = lax.conv_general_dilated(h, wp, (1, 1), "VALID",
                                 dimension_numbers=("NHWC", "HWIO", "NHWC"))
    s, b = _fold_bn(*params["bn3"])
    h = h * s + b
    if use_res:
        h = h + x
    return jnp.transpose(h, (0, 3, 1, 2))


# --------------------------- main ---------------------------------------------

if __name__ == "__main__":
    key = jax.random.PRNGKey(0)

    cases = [
        # stride-1 residual path (canonical config), strict f32 check
        dict(inp=4, oup=4, stride=1, expand_ratio=6, n=2, h=16, w=16,
             compute_dtype=jnp.float32, tol=1e-3),
        # stride-2 path (exercises the lane-padded output), strict f32 check
        dict(inp=4, oup=8, stride=2, expand_ratio=6, n=2, h=16, w=16,
             compute_dtype=jnp.float32, tol=1e-3),
        # default bf16 MXU operands (all generations), loose check
        dict(inp=4, oup=4, stride=1, expand_ratio=6, n=2, h=16, w=16,
             compute_dtype=jnp.bfloat16, tol=1e-1),
    ]

    for i, cfg in enumerate(cases):
        kx, kp = jax.random.split(jax.random.fold_in(key, i))
        x = jax.random.normal(kx, (cfg["n"], cfg["inp"], cfg["h"], cfg["w"]),
                              jnp.float32)
        params = init_params(kp, cfg["inp"], cfg["oup"], cfg["expand_ratio"])

        fwd = jax.jit(functools.partial(
            inverted_residual_forward,
            inp=cfg["inp"], oup=cfg["oup"], stride=cfg["stride"],
            expand_ratio=cfg["expand_ratio"],
            compute_dtype=cfg["compute_dtype"]))
        y = jax.block_until_ready(fwd(x, params))

        y_ref = reference_forward(x, params, inp=cfg["inp"], oup=cfg["oup"],
                                  stride=cfg["stride"],
                                  expand_ratio=cfg["expand_ratio"])
        h_out = (cfg["h"] - 1) // cfg["stride"] + 1
        w_out = (cfg["w"] - 1) // cfg["stride"] + 1
        assert y.shape == (cfg["n"], cfg["oup"], h_out, w_out), y.shape
        err = float(jnp.max(jnp.abs(y - y_ref)))
        if not err < cfg["tol"]:
            raise AssertionError(
                f"case {i}: mismatch vs reference, max abs err = {err}")

    print("KERNEL_OK")
</pallas_src>

<mosaic_0001>
module attributes {stable_mosaic.version = 11 : i64} {
  func.func @_fused_ir_kernel(%arg0: i32, %arg1: i32, %arg2: memref<1x1x432x5xf32, #tpu.memory_space<vmem>>, %arg3: memref<5x24xf32, #tpu.memory_space<vmem>>, %arg4: memref<9x24xf32, #tpu.memory_space<vmem>>, %arg5: memref<1x24xf32, #tpu.memory_space<vmem>>, %arg6: memref<4x24xf32, #tpu.memory_space<vmem>>, %arg7: memref<4x1xf32, #tpu.memory_space<vmem>>, %arg8: memref<1x4x256xf32, #tpu.memory_space<vmem>>, %arg9: memref<1x4x256xf32, #tpu.memory_space<vmem>>) attributes {dimension_semantics = [#tpu.dimension_semantics<parallel>, #tpu.dimension_semantics<parallel>], iteration_bounds = array<i64: 2, 1>, scalar_prefetch = 0 : i64, scratch_operands = 0 : i64, tpu.core_type = #tpu.core_type<tc>, window_params = [{transform_indices = @transform_0, window_bounds = array<i64: 1, 1, 432, 5>}, {pipeline_mode = #tpu.pipeline_mode<synchronous>, transform_indices = @transform_1, window_bounds = array<i64: 5, 24>}, {pipeline_mode = #tpu.pipeline_mode<synchronous>, transform_indices = @transform_2, window_bounds = array<i64: 9, 24>}, {pipeline_mode = #tpu.pipeline_mode<synchronous>, transform_indices = @transform_3, window_bounds = array<i64: 1, 24>}, {pipeline_mode = #tpu.pipeline_mode<synchronous>, transform_indices = @transform_4, window_bounds = array<i64: 4, 24>}, {pipeline_mode = #tpu.pipeline_mode<synchronous>, transform_indices = @transform_5, window_bounds = array<i64: 4, 1>}, {transform_indices = @transform_6, window_bounds = array<i64: 1, 4, 256>}, {transform_indices = @transform_7, window_bounds = array<i64: 1, 4, 256>}]} {
    %c0 = arith.constant 0 : index
    %c0_0 = arith.constant 0 : index
    %c0_1 = arith.constant 0 : index
    %c0_2 = arith.constant 0 : index
    %0 = vector.load %arg2[%c0, %c0_0, %c0_1, %c0_2] : memref<1x1x432x5xf32, #tpu.memory_space<vmem>>, vector<1x1x432x5xf32>
    %1 = vector.shape_cast %0 : vector<1x1x432x5xf32> to vector<432x5xf32>
    %c0_3 = arith.constant 0 : index
    %c0_4 = arith.constant 0 : index
    %2 = vector.load %arg3[%c0_3, %c0_4] : memref<5x24xf32, #tpu.memory_space<vmem>>, vector<5x24xf32>
    %cst = arith.constant dense<0.000000e+00> : vector<432x24xf32>
    %3 = tpu.matmul %1, %2, %cst {dimension_numbers = #tpu.dot_dimension_numbers<[1], [0], [0], [1], [0, 0, 1, 1], [], []>} : vector<432x5xf32>, vector<5x24xf32>, vector<432x24xf32> -> vector<432x24xf32>
    %cst_5 = arith.constant 0.000000e+00 : f32
    %cst_6 = arith.constant 6.000000e+00 : f32
    %4 = vector.broadcast %cst_5 : f32 to vector<432x24xf32>
    %5 = arith.maximumf %4, %3 : vector<432x24xf32>
    %6 = vector.broadcast %cst_6 : f32 to vector<432x24xf32>
    %7 = arith.minimumf %6, %5 : vector<432x24xf32>
    %c0_7 = arith.constant 0 : index
    %c0_8 = arith.constant 0 : index
    %8 = vector.load %arg4[%c0_7, %c0_8] : memref<9x24xf32, #tpu.memory_space<vmem>>, vector<9x24xf32>
    %9 = vector.extract_strided_slice %7 {offsets = [1, 0], sizes = [431, 24], strides = [1, 1]} : vector<432x24xf32> to vector<431x24xf32>
    %10 = vector.extract_strided_slice %7 {offsets = [2, 0], sizes = [430, 24], strides = [1, 1]} : vector<432x24xf32> to vector<430x24xf32>
    %11 = vector.extract_strided_slice %7 {offsets = [0, 0], sizes = [376, 24], strides = [1, 1]} : vector<432x24xf32> to vector<376x24xf32>
    %12 = vector.extract_strided_slice %8 {offsets = [0, 0], sizes = [1, 24], strides = [1, 1]} : vector<9x24xf32> to vector<1x24xf32>
    %13 = vector.broadcast %12 : vector<1x24xf32> to vector<376x24xf32>
    %14 = arith.mulf %11, %13 : vector<376x24xf32>
    %15 = vector.extract_strided_slice %9 {offsets = [0, 0], sizes = [376, 24], strides = [1, 1]} : vector<431x24xf32> to vector<376x24xf32>
    %16 = vector.extract_strided_slice %8 {offsets = [1, 0], sizes = [1, 24], strides = [1, 1]} : vector<9x24xf32> to vector<1x24xf32>
    %17 = vector.broadcast %16 : vector<1x24xf32> to vector<376x24xf32>
    %18 = arith.mulf %15, %17 : vector<376x24xf32>
    %19 = arith.addf %14, %18 : vector<376x24xf32>
    %20 = vector.extract_strided_slice %10 {offsets = [0, 0], sizes = [376, 24], strides = [1, 1]} : vector<430x24xf32> to vector<376x24xf32>
    %21 = vector.extract_strided_slice %8 {offsets = [2, 0], sizes = [1, 24], strides = [1, 1]} : vector<9x24xf32> to vector<1x24xf32>
    %22 = vector.broadcast %21 : vector<1x24xf32> to vector<376x24xf32>
    %23 = arith.mulf %20, %22 : vector<376x24xf32>
    %24 = arith.addf %19, %23 : vector<376x24xf32>
    %25 = vector.extract_strided_slice %7 {offsets = [24, 0], sizes = [376, 24], strides = [1, 1]} : vector<432x24xf32> to vector<376x24xf32>
    %26 = vector.extract_strided_slice %8 {offsets = [3, 0], sizes = [1, 24], strides = [1, 1]} : vector<9x24xf32> to vector<1x24xf32>
    %27 = vector.broadcast %26 : vector<1x24xf32> to vector<376x24xf32>
    %28 = arith.mulf %25, %27 : vector<376x24xf32>
    %29 = arith.addf %24, %28 : vector<376x24xf32>
    %30 = vector.extract_strided_slice %9 {offsets = [24, 0], sizes = [376, 24], strides = [1, 1]} : vector<431x24xf32> to vector<376x24xf32>
    %31 = vector.extract_strided_slice %8 {offsets = [4, 0], sizes = [1, 24], strides = [1, 1]} : vector<9x24xf32> to vector<1x24xf32>
    %32 = vector.broadcast %31 : vector<1x24xf32> to vector<376x24xf32>
    %33 = arith.mulf %30, %32 : vector<376x24xf32>
    %34 = arith.addf %29, %33 : vector<376x24xf32>
    %35 = vector.extract_strided_slice %10 {offsets = [24, 0], sizes = [376, 24], strides = [1, 1]} : vector<430x24xf32> to vector<376x24xf32>
    %36 = vector.extract_strided_slice %8 {offsets = [5, 0], sizes = [1, 24], strides = [1, 1]} : vector<9x24xf32> to vector<1x24xf32>
    %37 = vector.broadcast %36 : vector<1x24xf32> to vector<376x24xf32>
    %38 = arith.mulf %35, %37 : vector<376x24xf32>
    %39 = arith.addf %34, %38 : vector<376x24xf32>
    %40 = vector.extract_strided_slice %7 {offsets = [48, 0], sizes = [376, 24], strides = [1, 1]} : vector<432x24xf32> to vector<376x24xf32>
    %41 = vector.extract_strided_slice %8 {offsets = [6, 0], sizes = [1, 24], strides = [1, 1]} : vector<9x24xf32> to vector<1x24xf32>
    %42 = vector.broadcast %41 : vector<1x24xf32> to vector<376x24xf32>
    %43 = arith.mulf %40, %42 : vector<376x24xf32>
    %44 = arith.addf %39, %43 : vector<376x24xf32>
    %45 = vector.extract_strided_slice %9 {offsets = [48, 0], sizes = [376, 24], strides = [1, 1]} : vector<431x24xf32> to vector<376x24xf32>
    %46 = vector.extract_strided_slice %8 {offsets = [7, 0], sizes = [1, 24], strides = [1, 1]} : vector<9x24xf32> to vector<1x24xf32>
    %47 = vector.broadcast %46 : vector<1x24xf32> to vector<376x24xf32>
    %48 = arith.mulf %45, %47 : vector<376x24xf32>
    %49 = arith.addf %44, %48 : vector<376x24xf32>
    %50 = vector.extract_strided_slice %10 {offsets = [48, 0], sizes = [376, 24], strides = [1, 1]} : vector<430x24xf32> to vector<376x24xf32>
    %51 = vector.extract_strided_slice %8 {offsets = [8, 0], sizes = [1, 24], strides = [1, 1]} : vector<9x24xf32> to vector<1x24xf32>
    %52 = vector.broadcast %51 : vector<1x24xf32> to vector<376x24xf32>
    %53 = arith.mulf %50, %52 : vector<376x24xf32>
    %54 = arith.addf %49, %53 : vector<376x24xf32>
    %c0_9 = arith.constant 0 : index
    %c0_10 = arith.constant 0 : index
    %55 = vector.load %arg5[%c0_9, %c0_10] : memref<1x24xf32, #tpu.memory_space<vmem>>, vector<1x24xf32>
    %56 = vector.extract_strided_slice %54 {offsets = [0, 0], sizes = [16, 24], strides = [1, 1]} : vector<376x24xf32> to vector<16x24xf32>
    %57 = vector.broadcast %55 : vector<1x24xf32> to vector<16x24xf32>
    %58 = arith.addf %56, %57 : vector<16x24xf32>
    %cst_11 = arith.constant 0.000000e+00 : f32
    %cst_12 = arith.constant 6.000000e+00 : f32
    %59 = vector.broadcast %cst_11 : f32 to vector<16x24xf32>
    %60 = arith.maximumf %59, %58 : vector<16x24xf32>
    %61 = vector.broadcast %cst_12 : f32 to vector<16x24xf32>
    %62 = arith.minimumf %61, %60 : vector<16x24xf32>
    %63 = vector.extract_strided_slice %54 {offsets = [24, 0], sizes = [16, 24], strides = [1, 1]} : vector<376x24xf32> to vector<16x24xf32>
    %64 = vector.broadcast %55 : vector<1x24xf32> to vector<16x24xf32>
    %65 = arith.addf %63, %64 : vector<16x24xf32>
    %cst_13 = arith.constant 0.000000e+00 : f32
    %cst_14 = arith.constant 6.000000e+00 : f32
    %66 = vector.broadcast %cst_13 : f32 to vector<16x24xf32>
    %67 = arith.maximumf %66, %65 : vector<16x24xf32>
    %68 = vector.broadcast %cst_14 : f32 to vector<16x24xf32>
    %69 = arith.minimumf %68, %67 : vector<16x24xf32>
    %70 = vector.extract_strided_slice %54 {offsets = [48, 0], sizes = [16, 24], strides = [1, 1]} : vector<376x24xf32> to vector<16x24xf32>
    %71 = vector.broadcast %55 : vector<1x24xf32> to vector<16x24xf32>
    %72 = arith.addf %70, %71 : vector<16x24xf32>
    %cst_15 = arith.constant 0.000000e+00 : f32
    %cst_16 = arith.constant 6.000000e+00 : f32
    %73 = vector.broadcast %cst_15 : f32 to vector<16x24xf32>
    %74 = arith.maximumf %73, %72 : vector<16x24xf32>
    %75 = vector.broadcast %cst_16 : f32 to vector<16x24xf32>
    %76 = arith.minimumf %75, %74 : vector<16x24xf32>
    %77 = vector.extract_strided_slice %54 {offsets = [72, 0], sizes = [16, 24], strides = [1, 1]} : vector<376x24xf32> to vector<16x24xf32>
    %78 = vector.broadcast %55 : vector<1x24xf32> to vector<16x24xf32>
    %79 = arith.addf %77, %78 : vector<16x24xf32>
    %cst_17 = arith.constant 0.000000e+00 : f32
    %cst_18 = arith.constant 6.000000e+00 : f32
    %80 = vector.broadcast %cst_17 : f32 to vector<16x24xf32>
    %81 = arith.maximumf %80, %79 : vector<16x24xf32>
    %82 = vector.broadcast %cst_18 : f32 to vector<16x24xf32>
    %83 = arith.minimumf %82, %81 : vector<16x24xf32>
    %84 = vector.extract_strided_slice %54 {offsets = [96, 0], sizes = [16, 24], strides = [1, 1]} : vector<376x24xf32> to vector<16x24xf32>
    %85 = vector.broadcast %55 : vector<1x24xf32> to vector<16x24xf32>
    %86 = arith.addf %84, %85 : vector<16x24xf32>
    %cst_19 = arith.constant 0.000000e+00 : f32
    %cst_20 = arith.constant 6.000000e+00 : f32
    %87 = vector.broadcast %cst_19 : f32 to vector<16x24xf32>
    %88 = arith.maximumf %87, %86 : vector<16x24xf32>
    %89 = vector.broadcast %cst_20 : f32 to vector<16x24xf32>
    %90 = arith.minimumf %89, %88 : vector<16x24xf32>
    %91 = vector.extract_strided_slice %54 {offsets = [120, 0], sizes = [16, 24], strides = [1, 1]} : vector<376x24xf32> to vector<16x24xf32>
    %92 = vector.broadcast %55 : vector<1x24xf32> to vector<16x24xf32>
    %93 = arith.addf %91, %92 : vector<16x24xf32>
    %cst_21 = arith.constant 0.000000e+00 : f32
    %cst_22 = arith.constant 6.000000e+00 : f32
    %94 = vector.broadcast %cst_21 : f32 to vector<16x24xf32>
    %95 = arith.maximumf %94, %93 : vector<16x24xf32>
    %96 = vector.broadcast %cst_22 : f32 to vector<16x24xf32>
    %97 = arith.minimumf %96, %95 : vector<16x24xf32>
    %98 = vector.extract_strided_slice %54 {offsets = [144, 0], sizes = [16, 24], strides = [1, 1]} : vector<376x24xf32> to vector<16x24xf32>
    %99 = vector.broadcast %55 : vector<1x24xf32> to vector<16x24xf32>
    %100 = arith.addf %98, %99 : vector<16x24xf32>
    %cst_23 = arith.constant 0.000000e+00 : f32
    %cst_24 = arith.constant 6.000000e+00 : f32
    %101 = vector.broadcast %cst_23 : f32 to vector<16x24xf32>
    %102 = arith.maximumf %101, %100 : vector<16x24xf32>
    %103 = vector.broadcast %cst_24 : f32 to vector<16x24xf32>
    %104 = arith.minimumf %103, %102 : vector<16x24xf32>
    %105 = vector.extract_strided_slice %54 {offsets = [168, 0], sizes = [16, 24], strides = [1, 1]} : vector<376x24xf32> to vector<16x24xf32>
    %106 = vector.broadcast %55 : vector<1x24xf32> to vector<16x24xf32>
    %107 = arith.addf %105, %106 : vector<16x24xf32>
    %cst_25 = arith.constant 0.000000e+00 : f32
    %cst_26 = arith.constant 6.000000e+00 : f32
    %108 = vector.broadcast %cst_25 : f32 to vector<16x24xf32>
    %109 = arith.maximumf %108, %107 : vector<16x24xf32>
    %110 = vector.broadcast %cst_26 : f32 to vector<16x24xf32>
    %111 = arith.minimumf %110, %109 : vector<16x24xf32>
    %112 = vector.extract_strided_slice %54 {offsets = [192, 0], sizes = [16, 24], strides = [1, 1]} : vector<376x24xf32> to vector<16x24xf32>
    %113 = vector.broadcast %55 : vector<1x24xf32> to vector<16x24xf32>
    %114 = arith.addf %112, %113 : vector<16x24xf32>
    %cst_27 = arith.constant 0.000000e+00 : f32
    %cst_28 = arith.constant 6.000000e+00 : f32
    %115 = vector.broadcast %cst_27 : f32 to vector<16x24xf32>
    %116 = arith.maximumf %115, %114 : vector<16x24xf32>
    %117 = vector.broadcast %cst_28 : f32 to vector<16x24xf32>
    %118 = arith.minimumf %117, %116 : vector<16x24xf32>
    %119 = vector.extract_strided_slice %54 {offsets = [216, 0], sizes = [16, 24], strides = [1, 1]} : vector<376x24xf32> to vector<16x24xf32>
    %120 = vector.broadcast %55 : vector<1x24xf32> to vector<16x24xf32>
    %121 = arith.addf %119, %120 : vector<16x24xf32>
    %cst_29 = arith.constant 0.000000e+00 : f32
    %cst_30 = arith.constant 6.000000e+00 : f32
    %122 = vector.broadcast %cst_29 : f32 to vector<16x24xf32>
    %123 = arith.maximumf %122, %121 : vector<16x24xf32>
    %124 = vector.broadcast %cst_30 : f32 to vector<16x24xf32>
    %125 = arith.minimumf %124, %123 : vector<16x24xf32>
    %126 = vector.extract_strided_slice %54 {offsets = [240, 0], sizes = [16, 24], strides = [1, 1]} : vector<376x24xf32> to vector<16x24xf32>
    %127 = vector.broadcast %55 : vector<1x24xf32> to vector<16x24xf32>
    %128 = arith.addf %126, %127 : vector<16x24xf32>
    %cst_31 = arith.constant 0.000000e+00 : f32
    %cst_32 = arith.constant 6.000000e+00 : f32
    %129 = vector.broadcast %cst_31 : f32 to vector<16x24xf32>
    %130 = arith.maximumf %129, %128 : vector<16x24xf32>
    %131 = vector.broadcast %cst_32 : f32 to vector<16x24xf32>
    %132 = arith.minimumf %131, %130 : vector<16x24xf32>
    %133 = vector.extract_strided_slice %54 {offsets = [264, 0], sizes = [16, 24], strides = [1, 1]} : vector<376x24xf32> to vector<16x24xf32>
    %134 = vector.broadcast %55 : vector<1x24xf32> to vector<16x24xf32>
    %135 = arith.addf %133, %134 : vector<16x24xf32>
    %cst_33 = arith.constant 0.000000e+00 : f32
    %cst_34 = arith.constant 6.000000e+00 : f32
    %136 = vector.broadcast %cst_33 : f32 to vector<16x24xf32>
    %137 = arith.maximumf %136, %135 : vector<16x24xf32>
    %138 = vector.broadcast %cst_34 : f32 to vector<16x24xf32>
    %139 = arith.minimumf %138, %137 : vector<16x24xf32>
    %140 = vector.extract_strided_slice %54 {offsets = [288, 0], sizes = [16, 24], strides = [1, 1]} : vector<376x24xf32> to vector<16x24xf32>
    %141 = vector.broadcast %55 : vector<1x24xf32> to vector<16x24xf32>
    %142 = arith.addf %140, %141 : vector<16x24xf32>
    %cst_35 = arith.constant 0.000000e+00 : f32
    %cst_36 = arith.constant 6.000000e+00 : f32
    %143 = vector.broadcast %cst_35 : f32 to vector<16x24xf32>
    %144 = arith.maximumf %143, %142 : vector<16x24xf32>
    %145 = vector.broadcast %cst_36 : f32 to vector<16x24xf32>
    %146 = arith.minimumf %145, %144 : vector<16x24xf32>
    %147 = vector.extract_strided_slice %54 {offsets = [312, 0], sizes = [16, 24], strides = [1, 1]} : vector<376x24xf32> to vector<16x24xf32>
    %148 = vector.broadcast %55 : vector<1x24xf32> to vector<16x24xf32>
    %149 = arith.addf %147, %148 : vector<16x24xf32>
    %cst_37 = arith.constant 0.000000e+00 : f32
    %cst_38 = arith.constant 6.000000e+00 : f32
    %150 = vector.broadcast %cst_37 : f32 to vector<16x24xf32>
    %151 = arith.maximumf %150, %149 : vector<16x24xf32>
    %152 = vector.broadcast %cst_38 : f32 to vector<16x24xf32>
    %153 = arith.minimumf %152, %151 : vector<16x24xf32>
    %154 = vector.extract_strided_slice %54 {offsets = [336, 0], sizes = [16, 24], strides = [1, 1]} : vector<376x24xf32> to vector<16x24xf32>
    %155 = vector.broadcast %55 : vector<1x24xf32> to vector<16x24xf32>
    %156 = arith.addf %154, %155 : vector<16x24xf32>
    %cst_39 = arith.constant 0.000000e+00 : f32
    %cst_40 = arith.constant 6.000000e+00 : f32
    %157 = vector.broadcast %cst_39 : f32 to vector<16x24xf32>
    %158 = arith.maximumf %157, %156 : vector<16x24xf32>
    %159 = vector.broadcast %cst_40 : f32 to vector<16x24xf32>
    %160 = arith.minimumf %159, %158 : vector<16x24xf32>
    %161 = vector.extract_strided_slice %54 {offsets = [360, 0], sizes = [16, 24], strides = [1, 1]} : vector<376x24xf32> to vector<16x24xf32>
    %162 = vector.broadcast %55 : vector<1x24xf32> to vector<16x24xf32>
    %163 = arith.addf %161, %162 : vector<16x24xf32>
    %cst_41 = arith.constant 0.000000e+00 : f32
    %cst_42 = arith.constant 6.000000e+00 : f32
    %164 = vector.broadcast %cst_41 : f32 to vector<16x24xf32>
    %165 = arith.maximumf %164, %163 : vector<16x24xf32>
    %166 = vector.broadcast %cst_42 : f32 to vector<16x24xf32>
    %167 = arith.minimumf %166, %165 : vector<16x24xf32>
    %168 = tpu.concatenate %62, %69, %76, %83, %90, %97, %104, %111, %118, %125, %132, %139, %146, %153, %160, %167 in 0 : vector<16x24xf32>, vector<16x24xf32>, vector<16x24xf32>, vector<16x24xf32>, vector<16x24xf32>, vector<16x24xf32>, vector<16x24xf32>, vector<16x24xf32>, vector<16x24xf32>, vector<16x24xf32>, vector<16x24xf32>, vector<16x24xf32>, vector<16x24xf32>, vector<16x24xf32>, vector<16x24xf32>, vector<16x24xf32> -> vector<256x24xf32>
    %c0_43 = arith.constant 0 : index
    %c0_44 = arith.constant 0 : index
    %169 = vector.load %arg6[%c0_43, %c0_44] : memref<4x24xf32, #tpu.memory_space<vmem>>, vector<4x24xf32>
    %cst_45 = arith.constant dense<0.000000e+00> : vector<4x256xf32>
    %170 = tpu.matmul %169, %168, %cst_45 {dimension_numbers = #tpu.dot_dimension_numbers<[1], [1], [0], [0], [0, 0, 1, 0], [], []>} : vector<4x24xf32>, vector<256x24xf32>, vector<4x256xf32> -> vector<4x256xf32>
    %c0_46 = arith.constant 0 : index
    %c0_47 = arith.constant 0 : index
    %171 = vector.load %arg7[%c0_46, %c0_47] : memref<4x1xf32, #tpu.memory_space<vmem>>, vector<4x1xf32>
    %172 = vector.broadcast %171 : vector<4x1xf32> to vector<4x256xf32>
    %173 = arith.addf %170, %172 : vector<4x256xf32>
    %c0_48 = arith.constant 0 : index
    %c0_49 = arith.constant 0 : index
    %c0_50 = arith.constant 0 : index
    %174 = vector.load %arg8[%c0_48, %c0_49, %c0_50] : memref<1x4x256xf32, #tpu.memory_space<vmem>>, vector<1x4x256xf32>
    %175 = vector.shape_cast %174 : vector<1x4x256xf32> to vector<4x256xf32>
    %176 = arith.addf %173, %175 : vector<4x256xf32>
    %c0_51 = arith.constant 0 : index
    %c0_52 = arith.constant 0 : index
    %c0_53 = arith.constant 0 : index
    %177 = vector.load %arg9[%c0_51, %c0_52, %c0_53] : memref<1x4x256xf32, #tpu.memory_space<vmem>>, vector<1x4x256xf32>
    %178 = vector.shape_cast %177 : vector<1x4x256xf32> to vector<4x256xf32>
    %179 = vector.shape_cast %176 : vector<4x256xf32> to vector<1x4x256xf32>
    tpu.vector_store %arg9[%c0_51, %c0_52, %c0_53], %179 {strides = array<i32>} : memref<1x4x256xf32, #tpu.memory_space<vmem>>, vector<1x4x256xf32>,
    return
  }
  func.func @transform_0(%arg0: i32, %arg1: i32) -> (i32, i32, i32, i32) {
    %c0_i32 = arith.constant 0 : i32
    %c0_i32_0 = arith.constant 0 : i32
    %c0_i32_1 = arith.constant 0 : i32
    return %arg0, %arg1, %c0_i32, %c0_i32_0 : i32, i32, i32, i32
  }
  func.func @transform_1(%arg0: i32, %arg1: i32) -> (i32, i32) {
    %c0_i32 = arith.constant 0 : i32
    %c0_i32_0 = arith.constant 0 : i32
    %c0_i32_1 = arith.constant 0 : i32
    return %c0_i32, %c0_i32_0 : i32, i32
  }
  func.func @transform_2(%arg0: i32, %arg1: i32) -> (i32, i32) {
    %c0_i32 = arith.constant 0 : i32
    %c0_i32_0 = arith.constant 0 : i32
    %c0_i32_1 = arith.constant 0 : i32
    return %c0_i32, %c0_i32_0 : i32, i32
  }
  func.func @transform_3(%arg0: i32, %arg1: i32) -> (i32, i32) {
    %c0_i32 = arith.constant 0 : i32
    %c0_i32_0 = arith.constant 0 : i32
    %c0_i32_1 = arith.constant 0 : i32
    return %c0_i32, %c0_i32_0 : i32, i32
  }
  func.func @transform_4(%arg0: i32, %arg1: i32) -> (i32, i32) {
    %c0_i32 = arith.constant 0 : i32
    %c0_i32_0 = arith.constant 0 : i32
    %c0_i32_1 = arith.constant 0 : i32
    return %c0_i32, %c0_i32_0 : i32, i32
  }
  func.func @transform_5(%arg0: i32, %arg1: i32) -> (i32, i32) {
    %c0_i32 = arith.constant 0 : i32
    %c0_i32_0 = arith.constant 0 : i32
    %c0_i32_1 = arith.constant 0 : i32
    return %c0_i32, %c0_i32_0 : i32, i32
  }
  func.func @transform_6(%arg0: i32, %arg1: i32) -> (i32, i32, i32) {
    %c0_i32 = arith.constant 0 : i32
    %c0_i32_0 = arith.constant 0 : i32
    return %arg0, %c0_i32, %arg1 : i32, i32, i32
  }
  func.func @transform_7(%arg0: i32, %arg1: i32) -> (i32, i32, i32) {
    %c0_i32 = arith.constant 0 : i32
    %c0_i32_0 = arith.constant 0 : i32
    return %arg0, %c0_i32, %arg1 : i32, i32, i32
  }
}

</mosaic_0001>

<bundles_post_ra>
// kernel: inverted_residual_forward.1
= control target key start
LH: loop header
LB: loop body
LE: loop exit
PB: predicated region body
PF: predicated region fallthrough
CT: control target
= control target key end

     0   :  { %s3430_s24 = smov 0   ;;  %s3432_s25 = smov 0   ;;  %s5655_s0 = inlined_call_operand.vmem [shape: f32[2,1,432,5], index: 0, kind: input, shape index: {}]   ;;  %s5656_s1 = inlined_call_operand.vmem [shape: f32[5,24], index: 1, kind: input, shape index: {}]   ;;  %s5657_s2 = inlined_call_operand.vmem [shape: f32[9,24], index: 2, kind: input, shape index: {}]   ;;  %s5658_s3 = inlined_call_operand.vmem [shape: f32[1,24], index: 3, kind: input, shape index: {}]   ;;  %s5659_s4 = inlined_call_operand.vmem [shape: f32[4,24], index: 4, kind: input, shape index: {}]   ;;  %s5660_s5 = inlined_call_operand.vmem [shape: f32[4,1], index: 5, kind: input, shape index: {}]   ;;  %s5661_s6 = inlined_call_operand.vmem [shape: f32[2,4,256], index: 6, kind: input, shape index: {}]   ;;  %s5662_s7 = inlined_call_operand.vmem [shape: f32[2,4,256], index: 7, kind: output, shape index: {}]  }
   0x1   :  { %s3434_s26 = smov 0  }
   0x2 LB: > { %s29_s27 = sadd.s32 1, %s3383_s25  ;;  %p3061_p0 = scmp.ge.s32.totalorder %s3387_s26, 1  ;;  %s3387_s26 = sphi %s3434_s26, %s17_s26   ;;  %s3383_s25 = sphi %s3432_s25, %s6089_s25   ;;  %s3379_s24 = sphi %s3430_s24, %s6088_s24  }
   0x3   : > { %p31_p1 = scmp.ge.s32.totalorder %s29_s27, 2  ;;  %p274_p2 = scmp.lt.s32.totalorder %s3387_s26, 3 }
   0x5   : > { %s6091_s27 = smov (%p31_p1, %s29_s27), 0  ;;  %p275_p3 = pnand %p3061_p0, %p274_p2 }
   0x7   : > { %278 = sbr.rel (%p275_p3) target bundleno = 785 (0x311), region = 48 }
   0xc   : > { %v406_v0 = vld [vmem:[%s5656_s1] sm:$0x1f]  ;;  %vm570_vm0 = vcmask 1044480   ;;  %p323_p4 = scmp.lt.s32.totalorder %s3379_s24, 1  ;;  %vm407_vm1 = vcmask 39936   ;;  %v1019_v55 = vlaneseq  ;;  %vm1155_vm2 = vcmask 1046528  }
   0xd   : > { %3250 = vmatprep.subr.msk.mxu0 %vm570_vm0, %v406_v0  ;;  %v1017_v58 = vld [vmem:[%s5657_s2] sm:$0xff]  ;;  %vm1400_vm3 = vcmask 1045504   ;;  %vm2767_vm4 = vcmask 195584  }
   0xe   : > { %3251 = vmatpush3.msk.msra.mxu0 %vm570_vm0, %v406_v0  ;;  %s6093_s24 = smov (!%p323_p4, %s3379_s24), 1  ;;  %v1020_v56 = vshrl.u32 %v1019_v55, 7 }
   0xf   : > { %s3333_s30 = smul.u32 432, %s6093_s24 }
  0x10   : > { %v1057_v57 = vsub.s32 1, %v1020_v56  ;;  %v1302_v59 = vsub.s32 2, %v1020_v56 }
  0x11   : > { %s3457_s10 = scalar_lea.vmem %s5655_s0, %s3333_s30 }
  0x12   : > { %v352_v1 = vld [vmem:[%s3457_s10] sm:$0xff]  ;;  %v353_v2 = vld [vmem:[%s3457_s10 + $0x8] sm:$0xff]  ;;  %v354_v3 = vld [vmem:[%s3457_s10 + $0x10] sm:$0xff]  ;;  %v3570_v62 = vrot.slane %v1017_v58, %v1057_v57  ;;  %v3572_v63 = vrot.slane %v1017_v58, %v1302_v59 }
  0x13   : > { %3252 = vmatprep.mubr.msk.f32.mxu0 %vm407_vm1, %v352_v1  ;;  %v355_v4 = vld [vmem:[%s3457_s10 + $0x18] sm:$0xff]  ;;  %v356_v5 = vld [vmem:[%s3457_s10 + $0x20] sm:$0xff]  ;;  %v357_v6 = vld [vmem:[%s3457_s10 + $0x28] sm:$0xff] }
  0x14   : > { %3253 = vmatmul.mubr.msk.f32.vlgmr.msra.gmra.mxu0 %vm407_vm1, %v353_v2  ;;  %v358_v7 = vld [vmem:[%s3457_s10 + $0x30] sm:$0xff]  ;;  %v359_v8 = vld [vmem:[%s3457_s10 + $0x38] sm:$0xff]  ;;  %v360_v9 = vld [vmem:[%s3457_s10 + $0x40] sm:$0xff]  ;;  %v1021_v2 = vsub.s32 0, %v1020_v56 }
  0x15   : > { %3255 = vmatprep.mubr.msk.f32.mxu0 %vm407_vm1, %v354_v3  ;;  %v361_v10 = vld [vmem:[%s3457_s10 + $0x48] sm:$0xff]  ;;  %v362_v11 = vld [vmem:[%s3457_s10 + $0x50] sm:$0xff]  ;;  %v363_v12 = vld [vmem:[%s3457_s10 + $0x58] sm:$0xff] }
  0x16   : > { %v364_v13 = vld [vmem:[%s3457_s10 + $0x60] sm:$0xff]  ;;  %v365_v14 = vld [vmem:[%s3457_s10 + $0x68] sm:$0xff]  ;;  %v366_v15 = vld [vmem:[%s3457_s10 + $0x70] sm:$0xff] }
  0x17   : > { %v367_v16 = vld [vmem:[%s3457_s10 + $0x78] sm:$0xff]  ;;  %v368_v17 = vld [vmem:[%s3457_s10 + $0x80] sm:$0xff]  ;;  %v369_v18 = vld [vmem:[%s3457_s10 + $0x88] sm:$0xff] }
  0x18   : > { %3256 = vmatmul.mubr.msk.f32.gmra.mxu0 %vm407_vm1, %v355_v4  ;;  %v370_v19 = vld [vmem:[%s3457_s10 + $0x90] sm:$0xff]  ;;  %v371_v20 = vld [vmem:[%s3457_s10 + $0x98] sm:$0xff]  ;;  %v372_v21 = vld [vmem:[%s3457_s10 + $0xa0] sm:$0xff] }
  0x19   : > { %3258 = vmatprep.mubr.msk.f32.mxu0 %vm407_vm1, %v356_v5  ;;  %v373_v22 = vld [vmem:[%s3457_s10 + $0xa8] sm:$0xff]  ;;  %v374_v23 = vld [vmem:[%s3457_s10 + $0xb0] sm:$0xff]  ;;  %v375_v24 = vld [vmem:[%s3457_s10 + $0xb8] sm:$0xff] }
  0x1a   : > { %v376_v25 = vld [vmem:[%s3457_s10 + $0xc0] sm:$0xff]  ;;  %v377_v26 = vld [vmem:[%s3457_s10 + $0xc8] sm:$0xff]  ;;  %v378_v27 = vld [vmem:[%s3457_s10 + $0xd0] sm:$0xff] }
  0x1b   : > { %v379_v28 = vld [vmem:[%s3457_s10 + $0xd8] sm:$0xff]  ;;  %v380_v29 = vld [vmem:[%s3457_s10 + $0xe0] sm:$0xff]  ;;  %v381_v30 = vld [vmem:[%s3457_s10 + $0xe8] sm:$0xff] }
  0x1c   : > { %3259 = vmatmul.mubr.msk.f32.gmra.mxu0 %vm407_vm1, %v357_v6  ;;  %v382_v31 = vld [vmem:[%s3457_s10 + $0xf0] sm:$0xff]  ;;  %v383_v32 = vld [vmem:[%s3457_s10 + $0xf8] sm:$0xff]  ;;  %v384_v33 = vld [vmem:[%s3457_s10 + $0x100] sm:$0xff] }
  0x1d   : > { %3261 = vmatprep.mubr.msk.f32.mxu0 %vm407_vm1, %v358_v7  ;;  %v385_v34 = vld [vmem:[%s3457_s10 + $0x108] sm:$0xff]  ;;  %v386_v35 = vld [vmem:[%s3457_s10 + $0x110] sm:$0xff]  ;;  %v387_v36 = vld [vmem:[%s3457_s10 + $0x118] sm:$0xff] }
  0x1e   : > { %v388_v37 = vld [vmem:[%s3457_s10 + $0x120] sm:$0xff]  ;;  %v389_v38 = vld [vmem:[%s3457_s10 + $0x128] sm:$0xff]  ;;  %v390_v39 = vld [vmem:[%s3457_s10 + $0x130] sm:$0xff] }
  0x1f   : > { %v391_v40 = vld [vmem:[%s3457_s10 + $0x138] sm:$0xff]  ;;  %v392_v41 = vld [vmem:[%s3457_s10 + $0x140] sm:$0xff]  ;;  %v393_v42 = vld [vmem:[%s3457_s10 + $0x148] sm:$0xff] }
  0x20   : > { %3262 = vmatmul.mubr.msk.f32.gmra.mxu0 %vm407_vm1, %v359_v8  ;;  %v394_v43 = vld [vmem:[%s3457_s10 + $0x150] sm:$0xff]  ;;  %v395_v44 = vld [vmem:[%s3457_s10 + $0x158] sm:$0xff]  ;;  %v396_v45 = vld [vmem:[%s3457_s10 + $0x160] sm:$0xff] }
  0x21   : > { %3264 = vmatprep.mubr.msk.f32.mxu0 %vm407_vm1, %v360_v9  ;;  %v397_v46 = vld [vmem:[%s3457_s10 + $0x168] sm:$0xff]  ;;  %v398_v47 = vld [vmem:[%s3457_s10 + $0x170] sm:$0xff]  ;;  %v399_v48 = vld [vmem:[%s3457_s10 + $0x178] sm:$0xff] }
  0x22   : > { %v400_v49 = vld [vmem:[%s3457_s10 + $0x180] sm:$0xff]  ;;  %v401_v50 = vld [vmem:[%s3457_s10 + $0x188] sm:$0xff]  ;;  %v402_v51 = vld [vmem:[%s3457_s10 + $0x190] sm:$0xff] }
  0x23   : > { %v403_v52 = vld [vmem:[%s3457_s10 + $0x198] sm:$0xff]  ;;  %v404_v53 = vld [vmem:[%s3457_s10 + $0x1a0] sm:$0xff]  ;;  %v405_v54 = vld [vmem:[%s3457_s10 + $0x1a8] sm:$0xff]  ;;  %s3159_s10 = sshll.u32 %s6093_s24, 3 }
  0x24   : > { %3265 = vmatmul.mubr.msk.f32.gmra.mxu0 %vm407_vm1, %v361_v10  ;;  %v3576_v10 = vrot.slane %v1017_v58, %v1021_v2  ;;  %s340_s13 = scalar_lea.vmem %s5661_s6, %s3159_s10  ;;  %s350_s16 = scalar_lea.vmem %s5662_s7, %s3159_s10 }
  0x25   : > { %3267 = vmatprep.mubr.msk.f32.mxu0 %vm407_vm1, %v362_v11 }
  0x28   : > { %3268 = vmatmul.mubr.msk.f32.gmra.mxu0 %vm407_vm1, %v363_v12  ;;  %v1547_v12 = vsub.s32 3, %v1020_v56 }
  0x29   : > { %3270 = vmatprep.mubr.msk.f32.mxu0 %vm407_vm1, %v364_v13 }
  0x2c   : > { %3271 = vmatmul.mubr.msk.f32.gmra.mxu0 %vm407_vm1, %v365_v14  ;;  %v1615_v14 = vsub.s32 4, %v1020_v56 }
  0x2d   : > { %3273 = vmatprep.mubr.msk.f32.mxu0 %vm407_vm1, %v366_v15  ;;  %v1859_v15 = vsub.s32 5, %v1020_v56 }
  0x30   : > { %3274 = vmatmul.mubr.msk.f32.gmra.mxu0 %vm407_vm1, %v367_v16 }
  0x31   : > { %3276 = vmatprep.mubr.msk.f32.mxu0 %vm407_vm1, %v368_v17 }
  0x34   : > { %3277 = vmatmul.mubr.msk.f32.gmra.mxu0 %vm407_vm1, %v369_v18 }
  0x35   : > { %3279 = vmatprep.mubr.msk.f32.mxu0 %vm407_vm1, %v370_v19 }
  0x38   : > { %3280 = vmatmul.mubr.msk.f32.gmra.mxu0 %vm407_vm1, %v371_v20 }
  0x39   : > { %3282 = vmatprep.mubr.msk.f32.mxu0 %vm407_vm1, %v372_v21 }
  0x3c   : > { %3283 = vmatmul.mubr.msk.f32.gmra.mxu0 %vm407_vm1, %v373_v22 }
  0x3d   : > { %3285 = vmatprep.mubr.msk.f32.mxu0 %vm407_vm1, %v374_v23 }
  0x40   : > { %3286 = vmatmul.mubr.msk.f32.gmra.mxu0 %vm407_vm1, %v375_v24 }
  0x41   : > { %3288 = vmatprep.mubr.msk.f32.mxu0 %vm407_vm1, %v376_v25 }
  0x44   : > { %3289 = vmatmul.mubr.msk.f32.gmra.mxu0 %vm407_vm1, %v377_v26 }
  0x45   : > { %3291 = vmatprep.mubr.msk.f32.mxu0 %vm407_vm1, %v378_v27  ;;  %v2103_v27 = vsub.s32 6, %v1020_v56 }
  0x48   : > { %3292 = vmatmul.mubr.msk.f32.gmra.mxu0 %vm407_vm1, %v379_v28  ;;  %v2171_v28 = vsub.s32 7, %v1020_v56 }
  0x49   : > { %3294 = vmatprep.mubr.msk.f32.mxu0 %vm407_vm1, %v380_v29 }
  0x4c   : > { %3295 = vmatmul.mubr.msk.f32.gmra.mxu0 %vm407_vm1, %v381_v30 }
  0x4d   : > { %3297 = vmatprep.mubr.msk.f32.mxu0 %vm407_vm1, %v382_v31 }
  0x50   : > { %3298 = vmatmul.mubr.msk.f32.gmra.mxu0 %vm407_vm1, %v383_v32  ;;  %v3585_v32 = vrot.slane %v1017_v58, %v1547_v12 }
  0x51   : > { %3300 = vmatprep.mubr.msk.f32.mxu0 %vm407_vm1, %v384_v33  ;;  %v3587_v33 = vrot.slane %v1017_v58, %v1615_v14 }
  0x54   : > { %3301 = vmatmul.mubr.msk.f32.gmra.mxu0 %vm407_vm1, %v385_v34 }
  0x55   : > { %3303 = vmatprep.mubr.msk.f32.mxu0 %vm407_vm1, %v386_v35 }
  0x58   : > { %3304 = vmatmul.mubr.msk.f32.gmra.mxu0 %vm407_vm1, %v387_v36 }
  0x59   : > { %3306 = vmatprep.mubr.msk.f32.mxu0 %vm407_vm1, %v388_v37 }
  0x5c   : > { %3307 = vmatmul.mubr.msk.f32.gmra.mxu0 %vm407_vm1, %v389_v38  ;;  %v3593_v38 = vrot.slane %v1017_v58, %v1859_v15 }
  0x5d   : > { %3309 = vmatprep.mubr.msk.f32.mxu0 %vm407_vm1, %v390_v39 }
  0x60   : > { %3310 = vmatmul.mubr.msk.f32.gmra.mxu0 %vm407_vm1, %v391_v40 }
  0x61   : > { %3312 = vmatprep.mubr.msk.f32.mxu0 %vm407_vm1, %v392_v41 }
  0x64   : > { %3313 = vmatmul.mubr.msk.f32.gmra.mxu0 %vm407_vm1, %v393_v42 }
  0x65   : > { %3315 = vmatprep.mubr.msk.f32.mxu0 %vm407_vm1, %v394_v43  ;;  %v3597_v43 = vrot.slane %v1017_v58, %v2103_v27 }
  0x68   : > { %3316 = vmatmul.mubr.msk.f32.gmra.mxu0 %vm407_vm1, %v395_v44  ;;  %v3599_v44 = vrot.slane %v1017_v58, %v2171_v28 }
  0x69   : > { %3318 = vmatprep.mubr.msk.f32.mxu0 %vm407_vm1, %v396_v45 }
  0x6c   : > { %3319 = vmatmul.mubr.msk.f32.gmra.mxu0 %vm407_vm1, %v397_v46 }
  0x6d   : > { %3321 = vmatprep.mubr.msk.f32.mxu0 %vm407_vm1, %v398_v47 }
  0x70   : > { %3322 = vmatmul.mubr.msk.f32.gmra.mxu0 %vm407_vm1, %v399_v48 }
  0x71   : > { %3324 = vmatprep.mubr.msk.f32.mxu0 %vm407_vm1, %v400_v49 }
  0x74   : > { %3325 = vmatmul.mubr.msk.f32.gmra.mxu0 %vm407_vm1, %v401_v50 }
  0x75   : > { %3327 = vmatprep.mubr.msk.f32.mxu0 %vm407_vm1, %v402_v51 }
  0x78   : > { %3328 = vmatmul.mubr.msk.f32.gmra.mxu0 %vm407_vm1, %v403_v52 }
  0x79   : > { %3330 = vmatprep.mubr.msk.f32.mxu0 %vm407_vm1, %v404_v53 }
  0x7c   : > { %3331 = vmatmul.mubr.msk.f32.gmra.mxu0 %vm407_vm1, %v405_v54 }
  0xd4   : > { %v3254_v60 = vpop.f32.mrf.mxu0 }
  0xd5   : > { %v910_v61 = vmax.f32 %v3254_v60, 0.0 }
  0xd6   : > { %v640_v0 = vpop.f32.mrf.mxu0 }
  0xd7   : > { %v964_v1 = vmin.f32 %v910_v61, 6.0  ;;  %v909_v3 = vmax.f32 %v640_v0, 0.0 }
  0xd8   : > { %v3257_v4 = vpop.f32.mrf.mxu0 }
  0xd9   : > { %v1060_v5 = vmul.f32 %v3570_v62, %v964_v1  ;;  %v963_v6 = vmin.f32 %v909_v3, 6.0  ;;  %v1305_v7 = vmul.f32 %v3572_v63, %v964_v1  ;;  %v912_v8 = vmax.f32 %v3257_v4, 0.0 }
  0xda   : > { %v650_v9 = vpop.f32.mrf.mxu0  ;;  %v1024_v45 = vmul.f32 %v3576_v10, %v964_v1 }
  0xdb   : > { %v1059_v11 = vmul.f32 %v3570_v62, %v963_v6  ;;  %v1304_v13 = vmul.f32 %v3572_v63, %v963_v6  ;;  %v1157_v17 = vrot.slane %v1060_v5, 1  ;;  %v911_v19 = vmax.f32 %v650_v9, 0.0 }
  0xdc   : > { %v3260_v16 = vpop.f32.mrf.mxu0  ;;  %v1402_v21 = vrot.slane %v1305_v7, 2  ;;  %v1023_v22 = vmul.f32 %v3576_v10, %v963_v6  ;;  %v3581_v24 = vmin.f32 %v912_v8, 6.0 }
  0xdd   : > { %v1156_v18 = vrot.slane %v1059_v11, 1  ;;  %v914_v20 = vmax.f32 %v3260_v16, 0.0  ;;  %v1401_v23 = vrot.slane %v1304_v13, 2  ;;  %v965_v34 = vmin.f32 %v911_v19, 6.0 }
  0xde   : > { %5788 = vst [vmem:[#allocation2_spill] sm:$0xff] %v3581_v24  ;;  %v660_v25 = vpop.f32.mrf.mxu0  ;;  %v1062_v37 = vmul.f32 %v3570_v62, %v3581_v24  ;;  %v3605_v50 = vmul.f32 %v3576_v10, %v3581_v24  ;;  %v3609_v51 = vmul.f32 %v3572_v63, %v3581_v24  ;;  %v3613_v55 = vmul.f32 %v3587_v33, %v3581_v24 }
  0xdf   : > { %v1158_v26 = vsel %vm1155_vm2, %v1156_v18, %v1157_v17  ;;  %v1403_v30 = vsel %vm1400_vm3, %v1401_v23, %v1402_v21  ;;  %v968_v35 = vmin.f32 %v914_v20, 6.0  ;;  %v913_v39 = vmax.f32 %v660_v25, 0.0 }
  0xe0   : > { %v1268_v29 = vadd.f32 %v1158_v26, %v1023_v22  ;;  %v3263_v31 = vpop.f32.mrf.mxu0  ;;  %v1061_v41 = vmul.f32 %v3570_v62, %v965_v34  ;;  %v1306_v42 = vmul.f32 %v3572_v63, %v965_v34  ;;  %5790 = vst [vmem:[#allocation4_spill] sm:$0xff] %v3605_v50  ;;  %5791 = vst [vmem:[#allocation5_spill] sm:$0xff] %v3609_v51  ;;  %v1161_v54 = vrot.slane %v1062_v37, 1 }
  0xe1   : > { %v1064_v46 = vmul.f32 %v3570_v62, %v968_v35  ;;  %v967_v47 = vmin.f32 %v913_v39, 6.0  ;;  %v916_v48 = vmax.f32 %v3263_v31, 0.0  ;;  %5792 = vst [vmem:[#allocation6_spill] sm:$0xff] %v3613_v55  ;;  %v3616_v56 = vmul.f32 %v3572_v63, %v968_v35 }
  0xe2   : > { %v3589_v36 = vadd.f32 %v1403_v30, %v1268_v29  ;;  %v670_v40 = vpop.f32.mrf.mxu0  ;;  %v1159_v52 = vrot.slane %v1061_v41, 1  ;;  %v1404_v53 = vrot.slane %v1306_v42, 2  ;;  %v3622_v61 = vmul.f32 %v3587_v33, %v968_v35 }
  0xe3   : > { %5793 = vst [vmem:[#allocation7_spill] sm:$0xff] %v3616_v56  ;;  %v1063_v57 = vmul.f32 %v3570_v62, %v967_v47  ;;  %v3625_v0 = vmul.f32 %v3593_v38, %v968_v35  ;;  %v1164_v2 = vrot.slane %v1064_v46, 1  ;;  %v3627_v4 = vmin.f32 %v916_v48, 6.0 }
  0xe4   : > { %5789 = vst [vmem:[#allocation3_spill] sm:$0xff] %v3589_v36  ;;  %v3266_v49 = vpop.f32.mrf.mxu0  ;;  %v1160_v59 = vsel %vm1155_vm2, %v1157_v17, %v1159_v52  ;;  %v1405_v60 = vsel %vm1400_vm3, %v1402_v21, %v1404_v53  ;;  %5794 = vst [vmem:[#allocation8_spill] sm:$0xff] %v3622_v61  ;;  %v1026_v6 = vmul.f32 %v3576_v10, %v967_v47  ;;  %v915_v21 = vmax.f32 %v670_v40, 0.0 }
  0xe5   : > { %5795 = vst [vmem:[#allocation9_spill] sm:$0xff] %v3625_v0  ;;  %v1269_v1 = vadd.f32 %v1160_v59, %v1024_v45  ;;  %v1162_v3 = vrot.slane %v1063_v57, 1  ;;  %5796 = vst [vmem:[#allocation10_spill] sm:$0xff] %v3627_v4  ;;  %v3631_v7 = vmul.f32 %v3572_v63, %v967_v47  ;;  %v3634_v8 = vmul.f32 %v3587_v33, %v967_v47 }
  0xe6   : > { %v680_v58 = vpop.f32.mrf.mxu0  ;;  %v3643_v14 = vmul.f32 %v3593_v38, %v967_v47  ;;  %v3654_v26 = vmul.f32 %v3585_v32, %v967_v47  ;;  %v918_v27 = vmax.f32 %v3266_v49, 0.0  ;;  %v3658_v28 = vmul.f32 %v3570_v62, %v3627_v4 }
  0xe7   : > { %5797 = vst [vmem:[#allocation11_spill] sm:$0xff] %v3631_v7  ;;  %5798 = vst [vmem:[#allocation12_spill] sm:$0xff] %v3634_v8  ;;  %v917_v9 = vmax.f32 %v680_v58, 0.0  ;;  %v3636_v11 = vadd.f32 %v1405_v60, %v1269_v1  ;;  %v3639_v12 = vsel %vm1155_vm2, %v1161_v54, %v1162_v3  ;;  %v1165_v13 = vsel %vm1155_vm2, %v1162_v3, %v1164_v2 }
  0xe8   : > { %v3269_v5 = vpop.f32.mrf.mxu0  ;;  %5800 = vst [vmem:[#allocation14_spill] sm:$0xff] %v3639_v12  ;;  %5801 = vst [vmem:[#allocation15_spill] sm:$0xff] %v3643_v14  ;;  %v3648_v19 = vadd.f32 %v1165_v13, %v1026_v6  ;;  %v3675_v45 = vmin.f32 %v915_v21, 6.0  ;;  %v3681_v52 = vmin.f32 %v918_v27, 6.0  ;;  %v5663_v53 = vrot.slane %v3658_v28, 1 }
  0xe9   : > { %5799 = vst [vmem:[#allocation13_spill] sm:$0xff] %v3636_v11  ;;  %v3651_v22 = vmin.f32 %v917_v9, 6.0  ;;  %v920_v23 = vmax.f32 %v3269_v5, 0.0  ;;  %5804 = vst [vmem:[#allocation18_spill] sm:$0xff] %v3654_v26 }
  0xea   : > { %v690_v15 = vpop.f32.mrf.mxu0  ;;  %5802 = vst [vmem:[#allocation16_spill] sm:$0xff] %v3648_v19  ;;  %5805 = vst [vmem:[#allocation19_spill] sm:$0xff] %v3658_v28 }
  0xeb   : > { %5803 = vst [vmem:[#allocation17_spill] sm:$0xff] %v3651_v22  ;;  %v1067_v35 = vmul.f32 %v3570_v62, %v3651_v22  ;;  %v3667_v39 = vmul.f32 %v3572_v63, %v3651_v22  ;;  %v3671_v40 = vmul.f32 %v3587_v33, %v3651_v22  ;;  %v3673_v41 = vmin.f32 %v920_v23, 6.0  ;;  %5809 = vst [vmem:[#allocation23_spill] sm:$0xff] %v3675_v45 }
  0xec   : > { %v3272_v25 = vpop.f32.mrf.mxu0  ;;  %v919_v42 = vmax.f32 %v690_v15, 0.0  ;;  %v3679_v47 = vmul.f32 %v3593_v38, %v3651_v22  ;;  %5811 = vst [vmem:[#allocation25_spill] sm:$0xff] %v3681_v52 }
  0xed   : > { %v922_v29 = vmax.f32 %v3272_v25, 0.0  ;;  %5806 = vst [vmem:[#allocation20_spill] sm:$0xff] %v3667_v39  ;;  %5807 = vst [vmem:[#allocation21_spill] sm:$0xff] %v3671_v40  ;;  %v1169_v46 = vrot.slane %v1067_v35, 1  ;;  %v3686_v54 = vmul.f32 %v3570_v62, %v3673_v41  ;;  %v3692_v58 = vmul.f32 %v3572_v63, %v3673_v41 }
  0xee   : > { %v700_v37 = vpop.f32.mrf.mxu0  ;;  %5808 = vst [vmem:[#allocation22_spill] sm:$0xff] %v3673_v41  ;;  %5810 = vst [vmem:[#allocation24_spill] sm:$0xff] %v3679_v47  ;;  %v3696_v59 = vmul.f32 %v3587_v33, %v3673_v41  ;;  %v3700_v60 = vmul.f32 %v3593_v38, %v3673_v41  ;;  %v3704_v6 = vmin.f32 %v919_v42, 6.0 }
  0xef   : > { %v921_v48 = vmax.f32 %v700_v37, 0.0  ;;  %5812 = vst [vmem:[#allocation26_spill] sm:$0xff] %v3686_v54  ;;  %v3688_v57 = vmin.f32 %v922_v29, 6.0  ;;  %5814 = vst [vmem:[#allocation28_spill] sm:$0xff] %v3692_v58  ;;  %v3709_v13 = vsel %vm1155_vm2, %v5663_v53, %v1169_v46 }
  0xf0   : > { %v3275_v49 = vpop.f32.mrf.mxu0  ;;  %5815 = vst [vmem:[#allocation29_spill] sm:$0xff] %v3696_v59  ;;  %5816 = vst [vmem:[#allocation30_spill] sm:$0xff] %v3700_v60 }
  0xf1   : > { %5813 = vst [vmem:[#allocation27_spill] sm:$0xff] %v3688_v57  ;;  %v924_v1 = vmax.f32 %v3275_v49, 0.0  ;;  %5817 = vst [vmem:[#allocation31_spill] sm:$0xff] %v3704_v6  ;;  %v3712_v21 = vmin.f32 %v921_v48, 6.0  ;;  %v3721_v35 = vmul.f32 %v3570_v62, %v3688_v57  ;;  %v3742_v34 = vmul.f32 %v3576_v10, %v3688_v57 }
  0xf2   : > { %v710_v2 = vpop.f32.mrf.mxu0  ;;  %5818 = vst [vmem:[#allocation32_spill] sm:$0xff] %v3709_v13 }
  0xf3   : > { %v923_v9 = vmax.f32 %v710_v2, 0.0  ;;  %5819 = vst [vmem:[#allocation33_spill] sm:$0xff] %v3712_v21  ;;  %v3714_v23 = vmin.f32 %v924_v1, 6.0  ;;  %5822 = vst [vmem:[#allocation36_spill] sm:$0xff] %v3721_v35  ;;  %v5673_v5 = vrot.slane %v3721_v35, 1 }
  0xf4   : > { %v3278_v25 = vpop.f32.mrf.mxu0  ;;  %5826 = vst [vmem:[#allocation40_spill] sm:$0xff] %v3742_v34 }
  0xf5   : > { %5820 = vst [vmem:[#allocation34_spill] sm:$0xff] %v3714_v23  ;;  %v3717_v29 = vmin.f32 %v923_v9, 6.0  ;;  %v926_v37 = vmax.f32 %v3278_v25, 0.0  ;;  %v3728_v1 = vmul.f32 %v3570_v62, %v3714_v23  ;;  %v3738_v25 = vmul.f32 %v3572_v63, %v3714_v23 }
  0xf6   : > { %v720_v48 = vpop.f32.mrf.mxu0  ;;  %v3757_v17 = vmul.f32 %v3576_v10, %v3714_v23 }
  0xf7   : > { %5821 = vst [vmem:[#allocation35_spill] sm:$0xff] %v3717_v29  ;;  %5823 = vst [vmem:[#allocation37_spill] sm:$0xff] %v3728_v1  ;;  %v1073_v2 = vmul.f32 %v3570_v62, %v3717_v29  ;;  %v3734_v9 = vmul.f32 %v3572_v63, %v3717_v29  ;;  %v3746_v20 = vmul.f32 %v3587_v33, %v3717_v29  ;;  %v3752_v18 = vmin.f32 %v926_v37, 6.0 }
  0xf8   : > { %5825 = vst [vmem:[#allocation39_spill] sm:$0xff] %v3738_v25  ;;  %v3750_v31 = vmul.f32 %v3593_v38, %v3717_v29  ;;  %v925_v16 = vmax.f32 %v720_v48, 0.0  ;;  %v3281_v15 = vpop.f32.mrf.mxu0  ;;  %5830 = vst [vmem:[#allocation44_spill] sm:$0xff] %v3757_v17 }
  0xf9   : > { %5824 = vst [vmem:[#allocation38_spill] sm:$0xff] %v3734_v9  ;;  %5827 = vst [vmem:[#allocation41_spill] sm:$0xff] %v3746_v20  ;;  %v1179_v30 = vrot.slane %v1073_v2, 1  ;;  %v3762_v49 = vmul.f32 %v3570_v62, %v3752_v18  ;;  %v3766_v46 = vmul.f32 %v3572_v63, %v3752_v18  ;;  %v3770_v37 = vmul.f32 %v3587_v33, %v3752_v18 }
  0xfa   : > { %5828 = vst [vmem:[#allocation42_spill] sm:$0xff] %v3750_v31  ;;  %5829 = vst [vmem:[#allocation43_spill] sm:$0xff] %v3752_v18  ;;  %v3774_v48 = vmul.f32 %v3593_v38, %v3752_v18  ;;  %v730_v2 = vpop.f32.mrf.mxu0  ;;  %v3776_v3 = vmin.f32 %v925_v16, 6.0  ;;  %v928_v42 = vmax.f32 %v3281_v15, 0.0 }
  0xfb   : > { %5831 = vst [vmem:[#allocation45_spill] sm:$0xff] %v3762_v49  ;;  %5832 = vst [vmem:[#allocation46_spill] sm:$0xff] %v3766_v46  ;;  %v927_v27 = vmax.f32 %v730_v2, 0.0  ;;  %v3782_v36 = vsel %vm1155_vm2, %v5673_v5, %v1179_v30 }
  0xfc   : > { %5833 = vst [vmem:[#allocation47_spill] sm:$0xff] %v3770_v37  ;;  %5834 = vst [vmem:[#allocation48_spill] sm:$0xff] %v3774_v48  ;;  %v3284_v14 = vpop.f32.mrf.mxu0  ;;  %v3788_v16 = vmin.f32 %v928_v42, 6.0  ;;  %v3797_v24 = vmul.f32 %v3576_v10, %v3776_v3 }
  0xfd   : > { %5835 = vst [vmem:[#allocation49_spill] sm:$0xff] %v3776_v3  ;;  %5836 = vst [vmem:[#allocation50_spill] sm:$0xff] %v3782_v36  ;;  %v3790_v15 = vmin.f32 %v927_v27, 6.0  ;;  %v930_v2 = vmax.f32 %v3284_v14, 0.0  ;;  %v3807_v14 = vmul.f32 %v3570_v62, %v3776_v3 }
  0xfe   : > { %5837 = vst [vmem:[#allocation51_spill] sm:$0xff] %v3788_v16  ;;  %v740_v5 = vpop.f32.mrf.mxu0  ;;  %5839 = vst [vmem:[#allocation53_spill] sm:$0xff] %v3797_v24  ;;  %v3803_v42 = vmul.f32 %v3570_v62, %v3788_v16  ;;  %v1036_v30 = vmul.f32 %v3576_v10, %v3788_v16  ;;  %v3813_v8 = vmul.f32 %v3572_v63, %v3788_v16 }
  0xff   : > { %5838 = vst [vmem:[#allocation52_spill] sm:$0xff] %v3790_v15  ;;  %v3799_v22 = vmin.f32 %v930_v2, 6.0  ;;  %v929_v55 = vmax.f32 %v740_v5, 0.0  ;;  %5841 = vst [vmem:[#allocation55_spill] sm:$0xff] %v3807_v14  ;;  %v3817_v2 = vmul.f32 %v3570_v62, %v3790_v15  ;;  %v3821_v5 = vmul.f32 %v3572_v63, %v3776_v3 }
 0x100   : > { %v3287_v27 = vpop.f32.mrf.mxu0  ;;  %5842 = vst [vmem:[#allocation56_spill] sm:$0xff] %v3813_v8  ;;  %v3827_v61 = vmul.f32 %v3576_v10, %v3790_v15  ;;  %v3831_v26 = vmul.f32 %v3572_v63, %v3790_v15  ;;  %v5851_v13 = vrot.slane %v3803_v42, 1 }
 0x101   : > { %5840 = vst [vmem:[#allocation54_spill] sm:$0xff] %v3799_v22  ;;  %5843 = vst [vmem:[#allocation57_spill] sm:$0xff] %v3817_v2  ;;  %v3823_v53 = vmin.f32 %v929_v55, 6.0  ;;  %v932_v0 = vmax.f32 %v3287_v27, 0.0  ;;  %v3836_v12 = vmul.f32 %v3576_v10, %v3799_v22  ;;  %v3840_v55 = vmul.f32 %v3570_v62, %v3799_v22 }
 0x102   : > { %5844 = vst [vmem:[#allocation58_spill] sm:$0xff] %v3821_v5  ;;  %5846 = vst [vmem:[#allocation60_spill] sm:$0xff] %v3827_v61  ;;  %v750_v51 = vpop.f32.mrf.mxu0  ;;  %v3844_v27 = vmul.f32 %v3572_v63, %v3799_v22 }
 0x103   : > { %5845 = vst [vmem:[#allocation59_spill] sm:$0xff] %v3823_v53  ;;  %5847 = vst [vmem:[#allocation61_spill] sm:$0xff] %v3831_v26  ;;  %v1079_v50 = vmul.f32 %v3570_v62, %v3823_v53  ;;  %v1324_v47 = vmul.f32 %v3572_v63, %v3823_v53  ;;  %v3852_v11 = vmul.f32 %v3587_v33, %v3823_v53  ;;  %v3859_v19 = vmin.f32 %v932_v0, 6.0 }
 0x104   : > { %v3857_v41 = vmul.f32 %v3593_v38, %v3823_v53  ;;  %v931_v7 = vmax.f32 %v750_v51, 0.0  ;;  %v3290_v56 = vpop.f32.mrf.mxu0 }
 0x105   : > { %5848 = vst [vmem:[#allocation62_spill] sm:$0xff] %v3852_v11  ;;  %5850 = vst [vmem:[#allocation64_spill] sm:$0xff] %v3859_v19  ;;  %v1189_v45 = vrot.slane %v1079_v50, 1  ;;  %v1434_v60 = vrot.slane %v1324_v47, 2  ;;  %v1082_v39 = vmul.f32 %v3570_v62, %v3859_v19  ;;  %v1327_v40 = vmul.f32 %v3572_v63, %v3859_v19 }
 0x106   : > { %5849 = vst [vmem:[#allocation63_spill] sm:$0xff] %v3857_v41  ;;  %v3870_v0 = vmul.f32 %v3587_v33, %v3859_v19  ;;  %v3874_v51 = vmul.f32 %v3593_v38, %v3859_v19  ;;  %v760_v50 = vpop.f32.mrf.mxu0  ;;  %v3877_v28 = vmin.f32 %v931_v7, 6.0  ;;  %v934_v29 = vmax.f32 %v3290_v56, 0.0 }
 0x107   : > { %v933_v59 = vmax.f32 %v760_v50, 0.0  ;;  %v1190_v4 = vsel %vm1155_vm2, %v5851_v13, %v1189_v45  ;;  %v1194_v31 = vrot.slane %v1082_v39, 1  ;;  %v1439_v20 = vrot.slane %v1327_v40, 2 }
 0x108   : > { %v3293_v18 = vpop.f32.mrf.mxu0  ;;  %v3885_v6 = vmin.f32 %v934_v29, 6.0  ;;  %v1038_v50 = vmul.f32 %v3576_v10, %v3877_v28  ;;  %v1081_v45 = vmul.f32 %v3570_v62, %v3877_v28  ;;  %v3895_v39 = vmul.f32 %v3572_v63, %v3877_v28 }
 0x109   : > { %v936_v47 = vmax.f32 %v3293_v18, 0.0  ;;  %v3887_v7 = vmin.f32 %v933_v59, 6.0  ;;  %v3901_v29 = vadd.f32 %v1190_v4, %v1036_v30  ;;  %v5854_v18 = vrot.slane %v3813_v8, 2 }
 0x10a   : > { %v770_v56 = vpop.f32.mrf.mxu0  ;;  %v3899_v13 = vmul.f32 %v3570_v62, %v3885_v6  ;;  %v1192_v54 = vrot.slane %v1081_v45, 1  ;;  %v3911_v35 = vmul.f32 %v3587_v33, %v3885_v6  ;;  %v5856_v21 = vrot.slane %v3895_v39, 2 }
 0x10b   : > { %5852 = vst [vmem:[#allocation65_spill] sm:$0xff] %v3887_v7  ;;  %v935_v40 = vmax.f32 %v770_v56, 0.0  ;;  %v3906_v59 = vsel %vm1400_vm3, %v5854_v18, %v1434_v60  ;;  %v3915_v56 = vmul.f32 %v3593_v38, %v3885_v6  ;;  %v3917_v23 = vmin.f32 %v936_v47, 6.0 }
 0x10c   : > { %5853 = vst [vmem:[#allocation66_spill] sm:$0xff] %v3899_v13  ;;  %v3296_v52 = vpop.f32.mrf.mxu0  ;;  %v1564_v60 = vmul.f32 %v3585_v32, %v3885_v6  ;;  %v1195_v58 = vsel %vm1155_vm2, %v1192_v54, %v1194_v31  ;;  %v1440_v48 = vsel %vm1400_vm3, %v5856_v21, %v1439_v20  ;;  %v3930_v37 = vmul.f32 %v3585_v32, %v3887_v7 }
 0x10d   : > { %5855 = vst [vmem:[#allocation67_spill] sm:$0xff] %v3917_v23  ;;  %v3919_v4 = vmin.f32 %v935_v40, 6.0  ;;  %v938_v30 = vmax.f32 %v3296_v52, 0.0  ;;  %v1283_v9 = vadd.f32 %v1195_v58, %v1038_v50  ;;  %v5863_v20 = vrot.slane %v3840_v55, 1 }
 0x10e   : > { %v780_v18 = vpop.f32.mrf.mxu0  ;;  %v5864_v17 = vrot.slane %v3899_v13, 1  ;;  %v5867_v55 = vrot.slane %v3911_v35, 1 }
 0x10f   : > { %v1085_v47 = vmul.f32 %v3570_v62, %v3919_v4  ;;  %v3936_v52 = vmul.f32 %v3572_v63, %v3919_v4  ;;  %v1640_v40 = vmul.f32 %v3587_v33, %v3919_v4  ;;  %v992_v45 = vmin.f32 %v938_v30, 6.0 }
 0x110   : > { %v937_v31 = vmax.f32 %v780_v18, 0.0  ;;  %v3299_v53 = vpop.f32.mrf.mxu0  ;;  %v1884_v34 = vmul.f32 %v3593_v38, %v3919_v4  ;;  %v1193_v25 = vsel %vm1155_vm2, %v5863_v20, %v1192_v54  ;;  %v1528_v19 = vadd.f32 %v1440_v48, %v1283_v9 }
 0x111   : > { %5857 = vst [vmem:[#allocation68_spill] sm:$0xff] %v3936_v52  ;;  %v1199_v3 = vrot.slane %v1085_v47, 1  ;;  %v1751_v57 = vrot.slane %v1640_v40, 1  ;;  %v3943_v36 = vmul.f32 %v3570_v62, %v992_v45  ;;  %v3948_v15 = vmul.f32 %v3572_v63, %v992_v45 }
 0x112   : > { %v3951_v30 = vmul.f32 %v3587_v33, %v992_v45  ;;  %v3954_v58 = vmul.f32 %v3593_v38, %v992_v45  ;;  %v3956_v50 = vmin.f32 %v937_v31, 6.0  ;;  %v790_v18 = vpop.f32.mrf.mxu0  ;;  %v940_v40 = vmax.f32 %v3299_v53, 0.0 }
 0x113   : > { %5858 = vst [vmem:[#allocation69_spill] sm:$0xff] %v3943_v36  ;;  %5859 = vst [vmem:[#allocation70_spill] sm:$0xff] %v3948_v15  ;;  %v939_v21 = vmax.f32 %v790_v18, 0.0  ;;  %v3965_v1 = vsel %vm1155_vm2, %v5864_v17, %v1199_v3  ;;  %v1752_v54 = vsel %vm1155_vm2, %v5867_v55, %v1751_v57  ;;  %v1596_v17 = vadd.f32 %v1564_v60, %v1528_v19  ;;  %v3989_v57 = vld [vmem:[%s5657_s2 + $0x8] ss:$0 sm:$0xff] }
 0x114   : > { %5860 = vst [vmem:[#allocation71_spill] sm:$0xff] %v3951_v30  ;;  %5861 = vst [vmem:[#allocation72_spill] sm:$0xff] %v3954_v58  ;;  %v3302_v31 = vpop.f32.mrf.mxu0  ;;  %v3970_v47 = vmin.f32 %v940_v40, 6.0  ;;  %v1995_v3 = vrot.slane %v1884_v34, 2  ;;  %v3978_v41 = vmul.f32 %v3599_v44, %v3956_v50  ;;  %v2196_v40 = vmul.f32 %v3599_v44, %v992_v45 }
 0x115   : > { %5862 = vst [vmem:[#allocation73_spill] sm:$0xff] %v3956_v50  ;;  %5865 = vst [vmem:[#allocation74_spill] sm:$0xff] %v3965_v1  ;;  %v942_v53 = vmax.f32 %v3302_v31, 0.0  ;;  %v3980_v11 = vmin.f32 %v939_v21, 6.0  ;;  %v1840_v60 = vadd.f32 %v1752_v54, %v1596_v17  ;;  %v2120_v21 = vmul.f32 %v3597_v43, %v3956_v50 }
 0x116   : > { %5866 = vst [vmem:[#allocation75_spill] sm:$0xff] %v3970_v47  ;;  %v800_v18 = vpop.f32.mrf.mxu0  ;;  %v3984_v48 = vmul.f32 %v3570_v62, %v3970_v47  ;;  %v3998_v31 = vmul.f32 %v3989_v57, %v3956_v50  ;;  %v5872_v20 = vrot.slane %v3915_v56, 2  ;;  %v2307_v17 = vrot.slane %v2196_v40, 1 }
 0x117   : > { %5868 = vst [vmem:[#allocation76_spill] sm:$0xff] %v3980_v11  ;;  %v941_v9 = vmax.f32 %v800_v18, 0.0  ;;  %v3992_v19 = vmin.f32 %v942_v53, 6.0  ;;  %v2440_v30 = vmul.f32 %v3989_v57, %v992_v45  ;;  %v5877_v15 = vrot.slane %v3978_v41, 1 }
 0x118   : > { %5869 = vst [vmem:[#allocation77_spill] sm:$0xff] %v3984_v48  ;;  %v3305_v34 = vpop.f32.mrf.mxu0  ;;  %v1996_v46 = vsel %vm1400_vm3, %v5872_v20, %v1995_v3 }
 0x119   : > { %5870 = vst [vmem:[#allocation78_spill] sm:$0xff] %v3992_v19  ;;  %v4000_v55 = vmin.f32 %v941_v9, 6.0  ;;  %v944_v18 = vmax.f32 %v3305_v34, 0.0  ;;  %v2084_v54 = vadd.f32 %v1996_v46, %v1840_v60  ;;  %v1282_v60 = vadd.f32 %v1193_v25, %v3836_v12 }
 0x11a   : > { %v810_v58 = vpop.f32.mrf.mxu0  ;;  %v2308_v36 = vsel %vm1155_vm2, %v5877_v15, %v2307_v17 }
 0x11b   : > { %5871 = vst [vmem:[#allocation79_spill] sm:$0xff] %v4000_v55  ;;  %v1091_v52 = vmul.f32 %v3570_v62, %v4000_v55  ;;  %v4012_v9 = vmul.f32 %v3572_v63, %v4000_v55  ;;  %v4016_v34 = vmul.f32 %v3587_v33, %v4000_v55  ;;  %v4020_v20 = vmul.f32 %v3593_v38, %v4000_v55 }
 0x11c   : > { %v4022_v3 = vmin.f32 %v944_v18, 6.0  ;;  %v943_v46 = vmax.f32 %v810_v58, 0.0  ;;  %v3308_v40 = vpop.f32.mrf.mxu0  ;;  %v2152_v1 = vadd.f32 %v2120_v21, %v2084_v54 }
 0x11d   : > { %5873 = vst [vmem:[#allocation80_spill] sm:$0xff] %v4012_v9  ;;  %5874 = vst [vmem:[#allocation81_spill] sm:$0xff] %v4016_v34  ;;  %v1209_v53 = vrot.slane %v1091_v52, 1  ;;  %v5881_v52 = vrot.slane %v3984_v48, 1  ;;  %v946_v17 = vmax.f32 %v3308_v40, 0.0  ;;  %v5887_v40 = vrot.slane %v3844_v27, 2 }
 0x11e   : > { %5875 = vst [vmem:[#allocation82_spill] sm:$0xff] %v4020_v20  ;;  %5876 = vst [vmem:[#allocation83_spill] sm:$0xff] %v4022_v3  ;;  %v4033_v18 = vmul.f32 %v3570_v62, %v4022_v3  ;;  %v4037_v58 = vmul.f32 %v3572_v63, %v4022_v3  ;;  %v4041_v12 = vmul.f32 %v3587_v33, %v4022_v3  ;;  %v820_v25 = vpop.f32.mrf.mxu0  ;;  %v4055_v45 = vmin.f32 %v943_v46, 6.0 }
 0x11f   : > { %v4046_v21 = vsel %vm1155_vm2, %v5881_v52, %v1209_v53  ;;  %v4051_v54 = vmul.f32 %v3593_v38, %v4022_v3  ;;  %v945_v55 = vmax.f32 %v820_v25, 0.0  ;;  %v4058_v11 = vmin.f32 %v946_v17, 6.0 }
 0x120   : > { %5878 = vst [vmem:[#allocation84_spill] sm:$0xff] %v4033_v18  ;;  %5879 = vst [vmem:[#allocation85_spill] sm:$0xff] %v4037_v58  ;;  %v3311_v34 = vpop.f32.mrf.mxu0  ;;  %v2396_v52 = vadd.f32 %v2308_v36, %v2152_v1  ;;  %v2551_v20 = vrot.slane %v2440_v30, 2  ;;  %v5886_v3 = vrot.slane %v3895_v39, 2  ;;  %v1638_v46 = vmul.f32 %v3587_v33, %v3887_v7 }
 0x121   : > { %5880 = vst [vmem:[#allocation86_spill] sm:$0xff] %v4041_v12  ;;  %5882 = vst [vmem:[#allocation87_spill] sm:$0xff] %v4046_v21  ;;  %v948_v53 = vmax.f32 %v3311_v34, 0.0  ;;  %v1882_v25 = vmul.f32 %v3593_v38, %v3887_v7  ;;  %v4072_v36 = vmul.f32 %v3570_v62, %v4058_v11  ;;  %v4074_v30 = vmin.f32 %v945_v55, 6.0 }
 0x122   : > { %5883 = vst [vmem:[#allocation88_spill] sm:$0xff] %v4051_v54  ;;  %5884 = vst [vmem:[#allocation89_spill] sm:$0xff] %v4055_v45  ;;  %v830_v15 = vpop.f32.mrf.mxu0  ;;  %v1438_v50 = vsel %vm1400_vm3, %v5887_v40, %v5886_v3  ;;  %v5890_v27 = vrot.slane %v3998_v31, 2  ;;  %v1748_v3 = vrot.slane %v1638_v46, 1  ;;  %v5893_v55 = vrot.slane %v3911_v35, 1 }
 0x123   : > { %5885 = vst [vmem:[#allocation90_spill] sm:$0xff] %v4058_v11  ;;  %v947_v17 = vmax.f32 %v830_v15, 0.0  ;;  %5888 = vst [vmem:[#allocation91_spill] sm:$0xff] %v4072_v36  ;;  %v1527_v1 = vadd.f32 %v1438_v50, %v1282_v60  ;;  %v1992_v40 = vrot.slane %v1882_v25, 2  ;;  %v4079_v13 = vmin.f32 %v948_v53, 6.0 }
 0x124   : > { %5889 = vst [vmem:[#allocation92_spill] sm:$0xff] %v4074_v30  ;;  %v3314_v39 = vpop.f32.mrf.mxu0  ;;  %v2552_v34 = vsel %vm1400_vm3, %v5890_v27, %v2551_v20  ;;  %v1750_v60 = vsel %vm1155_vm2, %v1748_v3, %v5893_v55  ;;  %v2119_v20 = vmul.f32 %v3597_v43, %v3917_v23  ;;  %v5903_v55 = vrot.slane %v4072_v36, 1 }
 0x125   : > { %5891 = vst [vmem:[#allocation93_spill] sm:$0xff] %v4079_v13  ;;  %v4081_v12 = vmin.f32 %v947_v17, 6.0  ;;  %v950_v48 = vmax.f32 %v3314_v39, 0.0  ;;  %v2640_v15 = vadd.f32 %v2552_v34, %v2396_v52  ;;  %v1595_v50 = vadd.f32 %v3930_v37, %v1527_v1  ;;  %v4109_v1 = vld [vmem:[%s5658_s3] ss:$0 sm:$0xff] }
 0x126   : > { %v840_v9 = vpop.f32.mrf.mxu0  ;;  %v5898_v39 = vrot.slane %v3915_v56, 2  ;;  %v2194_v34 = vmul.f32 %v3599_v44, %v3917_v23 }
 0x127   : > { %5892 = vst [vmem:[#allocation94_spill] sm:$0xff] %v4081_v12  ;;  %v1097_v53 = vmul.f32 %v3570_v62, %v4081_v12  ;;  %v4094_v46 = vmul.f32 %v3572_v63, %v4081_v12  ;;  %v4098_v52 = vmul.f32 %v3587_v33, %v4081_v12  ;;  %v4102_v37 = vmul.f32 %v3593_v38, %v4081_v12 }
 0x128   : > { %v4104_v35 = vmin.f32 %v950_v48, 6.0  ;;  %v949_v25 = vmax.f32 %v840_v9, 0.0  ;;  %v3317_v17 = vpop.f32.mrf.mxu0  ;;  %v1994_v27 = vsel %vm1400_vm3, %v1992_v40, %v5898_v39  ;;  %v2707_v48 = vadd.f32 %v4109_v1, %v2640_v15 }
 0x129   : > { %5894 = vst [vmem:[#allocation95_spill] sm:$0xff] %v4094_v46  ;;  %5895 = vst [vmem:[#allocation96_spill] sm:$0xff] %v4098_v52  ;;  %v1219_v3 = vrot.slane %v1097_v53, 1  ;;  %v1839_v54 = vadd.f32 %v1750_v60, %v1595_v50  ;;  %v952_v60 = vmax.f32 %v3317_v17, 0.0  ;;  %v2304_v52 = vrot.slane %v2194_v34, 1 }
 0x12a   : > { %5896 = vst [vmem:[#allocation97_spill] sm:$0xff] %v4102_v37  ;;  %5897 = vst [vmem:[#allocation98_spill] sm:$0xff] %v4104_v35  ;;  %v4120_v9 = vmul.f32 %v3570_v62, %v4104_v35  ;;  %v4124_v12 = vmul.f32 %v3572_v63, %v4104_v35  ;;  %v4128_v56 = vmul.f32 %v3587_v33, %v4104_v35  ;;  %v850_v53 = vpop.f32.mrf.mxu0  ;;  %v4143_v58 = vmin.f32 %v949_v25, 6.0 }
 0x12b   : > { %v4132_v40 = vmul.f32 %v3593_v38, %v4104_v35  ;;  %v951_v39 = vmax.f32 %v850_v53, 0.0  ;;  %v4139_v21 = vsel %vm1155_vm2, %v5903_v55, %v1219_v3  ;;  %v4146_v45 = vmin.f32 %v952_v60, 6.0 }
 0x12c   : > { %5899 = vst [vmem:[#allocation99_spill] sm:$0xff] %v4120_v9  ;;  %5900 = vst [vmem:[#allocation100_spill] sm:$0xff] %v4124_v12  ;;  %v3320_v35 = vpop.f32.mrf.mxu0  ;;  %v2709_v50 = vmax.f32 %v2707_v48, 0.0  ;;  %v2083_v37 = vadd.f32 %v1994_v27, %v1839_v54  ;;  %v2438_v3 = vmul.f32 %v3989_v57, %v3917_v23  ;;  %v5906_v17 = vrot.slane %v3978_v41, 1 }
 0x12d   : > { %5901 = vst [vmem:[#allocation101_spill] sm:$0xff] %v4128_v56  ;;  %5902 = vst [vmem:[#allocation102_spill] sm:$0xff] %v4132_v40  ;;  %v954_v15 = vmax.f32 %v3320_v35, 0.0  ;;  %v4151_v55 = vmin.f32 %v951_v39, 6.0  ;;  %v4157_v18 = vmul.f32 %v3570_v62, %v4146_v45  ;;  %v4166_v27 = vadd.f32 %v3906_v59, %v3901_v29 }
 0x12e   : > { %5904 = vst [vmem:[#allocation103_spill] sm:$0xff] %v4139_v21  ;;  %5905 = vst [vmem:[#allocation104_spill] sm:$0xff] %v4143_v58  ;;  %v860_v53 = vpop.f32.mrf.mxu0  ;;  %v4159_v35 = vmin.f32 %v2709_v50, 6.0  ;;  %v2151_v48 = vadd.f32 %v2119_v20, %v2083_v37  ;;  %v2306_v54 = vsel %vm1155_vm2, %v2304_v52, %v5906_v17  ;;  %v2548_v39 = vrot.slane %v2438_v3, 2 }
 0x12f   : > { %v4153_v19 = vmin.f32 %v954_v15, 6.0  ;;  %v953_v25 = vmax.f32 %v860_v53, 0.0  ;;  %v1052_v53 = vmul.f32 %v3576_v10, %v4146_v45  ;;  %v5911_v23 = vrot.slane %v3998_v31, 2 }
 0x130   : > { %v3323_v60 = vpop.f32.mrf.mxu0  ;;  %v2395_v17 = vadd.f32 %v2306_v54, %v2151_v48 }
 0x131   : > { %v4168_v34 = vmin.f32 %v953_v25, 6.0  ;;  %v956_v15 = vmax.f32 %v3323_v60, 0.0  ;;  %v1053_v20 = vmul.f32 %v3576_v10, %v4153_v19  ;;  %v1104_v41 = vmul.f32 %v3570_v62, %v4153_v19 }
 0x132   : > { %v870_v50 = vpop.f32.mrf.mxu0  ;;  %v1349_v29 = vmul.f32 %v3572_v63, %v4153_v19  ;;  %v2550_v36 = vsel %vm1400_vm3, %v2548_v39, %v5911_v23 }
 0x133   : > { %5907 = vst [vmem:[#allocation105_spill] sm:$0xff] %v4168_v34  ;;  %v1103_v59 = vmul.f32 %v3570_v62, %v4168_v34  ;;  %v4183_v52 = vmul.f32 %v3572_v63, %v4168_v34  ;;  %v4187_v37 = vmul.f32 %v3587_v33, %v4168_v34  ;;  %v4191_v3 = vmul.f32 %v3593_v38, %v4168_v34 }
 0x134   : > { %v4193_v25 = vmin.f32 %v956_v15, 6.0  ;;  %v955_v60 = vmax.f32 %v870_v50, 0.0  ;;  %v3326_v47 = vpop.f32.mrf.mxu0  ;;  %v1231_v56 = vrot.slane %v1104_v41, 1  ;;  %v1476_v46 = vrot.slane %v1349_v29, 2 }
 0x135   : > { %5908 = vst [vmem:[#allocation106_spill] sm:$0xff] %v4187_v37  ;;  %5909 = vst [vmem:[#allocation107_spill] sm:$0xff] %v4191_v3  ;;  %v1229_v30 = vrot.slane %v1103_v59, 1  ;;  %v958_v41 = vmax.f32 %v3326_v47, 0.0  ;;  %v5912_v59 = vrot.slane %v4157_v18, 1 }
 0x136   : > { %5910 = vst [vmem:[#allocation108_spill] sm:$0xff] %v4193_v25  ;;  %v1106_v48 = vmul.f32 %v3570_v62, %v4193_v25  ;;  %v4203_v54 = vmul.f32 %v3572_v63, %v4193_v25  ;;  %v4207_v15 = vmul.f32 %v3587_v33, %v4193_v25  ;;  %v4211_v31 = vmul.f32 %v3593_v38, %v4193_v25  ;;  %v880_v23 = vpop.f32.mrf.mxu0 }
 0x137   : > { %v4214_v50 = vmin.f32 %v955_v60, 6.0  ;;  %v957_v29 = vmax.f32 %v880_v23, 0.0  ;;  %v1230_v40 = vsel %vm1155_vm2, %v5912_v59, %v1229_v30  ;;  %v4221_v24 = vmin.f32 %v958_v41, 6.0 }
 0x138   : > { %v1234_v21 = vrot.slane %v1106_v48, 1  ;;  %v1479_v11 = vrot.slane %v4203_v54, 2  ;;  %v3329_v13 = vpop.f32.mrf.mxu0 }
 0x139   : > { %v4223_v16 = vmin.f32 %v957_v29, 6.0  ;;  %v960_v49 = vmax.f32 %v3329_v13, 0.0  ;;  %v1105_v60 = vmul.f32 %v3570_v62, %v4214_v50  ;;  %v1350_v30 = vmul.f32 %v3572_v63, %v4214_v50 }
 0x13a   : > { %v890_v59 = vpop.f32.mrf.mxu0  ;;  %v1054_v48 = vmul.f32 %v3576_v10, %v4214_v50  ;;  %v2639_v13 = vadd.f32 %v2550_v36, %v2395_v17  ;;  %v1663_v39 = vmul.f32 %v3587_v33, %v4221_v24  ;;  %v1907_v47 = vmul.f32 %v3593_v38, %v4221_v24 }
 0x13b   : > { %v1014_v54 = vmin.f32 %v960_v49, 6.0  ;;  %v1232_v41 = vrot.slane %v1105_v60, 1  ;;  %v1662_v29 = vmul.f32 %v3587_v33, %v4223_v16  ;;  %v1477_v34 = vrot.slane %v1350_v30, 2 }
 0x13c   : > { %v1906_v23 = vmul.f32 %v3593_v38, %v4223_v16  ;;  %v3332_v5 = vpop.f32.mrf.mxu0  ;;  %v4243_v60 = vadd.f32 %v1230_v40, %v1052_v53  ;;  %v1579_v36 = vmul.f32 %v3585_v32, %v4223_v16  ;;  %v1789_v9 = vrot.slane %v1663_v39, 1 }
 0x13d   : > { %v1233_v14 = vsel %vm1155_vm2, %v1231_v56, %v1232_v41  ;;  %v1788_v3 = vrot.slane %v1662_v29, 1  ;;  %v2218_v49 = vmul.f32 %v3599_v44, %v1014_v54  ;;  %v2135_v30 = vmul.f32 %v3597_v43, %v1014_v54 }
 0x13e   : > { %v1298_v37 = vadd.f32 %v1233_v14, %v1053_v20  ;;  %v2032_v17 = vrot.slane %v1906_v23, 2  ;;  %v900_v25 = vpop.f32.mrf.mxu0  ;;  %v1478_v12 = vsel %vm1400_vm3, %v1476_v46, %v1477_v34  ;;  %v2033_v58 = vrot.slane %v1907_v47, 2 }
 0x13f   : > { %v959_v7 = vmax.f32 %v890_v59, 0.0  ;;  %v2344_v56 = vrot.slane %v2218_v49, 1  ;;  %v962_v29 = vmax.f32 %v3332_v5, 0.0  ;;  %v961_v22 = vmax.f32 %v900_v25, 0.0 }
 0x140   : > { %v1543_v8 = vadd.f32 %v1478_v12, %v1298_v37  ;;  %v1790_v40 = vsel %vm1155_vm2, %v1788_v3, %v1789_v9  ;;  %v2462_v14 = vmul.f32 %v3989_v57, %v1014_v54  ;;  %v1235_v20 = vsel %vm1155_vm2, %v1232_v41, %v1234_v21 }
 0x141   : > { %v1013_v53 = vmin.f32 %v959_v7, 6.0  ;;  %v2034_v26 = vsel %vm1400_vm3, %v2032_v17, %v2033_v58  ;;  %v1016_v61 = vmin.f32 %v962_v29, 6.0  ;;  %v1299_v2 = vadd.f32 %v1235_v20, %v1054_v48 }
 0x142   : > { %v1611_v23 = vadd.f32 %v1579_v36, %v1543_v8  ;;  %v1015_v8 = vmin.f32 %v961_v22, 6.0  ;;  %v2588_v3 = vrot.slane %v2462_v14, 2  ;;  %v1480_v59 = vsel %vm1400_vm3, %v1477_v34, %v1479_v11 }
 0x143   : > { %v1664_v46 = vmul.f32 %v3587_v33, %v1013_v53  ;;  %v1908_v39 = vmul.f32 %v3593_v38, %v1013_v53  ;;  %v4256_v12 = vmul.f32 %v3599_v44, %v1013_v53  ;;  %v4259_v5 = vmul.f32 %v3989_v57, %v1013_v53 }
 0x144   : > { %v1855_v37 = vadd.f32 %v1790_v40, %v1611_v23  ;;  %v2220_v7 = vmul.f32 %v3599_v44, %v1016_v61  ;;  %v2464_v21 = vmul.f32 %v3989_v57, %v1016_v61  ;;  %v1544_v49 = vadd.f32 %v1480_v59, %v1299_v2 }
 0x145   : > { %v1791_v25 = vrot.slane %v1664_v46, 1  ;;  %v2035_v47 = vrot.slane %v1908_v39, 2  ;;  %v2342_v54 = vrot.slane %v4256_v12, 1  ;;  %v2586_v41 = vrot.slane %v4259_v5, 2 }
 0x146   : > { %v2099_v48 = vadd.f32 %v2034_v26, %v1855_v37  ;;  %v2347_v36 = vrot.slane %v2220_v7, 1  ;;  %v2591_v17 = vrot.slane %v2464_v21, 2  ;;  %v1580_v29 = vmul.f32 %v3585_v32, %v4221_v24 }
 0x147   : > { %v1792_v40 = vsel %vm1155_vm2, %v1789_v9, %v1791_v25  ;;  %v2036_v61 = vsel %vm1400_vm3, %v2033_v58, %v2035_v47  ;;  %v2219_v22 = vmul.f32 %v3599_v44, %v1015_v8  ;;  %v2463_v14 = vmul.f32 %v3989_v57, %v1015_v8 }
 0x148   : > { %v2706_v11 = vadd.f32 %v4109_v1, %v2639_v13  ;;  %v2167_v26 = vadd.f32 %v2135_v30, %v2099_v48  ;;  %v1612_v34 = vadd.f32 %v1580_v29, %v1544_v49  ;;  %v4275_v2 = vmul.f32 %v3572_v63, %v4146_v45 }
 0x149   : > { %v4279_v53 = vmul.f32 %v3587_v33, %v4214_v50  ;;  %v2136_v9 = vmul.f32 %v3597_v43, %v1015_v8  ;;  %v2345_v20 = vrot.slane %v2219_v22, 1  ;;  %v2589_v58 = vrot.slane %v2463_v14, 2 }
 0x14a   : > { %v4284_v23 = vmul.f32 %v3593_v38, %v4214_v50  ;;  %v1856_v46 = vadd.f32 %v1792_v40, %v1612_v34  ;;  %v2708_v13 = vmax.f32 %v2706_v11, 0.0  ;;  %v1472_v30 = vrot.slane %v4275_v2, 2 }
 0x14b   : > { %v1578_v39 = vmul.f32 %v3585_v32, %v4214_v50  ;;  %v2346_v12 = vsel %vm1155_vm2, %v2344_v56, %v2345_v20  ;;  %v2590_v37 = vsel %vm1400_vm3, %v2588_v3, %v2589_v58  ;;  %v1784_v7 = vrot.slane %v4279_v53, 1  ;;  %v5923_v53 = vld [vmem:[#allocation61_spill] sm:$0xff] }
 0x14c   : > { %v2134_v21 = vmul.f32 %v3597_v43, %v4221_v24  ;;  %v2100_v8 = vadd.f32 %v2036_v61, %v1856_v46  ;;  %v2411_v25 = vadd.f32 %v2346_v12, %v2167_v26  ;;  %v2348_v47 = vsel %vm1155_vm2, %v2345_v20, %v2347_v36 }
 0x14d   : > { %v5913_v59 = vrot.slane %v4183_v52, 2  ;;  %v2592_v49 = vsel %vm1400_vm3, %v2589_v58, %v2591_v17  ;;  %v2028_v3 = vrot.slane %v4284_v23, 2  ;;  %v4305_v29 = vmul.f32 %v3599_v44, %v4221_v24 }
 0x14e   : > { %v2168_v40 = vadd.f32 %v2136_v9, %v2100_v8  ;;  %v2655_v61 = vadd.f32 %v2590_v37, %v2411_v25  ;;  %v4309_v36 = vmul.f32 %v3989_v57, %v4221_v24  ;;  %v1562_v52 = vmul.f32 %v3585_v32, %v3877_v28 }
 0x14f   : > { %v1475_v48 = vsel %vm1400_vm3, %v1472_v30, %v5913_v59  ;;  %v4313_v22 = vmin.f32 %v2708_v13, 6.0  ;;  %v4322_v11 = vmul.f32 %v3587_v33, %v3877_v28  ;;  %v2340_v34 = vrot.slane %v4305_v29, 1  ;;  %v5927_v29 = vld [vmem:[#allocation65_spill] sm:$0xff] }
 0x150   : > { %v1542_v56 = vadd.f32 %v1475_v48, %v4243_v60  ;;  %v5914_v60 = vrot.slane %v4207_v15, 1  ;;  %v2412_v26 = vadd.f32 %v2348_v47, %v2168_v40  ;;  %v2754_v24 = vadd.f32 %v4109_v1, %v2655_v61 }
 0x151   : > { %v1594_v9 = vadd.f32 %v1562_v52, %v4166_v27  ;;  %v5915_v58 = vrot.slane %v4211_v31, 2  ;;  %v1744_v46 = vrot.slane %v4322_v11, 1  ;;  %v4335_v13 = vmul.f32 %v3593_v38, %v3877_v28 }
 0x152   : > { %v1610_v17 = vadd.f32 %v1578_v39, %v1542_v56  ;;  %v1787_v14 = vsel %vm1155_vm2, %v1784_v7, %v5914_v60  ;;  %v2656_v39 = vadd.f32 %v2592_v49, %v2412_v26  ;;  %v2756_v12 = vmax.f32 %v2754_v24, 0.0 }
 0x153   : > { %v2031_v15 = vsel %vm1400_vm3, %v2028_v3, %v5915_v58  ;;  %v2343_v37 = vsel %vm1155_vm2, %v2340_v34, %v2342_v54  ;;  %v2584_v27 = vrot.slane %v4309_v36, 2  ;;  %v5916_v31 = vrot.slane %v3870_v0, 1 }
 0x154   : > { %v1854_v20 = vadd.f32 %v1787_v14, %v1610_v17  ;;  %v1988_v47 = vrot.slane %v4335_v13, 2  ;;  %v4349_v59 = vmul.f32 %v3599_v44, %v3885_v6  ;;  %v2755_v48 = vadd.f32 %v4109_v1, %v2656_v39  ;;  %v5929_v13 = vld [vmem:[#allocation99_spill] sm:$0xff] }
 0x155   : > { %v1747_v25 = vsel %vm1155_vm2, %v1744_v46, %v5916_v31  ;;  %v2118_v54 = vmul.f32 %v3597_v43, %v3885_v6  ;;  %v2193_v56 = vmul.f32 %v3599_v44, %v3919_v4  ;;  %v5917_v40 = vrot.slane %v3874_v51, 2 }
 0x156   : > { %v2098_v8 = vadd.f32 %v2031_v15, %v1854_v20  ;;  %v1838_v49 = vadd.f32 %v1747_v25, %v1594_v9  ;;  %v2300_v52 = vrot.slane %v4349_v59, 1  ;;  %v4364_v17 = vmul.f32 %v3989_v57, %v3885_v6 }
 0x157   : > { %v1991_v61 = vsel %vm1400_vm3, %v1988_v47, %v5917_v40  ;;  %v2757_v60 = vmax.f32 %v2755_v48, 0.0  ;;  %v2302_v26 = vrot.slane %v2193_v56, 1  ;;  %v2437_v24 = vmul.f32 %v3989_v57, %v3919_v4 }
 0x158   : > { %v2166_v0 = vadd.f32 %v2134_v21, %v2098_v8  ;;  %v2082_v14 = vadd.f32 %v1991_v61, %v1838_v49  ;;  %v2758_v9 = vmin.f32 %v2756_v12, 6.0  ;;  %v2587_v51 = vsel %vm1400_vm3, %v2584_v27, %v2586_v41 }
 0x159   : > { %v1101_v20 = vmul.f32 %v3570_v62, %v4151_v55  ;;  %v2759_v58 = vmin.f32 %v2757_v60, 6.0  ;;  %v2303_v39 = vsel %vm1155_vm2, %v2300_v52, %v2302_v26  ;;  %v2546_v8 = vrot.slane %v2437_v24, 2 }
 0x15a   : > { %v2410_v21 = vadd.f32 %v2343_v37, %v2166_v0  ;;  %v2150_v15 = vadd.f32 %v2118_v54, %v2082_v14  ;;  %v2544_v4 = vrot.slane %v4364_v17, 2  ;;  %v1346_v5 = vmul.f32 %v3572_v63, %v4151_v55 }
 0x15b   : > { %v1226_v12 = vrot.slane %v1101_v20, 1  ;;  %3216 = vmatprep.subr.msk.mxu1 %vm2767_vm4, %v2759_v58  ;;  %v1051_v37 = vmul.f32 %v3576_v10, %v4151_v55  ;;  %v1659_v25 = vmul.f32 %v3587_v33, %v4153_v19  ;;  %v1903_v48 = vmul.f32 %v3593_v38, %v4153_v19 }
 0x15c   : > { %v2654_v31 = vadd.f32 %v2587_v51, %v2410_v21  ;;  %v2394_v41 = vadd.f32 %v2303_v39, %v2150_v15  ;;  %3217 = vmatpush3.xpose.msk.msra.mxu1 %vm2767_vm4, %v4159_v35  ;;  %v2547_v54 = vsel %vm1400_vm3, %v2544_v4, %v2546_v8  ;;  %v5918_v56 = vrot.slane %v4157_v18, 1  ;;  %v5920_v8 = vld [vmem:[#allocation57_spill] sm:$0xff] }
 0x15d   : > { %v1471_v40 = vrot.slane %v1346_v5, 2  ;;  %3218 = vmatprep.subr.msk.mxu1 %vm2767_vm4, %v2758_v9  ;;  %v1577_v14 = vmul.f32 %v3585_v32, %v4153_v19  ;;  %v1783_v26 = vrot.slane %v1659_v25, 1  ;;  %v2215_v21 = vmul.f32 %v3599_v44, %v4223_v16 }
 0x15e   : > { %v2749_v49 = vadd.f32 %v4109_v1, %v2654_v31  ;;  %v1228_v0 = vsel %vm1155_vm2, %v1226_v12, %v5918_v56  ;;  %v2638_v61 = vadd.f32 %v2547_v54, %v2394_v41  ;;  %v2459_v18 = vmul.f32 %v3989_v57, %v4223_v16 }
 0x15f   : > { %v1296_v60 = vadd.f32 %v1228_v0, %v1051_v37  ;;  %v1473_v24 = vsel %vm1400_vm3, %v1471_v40, %v1472_v30  ;;  %v1785_v20 = vsel %vm1155_vm2, %v1783_v26, %v1784_v7  ;;  %v2027_v58 = vrot.slane %v1903_v48, 2  ;;  %v5922_v37 = vld [vmem:[#allocation60_spill] sm:$0xff]  ;;  %v5924_v48 = vld [vmem:[#allocation54_spill] sm:$0xff] }
 0x160   : > { %v2751_v35 = vmax.f32 %v2749_v49, 0.0  ;;  %v2701_v51 = vadd.f32 %v4109_v1, %v2638_v61  ;;  %3219 = vmatpush3.xpose.msk.msra.mxu1 %vm2767_vm4, %v4313_v22  ;;  %v2339_v15 = vrot.slane %v2215_v21, 1  ;;  %v2583_v30 = vrot.slane %v2459_v18, 2  ;;  %v5925_v40 = vld [vmem:[#allocation56_spill] sm:$0xff] }
 0x161   : > { %v1541_v9 = vadd.f32 %v1473_v24, %v1296_v60  ;;  %v5919_v39 = vrot.slane %v3803_v42, 1  ;;  %v5921_v31 = vrot.slane %v5920_v8, 1  ;;  %v1431_v49 = vrot.slane %v5923_v53, 2 }
 0x162   : > { %v2753_v2 = vmin.f32 %v2751_v35, 6.0  ;;  %v2703_v5 = vmax.f32 %v2701_v51, 0.0  ;;  %v2029_v7 = vsel %vm1400_vm3, %v2027_v58, %v2028_v3  ;;  %v2133_v22 = vmul.f32 %v3597_v43, %v4223_v16 }
 0x163   : > { %v1188_v12 = vsel %vm1155_vm2, %v5921_v31, %v5919_v39  ;;  %v1609_v41 = vadd.f32 %v1577_v14, %v1541_v9  ;;  %v2341_v42 = vsel %vm1155_vm2, %v2339_v15, %v2340_v34  ;;  %v1635_v54 = vmul.f32 %v3587_v33, %v5924_v48 }
 0x164   : > { %v1280_v25 = vadd.f32 %v1188_v12, %v5922_v37  ;;  %3220 = vmatprep.subr.msk.mxu1 %vm2767_vm4, %v2753_v2  ;;  %v2705_v56 = vmin.f32 %v2703_v5, 6.0  ;;  %v5926_v61 = vrot.slane %v5925_v40, 2  ;;  %v1879_v23 = vmul.f32 %v3593_v38, %v5924_v48  ;;  %v5933_v40 = vld [vmem:[#allocation108_spill] sm:$0xff] }
 0x165   : > { %v1853_v0 = vadd.f32 %v1785_v20, %v1609_v41  ;;  %v1561_v16 = vmul.f32 %v3585_v32, %v5924_v48  ;;  %v1743_v14 = vrot.slane %v1635_v54, 1  ;;  %v2191_v34 = vmul.f32 %v3599_v44, %v5927_v29  ;;  %v5928_v20 = vld [vmem:[#allocation104_spill] sm:$0xff] }
 0x166   : > { %v1433_v60 = vsel %vm1400_vm3, %v1431_v49, %v5926_v61  ;;  %3221 = vmatpush3.xpose.msk.msra.mxu1 %vm2767_vm4, %v2705_v56  ;;  %v2585_v35 = vsel %vm1400_vm3, %v2583_v30, %v2584_v27  ;;  %v1987_v24 = vrot.slane %v1879_v23, 2  ;;  %v2435_v21 = vmul.f32 %v3989_v57, %v5927_v29 }
 0x167   : > { %v1525_v3 = vadd.f32 %v1433_v60, %v1280_v25  ;;  %v2097_v26 = vadd.f32 %v2029_v7, %v1853_v0  ;;  %v1745_v51 = vsel %vm1155_vm2, %v1743_v14, %v1744_v46  ;;  %v2299_v9 = vrot.slane %v2191_v34, 1  ;;  %v5931_v7 = vld [vmem:[#allocation100_spill] sm:$0xff] }
 0x168   : > { %v4451_v58 = vmul.f32 %v3570_v62, %v5928_v20  ;;  %v2117_v36 = vmul.f32 %v3597_v43, %v5927_v29  ;;  %v2543_v15 = vrot.slane %v2435_v21, 2  ;;  %v4457_v27 = vmul.f32 %v3572_v63, %v5928_v20 }
 0x169   : > { %v1593_v18 = vadd.f32 %v1561_v16, %v1525_v3  ;;  %v2165_v2 = vadd.f32 %v2133_v22, %v2097_v26  ;;  %v1989_v11 = vsel %vm1400_vm3, %v1987_v24, %v1988_v47  ;;  %v1050_v46 = vmul.f32 %v3576_v10, %v5928_v20  ;;  %v5934_v16 = vld [vmem:[#allocation106_spill] sm:$0xff] }
 0x16a   : > { %v1222_v39 = vrot.slane %v4451_v58, 1  ;;  %v2301_v31 = vsel %vm1155_vm2, %v2299_v9, %v2300_v52  ;;  %v1467_v12 = vrot.slane %v4457_v27, 2  ;;  %v4471_v5 = vmul.f32 %v3587_v33, %v4146_v45 }
 0x16b   : > { %v1837_v30 = vadd.f32 %v1745_v51, %v1593_v18  ;;  %v2409_v8 = vadd.f32 %v2341_v42, %v2165_v2  ;;  %v5930_v37 = vrot.slane %v5929_v13, 1  ;;  %v1576_v25 = vmul.f32 %v3585_v32, %v4146_v45 }
 0x16c   : > { %v4482_v59 = vmul.f32 %v3593_v38, %v4146_v45  ;;  %v2545_v53 = vsel %vm1400_vm3, %v2543_v15, %v2544_v4  ;;  %v5932_v22 = vrot.slane %v5931_v7, 2  ;;  %v1779_v56 = vrot.slane %v4471_v5, 1  ;;  %v5938_v15 = vld [vmem:[#allocation55_spill] sm:$0xff] }
 0x16d   : > { %v2081_v41 = vadd.f32 %v1989_v11, %v1837_v30  ;;  %v1225_v47 = vsel %vm1155_vm2, %v1222_v39, %v5930_v37  ;;  %v2653_v52 = vadd.f32 %v2585_v35, %v2409_v8  ;;  %v4495_v0 = vmul.f32 %v3599_v44, %v4214_v50  ;;  %v5939_v11 = vld [vmem:[#allocation58_spill] sm:$0xff] }
 0x16e   : > { %v1295_v49 = vadd.f32 %v1225_v47, %v1050_v46  ;;  %v1470_v42 = vsel %vm1400_vm3, %v1467_v12, %v5932_v22  ;;  %v2214_v61 = vmul.f32 %v3599_v44, %v5933_v40  ;;  %v2132_v60 = vmul.f32 %v3597_v43, %v4214_v50 }
 0x16f   : > { %v2149_v54 = vadd.f32 %v2117_v36, %v2081_v41  ;;  %v2748_v17 = vadd.f32 %v4109_v1, %v2653_v52  ;;  %v4504_v23 = vmul.f32 %v3989_v57, %v4214_v50  ;;  %v5935_v14 = vrot.slane %v5934_v16, 1  ;;  %v5936_v50 = vld [vmem:[#allocation107_spill] sm:$0xff] }
 0x170   : > { %v1540_v4 = vadd.f32 %v1470_v42, %v1295_v49  ;;  %v2023_v26 = vrot.slane %v4482_v59, 2  ;;  %v2335_v35 = vrot.slane %v4495_v0, 1  ;;  %v2337_v18 = vrot.slane %v2214_v61, 1  ;;  %v5942_v49 = vld [vmem:[#allocation51_spill] sm:$0xff]  ;;  %v5943_v42 = vld [vmem:[#allocation53_spill] sm:$0xff] }
 0x171   : > { %v2393_v3 = vadd.f32 %v2301_v31, %v2149_v54  ;;  %v1782_v34 = vsel %vm1155_vm2, %v1779_v56, %v5935_v14  ;;  %v2750_v24 = vmax.f32 %v2748_v17, 0.0  ;;  %v2458_v51 = vmul.f32 %v3989_v57, %v5933_v40 }
 0x172   : > { %v1608_v21 = vadd.f32 %v1576_v25, %v1540_v4  ;;  %v5937_v2 = vrot.slane %v5936_v50, 2  ;;  %v1182_v30 = vrot.slane %v5938_v15, 1  ;;  %v1427_v46 = vrot.slane %v5939_v11, 2  ;;  %v5940_v25 = vld [vmem:[#allocation45_spill] sm:$0xff]  ;;  %v5944_v4 = vld [vmem:[#allocation46_spill] sm:$0xff] }
 0x173   : > { %v2637_v9 = vadd.f32 %v2545_v53, %v2393_v3  ;;  %v2752_v8 = vmin.f32 %v2750_v24, 6.0  ;;  %v2338_v41 = vsel %vm1155_vm2, %v2335_v35, %v2337_v18  ;;  %v2579_v13 = vrot.slane %v4504_v23, 2 }
 0x174   : > { %v2026_v36 = vsel %vm1400_vm3, %v2023_v26, %v5937_v2  ;;  %v1852_v31 = vadd.f32 %v1782_v34, %v1608_v21  ;;  %v2581_v47 = vrot.slane %v2458_v51, 2  ;;  %v5941_v52 = vrot.slane %v5940_v25, 1  ;;  %v5946_v51 = vld [vmem:[#allocation64_spill] sm:$0xff]  ;;  %v5947_v2 = vld [vmem:[#allocation62_spill] sm:$0xff] }
 0x175   : > { %v2700_v37 = vadd.f32 %v4109_v1, %v2637_v9  ;;  %v4534_v7 = vmul.f32 %v3587_v33, %v5942_v49  ;;  %3222 = vmatprep.subr.msk.mxu1 %vm2767_vm4, %v2752_v8  ;;  %v1560_v40 = vmul.f32 %v3585_v32, %v5942_v49  ;;  %v4542_v61 = vmul.f32 %v3593_v38, %v5942_v49 }
 0x176   : > { %v1185_v53 = vsel %vm1155_vm2, %v1182_v30, %v5941_v52  ;;  %v2096_v22 = vadd.f32 %v2026_v36, %v1852_v31  ;;  %v5945_v3 = vrot.slane %v5944_v4, 2  ;;  %v4552_v34 = vmul.f32 %v3599_v44, %v3877_v28  ;;  %v5951_v4 = vld [vmem:[#allocation93_spill] sm:$0xff] }
 0x177   : > { %v1279_v54 = vadd.f32 %v1185_v53, %v5943_v42  ;;  %v2702_v17 = vmax.f32 %v2700_v37, 0.0  ;;  %v1739_v14 = vrot.slane %v4534_v7, 1  ;;  %v1983_v18 = vrot.slane %v4542_v61, 2  ;;  %v5960_v61 = vld [vmem:[#allocation95_spill] sm:$0xff] }
 0x178   : > { %v1430_v16 = vsel %vm1400_vm3, %v1427_v46, %v5945_v3  ;;  %v2164_v24 = vadd.f32 %v2132_v60, %v2096_v22  ;;  %v2190_v9 = vmul.f32 %v3599_v44, %v5946_v51  ;;  %v5948_v36 = vrot.slane %v5947_v2, 1  ;;  %v5949_v22 = vld [vmem:[#allocation63_spill] sm:$0xff] }
 0x179   : > { %v1524_v21 = vadd.f32 %v1430_v16, %v1279_v54  ;;  %v2704_v50 = vmin.f32 %v2702_v17, 6.0  ;;  %v2295_v31 = vrot.slane %v4552_v34, 1  ;;  %v4565_v37 = vmul.f32 %v3989_v57, %v3877_v28 }
 0x17a   : > { %v1742_v8 = vsel %vm1155_vm2, %v1739_v14, %v5948_v36  ;;  %v2408_v60 = vadd.f32 %v2338_v41, %v2164_v24  ;;  %v2582_v25 = vsel %vm1400_vm3, %v2579_v13, %v2581_v47  ;;  %v2116_v53 = vmul.f32 %v3597_v43, %v3877_v28 }
 0x17b   : > { %v1592_v52 = vadd.f32 %v1560_v40, %v1524_v21  ;;  %3223 = vmatpush3.xpose.msk.msra.mxu1 %vm2767_vm4, %v2704_v50  ;;  %v5950_v42 = vrot.slane %v5949_v22, 2  ;;  %v2297_v17 = vrot.slane %v2190_v9, 1  ;;  %v2434_v41 = vmul.f32 %v3989_v57, %v5946_v51 }
 0x17c   : > { %v1098_v3 = vmul.f32 %v3570_v62, %v5951_v4  ;;  %v2652_v47 = vadd.f32 %v2582_v25, %v2408_v60  ;;  %v2539_v16 = vrot.slane %v4565_v37, 2  ;;  %v1343_v28 = vmul.f32 %v3572_v63, %v5951_v4 }
 0x17d   : > { %v1986_v54 = vsel %vm1400_vm3, %v1983_v18, %v5950_v42  ;;  %v1836_v40 = vadd.f32 %v1742_v8, %v1592_v52  ;;  %v2298_v24 = vsel %vm1155_vm2, %v2295_v31, %v2297_v17  ;;  %v1049_v21 = vmul.f32 %v3576_v10, %v5951_v4 }
 0x17e   : > { %v1221_v9 = vrot.slane %v1098_v3, 1  ;;  %v1656_v51 = vmul.f32 %v3587_v33, %v4151_v55  ;;  %v2743_v50 = vadd.f32 %v4109_v1, %v2652_v47  ;;  %v2541_v36 = vrot.slane %v2434_v41, 2 }
 0x17f   : > { %v2080_v2 = vadd.f32 %v1986_v54, %v1836_v40  ;;  %v1900_v8 = vmul.f32 %v3593_v38, %v4151_v55  ;;  %v1466_v25 = vrot.slane %v1343_v28, 2  ;;  %v1575_v52 = vmul.f32 %v3585_v32, %v4151_v55 }
 0x180   : > { %v1223_v60 = vsel %vm1155_vm2, %v1221_v9, %v1222_v39  ;;  %v1778_v22 = vrot.slane %v1656_v51, 1  ;;  %v2745_v42 = vmax.f32 %v2743_v50, 0.0  ;;  %v2542_v3 = vsel %vm1400_vm3, %v2539_v16, %v2541_v36 }
 0x181   : > { %v2148_v17 = vadd.f32 %v2116_v53, %v2080_v2  ;;  %v1294_v54 = vadd.f32 %v1223_v60, %v1049_v21  ;;  %v1468_v41 = vsel %vm1400_vm3, %v1466_v25, %v1467_v12  ;;  %v2022_v47 = vrot.slane %v1900_v8, 2  ;;  %v5952_v53 = vld [vmem:[#allocation37_spill] sm:$0xff]  ;;  %v5954_v2 = vld [vmem:[#allocation44_spill] sm:$0xff] }
 0x182   : > { %v2212_v58 = vmul.f32 %v3599_v44, %v4153_v19  ;;  %v2456_v39 = vmul.f32 %v3989_v57, %v4153_v19  ;;  %v2747_v40 = vmin.f32 %v2745_v42, 6.0  ;;  %v5953_v51 = vrot.slane %v5952_v53, 1  ;;  %v5957_v25 = vld [vmem:[#allocation52_spill] sm:$0xff] }
 0x183   : > { %v2392_v28 = vadd.f32 %v2298_v24, %v2148_v17  ;;  %v1539_v9 = vadd.f32 %v1468_v41, %v1294_v54  ;;  %v1780_v27 = vsel %vm1155_vm2, %v1778_v22, %v1779_v56  ;;  %v2024_v12 = vsel %vm1400_vm3, %v2022_v47, %v2023_v26 }
 0x184   : > { %v1183_v21 = vsel %vm1155_vm2, %v5953_v51, %v1182_v30  ;;  %v2131_v50 = vmul.f32 %v3597_v43, %v4153_v19  ;;  %3224 = vmatprep.subr.msk.mxu1 %vm2767_vm4, %v2747_v40  ;;  %v2334_v8 = vrot.slane %v2212_v58, 1  ;;  %v5955_v30 = vld [vmem:[#allocation39_spill] sm:$0xff]  ;;  %v2578_v60 = vrot.slane %v2456_v39, 2  ;;  %v5958_v40 = vld [vmem:[#allocation90_spill] sm:$0xff] }
 0x185   : > { %v1278_v24 = vadd.f32 %v1183_v21, %v5954_v2  ;;  %v2636_v15 = vadd.f32 %v2542_v3, %v2392_v28  ;;  %v1607_v36 = vadd.f32 %v1575_v52, %v1539_v9  ;;  %v5956_v5 = vrot.slane %v5955_v30, 2 }
 0x186   : > { %v1559_v26 = vmul.f32 %v3585_v32, %v5957_v25  ;;  %v1632_v19 = vmul.f32 %v3587_v33, %v5957_v25  ;;  %v2336_v52 = vsel %vm1155_vm2, %v2334_v8, %v2335_v35  ;;  %v1876_v11 = vmul.f32 %v3593_v38, %v5957_v25 }
 0x187   : > { %v1428_v56 = vsel %vm1400_vm3, %v5956_v5, %v1427_v46  ;;  %v2695_v22 = vadd.f32 %v4109_v1, %v2636_v15  ;;  %v1851_v42 = vadd.f32 %v1780_v27, %v1607_v36  ;;  %v2188_v3 = vmul.f32 %v3599_v44, %v5924_v48 }
 0x188   : > { %v1523_v59 = vadd.f32 %v1428_v56, %v1278_v24  ;;  %v1738_v46 = vrot.slane %v1632_v19, 1  ;;  %v2432_v54 = vmul.f32 %v3989_v57, %v5924_v48  ;;  %v2580_v58 = vsel %vm1400_vm3, %v2578_v60, %v2579_v13 }
 0x189   : > { %v2697_v41 = vmax.f32 %v2695_v22, 0.0  ;;  %v2095_v47 = vadd.f32 %v2024_v12, %v1851_v42  ;;  %v1982_v0 = vrot.slane %v1876_v11, 2  ;;  %v2115_v39 = vmul.f32 %v3597_v43, %v5924_v48 }
 0x18a   : > { %v1591_v17 = vadd.f32 %v1559_v26, %v1523_v59  ;;  %v1740_v35 = vsel %vm1155_vm2, %v1738_v46, %v1739_v14  ;;  %v1048_v28 = vmul.f32 %v3576_v10, %v5958_v40  ;;  %v4656_v9 = vmul.f32 %v3572_v63, %v5958_v40  ;;  %v5959_v14 = vld [vmem:[#allocation103_spill] sm:$0xff]  ;;  %v5962_v26 = vld [vmem:[#allocation105_spill] sm:$0xff] }
 0x18b   : > { %v2699_v53 = vmin.f32 %v2697_v41, 6.0  ;;  %v2163_v51 = vadd.f32 %v2131_v50, %v2095_v47  ;;  %v2294_v21 = vrot.slane %v2188_v3, 1  ;;  %v1984_v13 = vsel %vm1400_vm3, %v1982_v0, %v1983_v18  ;;  %v5963_v46 = vld [vmem:[#allocation101_spill] sm:$0xff] }
 0x18c   : > { %v1835_v23 = vadd.f32 %v1740_v35, %v1591_v17  ;;  %v2538_v7 = vrot.slane %v2432_v54, 2  ;;  %v1293_v27 = vadd.f32 %v5959_v14, %v1048_v28  ;;  %v1462_v48 = vrot.slane %v4656_v9, 2  ;;  %v5965_v35 = vld [vmem:[#allocation102_spill] sm:$0xff] }
 0x18d   : > { %3225 = vmatpush3.xpose.msk.msra.mxu1 %vm2767_vm4, %v2699_v53  ;;  %v2407_v12 = vadd.f32 %v2336_v52, %v2163_v51  ;;  %v2296_v24 = vsel %vm1155_vm2, %v2294_v21, %v2295_v31  ;;  %v4669_v50 = vmul.f32 %v3587_v33, %v5928_v20  ;;  %v5961_v15 = vrot.slane %v5960_v61, 2  ;;  %v5967_v51 = vld [vmem:[#allocation40_spill] sm:$0xff] }
 0x18e   : > { %v2079_v2 = vadd.f32 %v1984_v13, %v1835_v23  ;;  %v1574_v36 = vmul.f32 %v3585_v32, %v5928_v20  ;;  %v4680_v8 = vmul.f32 %v3593_v38, %v5928_v20  ;;  %v4684_v34 = vmul.f32 %v3599_v44, %v4146_v45  ;;  %v5968_v23 = vld [vmem:[#allocation50_spill] sm:$0xff]  ;;  %v5969_v13 = vld [vmem:[#allocation27_spill] sm:$0xff] }
 0x18f   : > { %v1465_v18 = vsel %vm1400_vm3, %v1462_v48, %v5961_v15  ;;  %v2651_v31 = vadd.f32 %v2580_v58, %v2407_v12  ;;  %v1774_v56 = vrot.slane %v4669_v50, 1  ;;  %v2540_v60 = vsel %vm1400_vm3, %v2538_v7, %v2539_v16  ;;  %v5970_v12 = vld [vmem:[#allocation49_spill] sm:$0xff] }
 0x190   : > { %v2147_v30 = vadd.f32 %v2115_v39, %v2079_v2  ;;  %v1538_v5 = vadd.f32 %v1465_v18, %v1293_v27  ;;  %v2018_v59 = vrot.slane %v4680_v8, 2  ;;  %v2211_v19 = vmul.f32 %v3599_v44, %v5962_v26 }
 0x191   : > { %v4695_v22 = vmul.f32 %v3989_v57, %v4146_v45  ;;  %v2742_v42 = vadd.f32 %v4109_v1, %v2651_v31  ;;  %v2130_v17 = vmul.f32 %v3597_v43, %v4146_v45  ;;  %v5964_v37 = vrot.slane %v5963_v46, 1 }
 0x192   : > { %v2391_v52 = vadd.f32 %v2296_v24, %v2147_v30  ;;  %v1606_v11 = vadd.f32 %v1574_v36, %v1538_v5  ;;  %v2330_v3 = vrot.slane %v4684_v34, 1  ;;  %v2332_v54 = vrot.slane %v2211_v19, 1 }
 0x193   : > { %v1777_v16 = vsel %vm1155_vm2, %v1774_v56, %v5964_v37  ;;  %v2455_v41 = vmul.f32 %v3989_v57, %v5962_v26  ;;  %v2744_v47 = vmax.f32 %v2742_v42, 0.0  ;;  %v5966_v39 = vrot.slane %v5965_v35, 2 }
 0x194   : > { %v2635_v58 = vadd.f32 %v2540_v60, %v2391_v52  ;;  %v1850_v0 = vadd.f32 %v1777_v16, %v1606_v11  ;;  %v2574_v28 = vrot.slane %v4695_v22, 2  ;;  %v1277_v21 = vadd.f32 %v5968_v23, %v5967_v51  ;;  %v5971_v60 = vld [vmem:[#allocation38_spill] sm:$0xff]  ;;  %v5973_v52 = vld [vmem:[#allocation59_spill] sm:$0xff] }
 0x195   : > { %v2021_v45 = vsel %vm1400_vm3, %v2018_v59, %v5966_v39  ;;  %v2576_v53 = vrot.slane %v2455_v41, 2  ;;  %v4718_v7 = vmul.f32 %v3572_v63, %v5969_v13  ;;  %v2746_v57 = vmin.f32 %v2744_v47, 6.0  ;;  %v5974_v47 = vld [vmem:[#allocation47_spill] sm:$0xff] }
 0x196   : > { %v2694_v14 = vadd.f32 %v4109_v1, %v2635_v58  ;;  %v2094_v27 = vadd.f32 %v2021_v45, %v1850_v0  ;;  %v4723_v2 = vmul.f32 %v3587_v33, %v5970_v12  ;;  %v2333_v24 = vsel %vm1155_vm2, %v2330_v3, %v2332_v54 }
 0x197   : > { %v1422_v61 = vrot.slane %v4718_v7, 2  ;;  %v1558_v15 = vmul.f32 %v3585_v32, %v5970_v12  ;;  %v4733_v18 = vmul.f32 %v3593_v38, %v5970_v12  ;;  %3226 = vmatprep.subr.msk.mxu1 %vm2767_vm4, %v2746_v57  ;;  %v4739_v5 = vmul.f32 %v3599_v44, %v5942_v49  ;;  %v5976_v57 = vld [vmem:[#allocation48_spill] sm:$0xff] }
 0x198   : > { %v2696_v36 = vmax.f32 %v2694_v14, 0.0  ;;  %v2162_v31 = vadd.f32 %v2130_v17, %v2094_v27  ;;  %v1734_v30 = vrot.slane %v4723_v2, 1  ;;  %v5972_v26 = vrot.slane %v5971_v60, 2  ;;  %v4752_v17 = vld [vmem:[%s5657_s2 + $0x8] ss:$0 sm:$0xff] }
 0x199   : > { %v1978_v42 = vrot.slane %v4733_v18, 2  ;;  %v2187_v11 = vmul.f32 %v3599_v44, %v5973_v52  ;;  %v4756_v46 = vmul.f32 %v4752_v17, %v5942_v49  ;;  %v2577_v54 = vsel %vm1400_vm3, %v2574_v28, %v2576_v53 }
 0x19a   : > { %v1425_v19 = vsel %vm1400_vm3, %v1422_v61, %v5972_v26  ;;  %v2698_v37 = vmin.f32 %v2696_v36, 6.0  ;;  %v2406_v16 = vadd.f32 %v2333_v24, %v2162_v31  ;;  %v5975_v58 = vrot.slane %v5974_v47, 1 }
 0x19b   : > { %v1522_v41 = vadd.f32 %v1425_v19, %v1277_v21  ;;  %v2114_v35 = vmul.f32 %v3597_v43, %v5942_v49  ;;  %v2292_v39 = vrot.slane %v2187_v11, 1  ;;  %v2431_v45 = vmul.f32 %v4752_v17, %v5973_v52  ;;  %v5978_v49 = vld [vmem:[#allocation92_spill] sm:$0xff] }
 0x19c   : > { %v1737_v0 = vsel %vm1155_vm2, %v1734_v30, %v5975_v58  ;;  %3227 = vmatpush3.xpose.msk.msra.mxu1 %vm2767_vm4, %v2698_v37  ;;  %v2650_v51 = vadd.f32 %v2577_v54, %v2406_v16  ;;  %v5977_v53 = vrot.slane %v5976_v57, 2  ;;  %v2290_v14 = vrot.slane %v4739_v5, 1  ;;  %v5979_v58 = vld [vmem:[#allocation91_spill] sm:$0xff] }
 0x19d   : > { %v1590_v23 = vadd.f32 %v1558_v15, %v1522_v41  ;;  %v2534_v27 = vrot.slane %v4756_v46, 2  ;;  %v2536_v24 = vrot.slane %v2431_v45, 2  ;;  %v1095_v36 = vmul.f32 %v3570_v62, %v5978_v49 }
 0x19e   : > { %v1981_v21 = vsel %vm1400_vm3, %v1978_v42, %v5977_v53  ;;  %v1340_v31 = vmul.f32 %v3572_v63, %v5978_v49  ;;  %v2737_v60 = vadd.f32 %v4109_v1, %v2650_v51  ;;  %v1047_v26 = vmul.f32 %v3576_v10, %v5978_v49 }
 0x19f   : > { %v1834_v15 = vadd.f32 %v1737_v0, %v1590_v23  ;;  %v1653_v19 = vmul.f32 %v3587_v33, %v5951_v4  ;;  %v2293_v52 = vsel %vm1155_vm2, %v2290_v14, %v2292_v39  ;;  %v1216_v11 = vrot.slane %v1095_v36, 1 }
 0x1a0   : > { %v1461_v37 = vrot.slane %v1340_v31, 2  ;;  %v1897_v16 = vmul.f32 %v3593_v38, %v5951_v4  ;;  %v2739_v54 = vmax.f32 %v2737_v60, 0.0  ;;  %v2537_v1 = vsel %vm1400_vm3, %v2534_v27, %v2536_v24 }
 0x1a1   : > { %v2078_v41 = vadd.f32 %v1981_v21, %v1834_v15  ;;  %v1573_v47 = vmul.f32 %v3585_v32, %v5951_v4  ;;  %v5980_v0 = vrot.slane %v5979_v58, 1  ;;  %v1773_v51 = vrot.slane %v1653_v19, 1 }
 0x1a2   : > { %v2129_v39 = vmul.f32 %v3597_v43, %v4151_v55  ;;  %v2209_v23 = vmul.f32 %v3599_v44, %v4151_v55  ;;  %v2741_v57 = vmin.f32 %v2739_v54, 6.0  ;;  %v1463_v24 = vsel %vm1400_vm3, %v1461_v37, %v1462_v48  ;;  %v5981_v54 = vld [vmem:[#allocation33_spill] sm:$0xff] }
 0x1a3   : > { %v1218_v45 = vsel %vm1155_vm2, %v1216_v11, %v5980_v0  ;;  %v2146_v53 = vadd.f32 %v2114_v35, %v2078_v41  ;;  %v1775_v36 = vsel %vm1155_vm2, %v1773_v51, %v1774_v56  ;;  %v2017_v31 = vrot.slane %v1897_v16, 2 }
 0x1a4   : > { %v1292_v21 = vadd.f32 %v1218_v45, %v1047_v26  ;;  %v2329_v60 = vrot.slane %v2209_v23, 1  ;;  %v2453_v15 = vmul.f32 %v4752_v17, %v4151_v55  ;;  %3228 = vmatprep.subr.msk.mxu1 %vm2767_vm4, %v2741_v57  ;;  %v1071_v35 = vmul.f32 %v3570_v62, %v5981_v54  ;;  %v5982_v26 = vld [vmem:[#allocation34_spill] sm:$0xff]  ;;  %v5983_v45 = vld [vmem:[#allocation36_spill] sm:$0xff] }
 0x1a5   : > { %v2390_v19 = vadd.f32 %v2293_v52, %v2146_v53  ;;  %v1316_v9 = vmul.f32 %v3572_v63, %v5981_v54  ;;  %v2019_v48 = vsel %vm1400_vm3, %v2017_v31, %v2018_v59  ;;  %v1031_v56 = vmul.f32 %v3576_v10, %v5981_v54 }
 0x1a6   : > { %v1537_v11 = vadd.f32 %v1463_v24, %v1292_v21  ;;  %v2573_v50 = vrot.slane %v2453_v15, 2  ;;  %v1629_v55 = vmul.f32 %v3587_v33, %v5982_v26  ;;  %v1176_v16 = vrot.slane %v1071_v35, 1 }
 0x1a7   : > { %v2634_v37 = vadd.f32 %v2537_v1, %v2390_v19  ;;  %v1421_v41 = vrot.slane %v1316_v9, 2  ;;  %v2331_v58 = vsel %vm1155_vm2, %v2329_v60, %v2330_v3  ;;  %v1557_v59 = vmul.f32 %v3585_v32, %v5982_v26  ;;  %v4837_v1 = vld [vmem:[%s5658_s3] ss:$0 sm:$0xff]  ;;  %v5985_v19 = vld [vmem:[#allocation89_spill] sm:$0xff] }
 0x1a8   : > { %v1605_v52 = vadd.f32 %v1573_v47, %v1537_v11  ;;  %v2575_v8 = vsel %vm1400_vm3, %v2573_v50, %v2574_v28  ;;  %v1873_v0 = vmul.f32 %v3593_v38, %v5982_v26  ;;  %v5984_v3 = vrot.slane %v5983_v45, 1 }
 0x1a9   : > { %v2689_v47 = vadd.f32 %v4837_v1, %v2634_v37  ;;  %v1733_v51 = vrot.slane %v1629_v55, 1  ;;  %v1423_v23 = vsel %vm1400_vm3, %v1421_v41, %v1422_v61  ;;  %v2113_v57 = vmul.f32 %v3597_v43, %v5957_v25 }
 0x1aa   : > { %v1849_v34 = vadd.f32 %v1775_v36, %v1605_v52  ;;  %v1178_v22 = vsel %vm1155_vm2, %v1176_v16, %v5984_v3  ;;  %v2185_v53 = vmul.f32 %v3599_v44, %v5957_v25  ;;  %v2429_v31 = vmul.f32 %v4752_v17, %v5957_v25 }
 0x1ab   : > { %v1276_v28 = vadd.f32 %v1178_v22, %v1031_v56  ;;  %v2691_v21 = vmax.f32 %v2689_v47, 0.0  ;;  %v1735_v36 = vsel %vm1155_vm2, %v1733_v51, %v1734_v30  ;;  %v1977_v15 = vrot.slane %v1873_v0, 2  ;;  %v5988_v0 = vld [vmem:[#allocation85_spill] sm:$0xff]  ;;  %v5990_v51 = vld [vmem:[#allocation98_spill] sm:$0xff] }
 0x1ac   : > { %v2093_v24 = vadd.f32 %v2019_v48, %v1849_v34  ;;  %v2289_v7 = vrot.slane %v2185_v53, 1  ;;  %v4857_v61 = vmul.f32 %v3570_v62, %v5985_v19  ;;  %v2533_v9 = vrot.slane %v2429_v31, 2 }
 0x1ad   : > { %v1521_v60 = vadd.f32 %v1423_v23, %v1276_v28  ;;  %v2693_v11 = vmin.f32 %v2691_v21, 6.0  ;;  %v4861_v48 = vmul.f32 %v3572_v63, %v5985_v19  ;;  %v1979_v30 = vsel %vm1400_vm3, %v1977_v15, %v1978_v42  ;;  %v5986_v42 = vld [vmem:[#allocation84_spill] sm:$0xff] }
 0x1ae   : > { %v2161_v35 = vadd.f32 %v2129_v39, %v2093_v24  ;;  %v1046_v25 = vmul.f32 %v3576_v10, %v5985_v19  ;;  %v1212_v50 = vrot.slane %v4857_v61, 1  ;;  %v2291_v39 = vsel %vm1155_vm2, %v2289_v7, %v2290_v14  ;;  %v5991_v21 = vld [vmem:[#allocation96_spill] sm:$0xff] }
 0x1af   : > { %v1589_v2 = vadd.f32 %v1557_v59, %v1521_v60  ;;  %3229 = vmatpush3.xpose.msk.msra.mxu1 %vm2767_vm4, %v2693_v11  ;;  %v1457_v55 = vrot.slane %v4861_v48, 2  ;;  %v4876_v37 = vmul.f32 %v3587_v33, %v5958_v40  ;;  %v5987_v52 = vrot.slane %v5986_v42, 1 }
 0x1b0   : > { %v2405_v56 = vadd.f32 %v2331_v58, %v2161_v35  ;;  %v1572_v41 = vmul.f32 %v3585_v32, %v5958_v40  ;;  %v4887_v5 = vmul.f32 %v3593_v38, %v5958_v40  ;;  %v2535_v58 = vsel %vm1400_vm3, %v2533_v9, %v2534_v27 }
 0x1b1   : > { %v1833_v18 = vadd.f32 %v1735_v36, %v1589_v2  ;;  %v1215_v16 = vsel %vm1155_vm2, %v1212_v50, %v5987_v52  ;;  %v5989_v47 = vrot.slane %v5988_v0, 2  ;;  %v1769_v3 = vrot.slane %v4876_v37, 1 }
 0x1b2   : > { %v2649_v14 = vadd.f32 %v2575_v8, %v2405_v56  ;;  %v1291_v59 = vadd.f32 %v1215_v16, %v1046_v25  ;;  %v4900_v22 = vmul.f32 %v3599_v44, %v5928_v20  ;;  %v2208_v8 = vmul.f32 %v3599_v44, %v5990_v51  ;;  %v5995_v25 = vld [vmem:[#allocation31_spill] sm:$0xff] }
 0x1b3   : > { %v1460_v34 = vsel %vm1400_vm3, %v1457_v55, %v5989_v47  ;;  %v2077_v45 = vadd.f32 %v1979_v30, %v1833_v18  ;;  %v2128_v28 = vmul.f32 %v3597_v43, %v5928_v20  ;;  %v4909_v23 = vmul.f32 %v4752_v17, %v5928_v20  ;;  %v5993_v20 = vld [vmem:[#allocation97_spill] sm:$0xff] }
 0x1b4   : > { %v2736_v46 = vadd.f32 %v4837_v1, %v2649_v14  ;;  %v1536_v27 = vadd.f32 %v1460_v34, %v1291_v59  ;;  %v5992_v24 = vrot.slane %v5991_v21, 1  ;;  %v2013_v31 = vrot.slane %v4887_v5, 2 }
 0x1b5   : > { %v2145_v53 = vadd.f32 %v2113_v57, %v2077_v45  ;;  %v2325_v60 = vrot.slane %v4900_v22, 1  ;;  %v2327_v11 = vrot.slane %v2208_v8, 1  ;;  %v2452_v35 = vmul.f32 %v4752_v17, %v5990_v51 }
 0x1b6   : > { %v1772_v36 = vsel %vm1155_vm2, %v1769_v3, %v5992_v24  ;;  %v2738_v15 = vmax.f32 %v2736_v46, 0.0  ;;  %v1604_v7 = vadd.f32 %v1572_v41, %v1536_v27  ;;  %v5994_v2 = vrot.slane %v5993_v20, 2  ;;  %v5996_v46 = vld [vmem:[#allocation26_spill] sm:$0xff] }
 0x1b7   : > { %v2389_v9 = vadd.f32 %v2291_v39, %v2145_v53  ;;  %v2569_v30 = vrot.slane %v4909_v23, 2  ;;  %v4928_v56 = vmul.f32 %v3570_v62, %v5995_v25  ;;  %v2328_v52 = vsel %vm1155_vm2, %v2325_v60, %v2327_v11 }
 0x1b8   : > { %v2016_v57 = vsel %vm1400_vm3, %v2013_v31, %v5994_v2  ;;  %v2740_v18 = vmin.f32 %v2738_v15, 6.0  ;;  %v1848_v42 = vadd.f32 %v1772_v36, %v1604_v7  ;;  %v4935_v39 = vmul.f32 %v3572_v63, %v5995_v25 }
 0x1b9   : > { %v2633_v16 = vadd.f32 %v2535_v58, %v2389_v9  ;;  %v2571_v41 = vrot.slane %v2452_v35, 2  ;;  %v5787_v14 = vrot.slane %v4928_v56, 1  ;;  %v4940_v59 = vmul.f32 %v3587_v33, %v5969_v13  ;;  %v4953_v58 = vld [vmem:[%s5659_s4] sm:$0xf]  ;;  %v5998_v35 = vld [vmem:[#allocation28_spill] sm:$0xff] }
 0x1ba   : > { %3230 = vmatprep.subr.msk.mxu1 %vm2767_vm4, %v2740_v18  ;;  %v2092_v0 = vadd.f32 %v2016_v57, %v1848_v42  ;;  %v1030_v47 = vmul.f32 %v3576_v10, %v5995_v25  ;;  %v5786_v34 = vrot.slane %v4935_v39, 2  ;;  %v4948_v45 = vmul.f32 %v3593_v38, %v5969_v13  ;;  %3248 = vmatprep.mubr.msk.f32.mxu1 %vm2767_vm4, %v4953_v58  ;;  %v6000_v57 = vld [vmem:[#allocation43_spill] sm:$0xff] }
 0x1bb   : > { %v2688_v51 = vadd.f32 %v4837_v1, %v2633_v16  ;;  %v2572_v8 = vsel %vm1400_vm3, %v2569_v30, %v2571_v41  ;;  %v5997_v27 = vrot.slane %v5996_v46, 1  ;;  %v1556_v21 = vmul.f32 %v3585_v32, %v5969_v13 }
 0x1bc   : > { %v2160_v24 = vadd.f32 %v2128_v28, %v2092_v0  ;;  %v5784_v15 = vrot.slane %v4940_v59, 1  ;;  %v2112_v7 = vmul.f32 %v3597_v43, %v5970_v12  ;;  %v5999_v9 = vrot.slane %v5998_v35, 2 }
 0x1bd   : > { %v1175_v53 = vsel %vm1155_vm2, %v5787_v14, %v5997_v27  ;;  %v2690_v11 = vmax.f32 %v2688_v51, 0.0  ;;  %v4978_v2 = vmul.f32 %v3599_v44, %v5970_v12  ;;  %v2184_v28 = vmul.f32 %v3599_v44, %v6000_v57 }
 0x1be   : > { %v1275_v36 = vadd.f32 %v1175_v53, %v1030_v47  ;;  %v1420_v20 = vsel %vm1400_vm3, %v5786_v34, %v5999_v9  ;;  %v2404_v18 = vadd.f32 %v2328_v52, %v2160_v24  ;;  %v5783_v16 = vrot.slane %v4948_v45, 2  ;;  %v6001_v47 = vld [vmem:[#allocation41_spill] sm:$0xff] }
 0x1bf   : > { %v4985_v41 = vmul.f32 %v4752_v17, %v5970_v12  ;;  %v2692_v0 = vmin.f32 %v2690_v11, 6.0  ;;  %v6002_v51 = vrot.slane %v6001_v47, 1  ;;  %v5785_v27 = vrot.slane %v4978_v2, 1 }
 0x1c0   : > { %v1520_v42 = vadd.f32 %v1420_v20, %v1275_v36  ;;  %v2428_v53 = vmul.f32 %v4752_v17, %v6000_v57  ;;  %v2648_v52 = vadd.f32 %v2572_v8, %v2404_v18  ;;  %v6003_v36 = vld [vmem:[#allocation42_spill] sm:$0xff]  ;;  %v2287_v9 = vrot.slane %v2184_v28, 1 }
 0x1c1   : > { %v1732_v46 = vsel %vm1155_vm2, %v5784_v15, %v6002_v51  ;;  %v6004_v35 = vrot.slane %v6003_v36, 2  ;;  %v2529_v11 = vrot.slane %v4985_v41, 2  ;;  %3231 = vmatpush3.xpose.msk.msra.mxu1 %vm2767_vm4, %v2692_v0  ;;  %v6005_v20 = vld [vmem:[#allocation78_spill] sm:$0xff]  ;;  %v1571_v36 = vmul.f32 %v3585_v32, %v5978_v49 }
 0x1c2   : > { %v1588_v24 = vadd.f32 %v1556_v21, %v1520_v42  ;;  %v1045_v47 = vmul.f32 %v3576_v10, %v6005_v20  ;;  %v1092_v51 = vmul.f32 %v3570_v62, %v6005_v20  ;;  %v1337_v8 = vmul.f32 %v3572_v63, %v6005_v20 }
 0x1c3   : > { %v1976_v12 = vsel %vm1400_vm3, %v5783_v16, %v6004_v35  ;;  %v2731_v21 = vadd.f32 %v4837_v1, %v2648_v52  ;;  %v2531_v18 = vrot.slane %v2428_v53, 2  ;;  %v1650_v42 = vmul.f32 %v3587_v33, %v5978_v49 }
 0x1c4   : > { %v1832_v57 = vadd.f32 %v1732_v46, %v1588_v24  ;;  %v2288_v28 = vsel %vm1155_vm2, %v5785_v27, %v2287_v9  ;;  %v1211_v0 = vrot.slane %v1092_v51, 1  ;;  %v1894_v35 = vmul.f32 %v3593_v38, %v5978_v49 }
 0x1c5   : > { %v2733_v16 = vmax.f32 %v2731_v21, 0.0  ;;  %v2532_v46 = vsel %vm1400_vm3, %v2529_v11, %v2531_v18  ;;  %v1768_v53 = vrot.slane %v1650_v42, 1  ;;  %v1456_v24 = vrot.slane %v1337_v8, 2 }
 0x1c6   : > { %v2076_v15 = vadd.f32 %v1976_v12, %v1832_v57  ;;  %v1213_v52 = vsel %vm1155_vm2, %v1211_v0, %v1212_v50  ;;  %v2012_v9 = vrot.slane %v1894_v35, 2  ;;  %v2206_v51 = vmul.f32 %v3599_v44, %v5951_v4 }
 0x1c7   : > { %v2735_v27 = vmin.f32 %v2733_v16, 6.0  ;;  %v1290_v14 = vadd.f32 %v1213_v52, %v1045_v47  ;;  %v2127_v12 = vmul.f32 %v3597_v43, %v5951_v4  ;;  %v1458_v21 = vsel %vm1400_vm3, %v1456_v24, %v1457_v55 }
 0x1c8   : > { %v2144_v34 = vadd.f32 %v2112_v7, %v2076_v15  ;;  %v1770_v61 = vsel %vm1155_vm2, %v1768_v53, %v1769_v3  ;;  %v2324_v50 = vrot.slane %v2206_v51, 1  ;;  %v2450_v8 = vmul.f32 %v4752_v17, %v5951_v4  ;;  %v6006_v7 = vld [vmem:[#allocation25_spill] sm:$0xff] }
 0x1c9   : > { %3232 = vmatprep.subr.msk.mxu1 %vm2767_vm4, %v2735_v27  ;;  %v1535_v15 = vadd.f32 %v1458_v21, %v1290_v14  ;;  %v1068_v47 = vmul.f32 %v3570_v62, %v6006_v7  ;;  %v1313_v48 = vmul.f32 %v3572_v63, %v6006_v7  ;;  %v2014_v55 = vsel %vm1400_vm3, %v2012_v9, %v2013_v31  ;;  %v6009_v21 = vld [vmem:[#allocation75_spill] sm:$0xff] }
 0x1ca   : > { %v2388_v16 = vadd.f32 %v2288_v28, %v2144_v34  ;;  %v2326_v37 = vsel %vm1155_vm2, %v2324_v50, %v2325_v60  ;;  %v1029_v4 = vmul.f32 %v3576_v10, %v6006_v7  ;;  %v1626_v3 = vmul.f32 %v3587_v33, %v5981_v54 }
 0x1cb   : > { %v1603_v34 = vadd.f32 %v1571_v36, %v1535_v15  ;;  %v2568_v27 = vrot.slane %v2450_v8, 2  ;;  %v1171_v57 = vrot.slane %v1068_v47, 1  ;;  %v1416_v18 = vrot.slane %v1313_v48, 2  ;;  %v6011_v48 = vld [vmem:[#allocation87_spill] sm:$0xff] }
 0x1cc   : > { %v2632_v14 = vadd.f32 %v2532_v46, %v2388_v16  ;;  %v1555_v5 = vmul.f32 %v3585_v32, %v5981_v54  ;;  %v1728_v42 = vrot.slane %v1626_v3, 1  ;;  %v1870_v22 = vmul.f32 %v3593_v38, %v5981_v54 }
 0x1cd   : > { %v1847_v60 = vadd.f32 %v1770_v61, %v1603_v34  ;;  %v2570_v28 = vsel %vm1400_vm3, %v2568_v27, %v2569_v30  ;;  %v6007_v0 = vrot.slane %v4928_v56, 1  ;;  %v6008_v46 = vrot.slane %v4935_v39, 2 }
 0x1ce   : > { %v2683_v31 = vadd.f32 %v4837_v1, %v2632_v14  ;;  %v1972_v52 = vrot.slane %v1870_v22, 2  ;;  %v2182_v24 = vmul.f32 %v3599_v44, %v5982_v26  ;;  %v2426_v23 = vmul.f32 %v4752_v17, %v5982_v26 }
 0x1cf   : > { %v1173_v36 = vsel %vm1155_vm2, %v1171_v57, %v6007_v0  ;;  %v1418_v53 = vsel %vm1400_vm3, %v1416_v18, %v6008_v46  ;;  %v2091_v51 = vadd.f32 %v2014_v55, %v1847_v60  ;;  %v1044_v30 = vmul.f32 %v3576_v10, %v6009_v21 }
 0x1d0   : > { %v1274_v35 = vadd.f32 %v1173_v36, %v1029_v4  ;;  %v2685_v9 = vmax.f32 %v2683_v31, 0.0  ;;  %v6010_v61 = vrot.slane %v4940_v59, 1  ;;  %v2111_v39 = vmul.f32 %v3597_v43, %v5982_v26 }
 0x1d1   : > { %v5078_v8 = vmul.f32 %v3572_v63, %v6009_v21  ;;  %v2159_v15 = vadd.f32 %v2127_v12, %v2091_v51  ;;  %v2284_v47 = vrot.slane %v2182_v24, 1  ;;  %v1289_v55 = vadd.f32 %v6011_v48, %v1044_v30 }
 0x1d2   : > { %v1519_v56 = vadd.f32 %v1418_v53, %v1274_v35  ;;  %v1730_v50 = vsel %vm1155_vm2, %v1728_v42, %v6010_v61  ;;  %v2687_v16 = vmin.f32 %v2685_v9, 6.0  ;;  %v6012_v3 = vrot.slane %v4948_v45, 2  ;;  %v6016_v53 = vld [vmem:[#allocation94_spill] sm:$0xff] }
 0x1d3   : > { %v2528_v59 = vrot.slane %v2426_v23, 2  ;;  %v1452_v34 = vrot.slane %v5078_v8, 2  ;;  %v2403_v26 = vadd.f32 %v2326_v37, %v2159_v15  ;;  %v6013_v27 = vrot.slane %v4978_v2, 1  ;;  %v6017_v23 = vld [vmem:[#allocation86_spill] sm:$0xff] }
 0x1d4   : > { %v1587_v4 = vadd.f32 %v1555_v5, %v1519_v56  ;;  %v1974_v14 = vsel %vm1400_vm3, %v1972_v52, %v6012_v3  ;;  %3233 = vmatpush3.xpose.msk.msra.mxu1 %vm2767_vm4, %v2687_v16  ;;  %v5091_v12 = vmul.f32 %v3587_v33, %v5985_v19  ;;  %v5095_v18 = vmul.f32 %v3593_v38, %v5985_v19  ;;  %v6014_v5 = vld [vmem:[#allocation80_spill] sm:$0xff] }
 0x1d5   : > { %v2286_v57 = vsel %vm1155_vm2, %v2284_v47, %v6013_v27  ;;  %v6015_v42 = vrot.slane %v6014_v5, 2  ;;  %v1570_v2 = vmul.f32 %v3585_v32, %v5985_v19  ;;  %v5106_v37 = vmul.f32 %v3599_v44, %v5958_v40  ;;  %v6019_v47 = vld [vmem:[#allocation10_spill] sm:$0xff] }
 0x1d6   : > { %v1831_v45 = vadd.f32 %v1730_v50, %v1587_v4  ;;  %v2647_v31 = vadd.f32 %v2570_v28, %v2403_v26  ;;  %v2530_v60 = vsel %vm1400_vm3, %v2528_v59, %v2529_v11  ;;  %v1764_v36 = vrot.slane %v5091_v12, 1 }
 0x1d7   : > { %v1455_v22 = vsel %vm1400_vm3, %v1452_v34, %v6015_v42  ;;  %v2008_v46 = vrot.slane %v5095_v18, 2  ;;  %v2205_v52 = vmul.f32 %v3599_v44, %v6016_v53  ;;  %v5117_v24 = vmul.f32 %v4752_v17, %v5958_v40 }
 0x1d8   : > { %v1534_v0 = vadd.f32 %v1455_v22, %v1289_v55  ;;  %v2075_v35 = vadd.f32 %v1974_v14, %v1831_v45  ;;  %v2730_v9 = vadd.f32 %v4837_v1, %v2647_v31  ;;  %v2126_v41 = vmul.f32 %v3597_v43, %v5958_v40  ;;  %v6020_v55 = vld [vmem:[#allocation88_spill] sm:$0xff] }
 0x1d9   : > { %v2320_v11 = vrot.slane %v5106_v37, 1  ;;  %v6018_v30 = vrot.slane %v6017_v23, 1  ;;  %v2322_v61 = vrot.slane %v2205_v52, 1  ;;  %v2449_v50 = vmul.f32 %v4752_v17, %v6016_v53  ;;  %v6022_v45 = vld [vmem:[#allocation32_spill] sm:$0xff] }
 0x1da   : > { %v1602_v28 = vadd.f32 %v1570_v2, %v1534_v0  ;;  %v2143_v51 = vadd.f32 %v2111_v39, %v2075_v35  ;;  %v2732_v16 = vmax.f32 %v2730_v9, 0.0  ;;  %v1028_v48 = vmul.f32 %v3576_v10, %v6019_v47  ;;  %v6023_v35 = vld [vmem:[#allocation20_spill] sm:$0xff] }
 0x1db   : > { %v1767_v56 = vsel %vm1155_vm2, %v1764_v36, %v6018_v30  ;;  %v5134_v40 = vmul.f32 %v3572_v63, %v6019_v47  ;;  %v6021_v4 = vrot.slane %v6020_v55, 2  ;;  %v2564_v14 = vrot.slane %v5117_v24, 2 }
 0x1dc   : > { %v1846_v15 = vadd.f32 %v1767_v56, %v1602_v28  ;;  %v2387_v39 = vadd.f32 %v2286_v57, %v2143_v51  ;;  %v2566_v59 = vrot.slane %v2449_v50, 2  ;;  %v2734_v26 = vmin.f32 %v2732_v16, 6.0 }
 0x1dd   : > { %v2011_v3 = vsel %vm1400_vm3, %v2008_v46, %v6021_v4  ;;  %v1273_v5 = vadd.f32 %v6022_v45, %v1028_v48  ;;  %v1412_v42 = vrot.slane %v5134_v40, 2  ;;  %v2323_v57 = vsel %vm1155_vm2, %v2320_v11, %v2322_v61  ;;  %v6025_v61 = vld [vmem:[#allocation35_spill] sm:$0xff] }
 0x1de   : > { %v2090_v27 = vadd.f32 %v2011_v3, %v1846_v15  ;;  %v2631_v22 = vadd.f32 %v2530_v60, %v2387_v39  ;;  %v5149_v2 = vmul.f32 %v3587_v33, %v5995_v25  ;;  %v5153_v31 = vmul.f32 %v3593_v38, %v5995_v25  ;;  %3234 = vmatprep.subr.msk.mxu1 %vm2767_vm4, %v2734_v26  ;;  %v6026_v3 = vld [vmem:[#allocation29_spill] sm:$0xff] }
 0x1df   : > { %v6024_v53 = vrot.slane %v6023_v35, 2  ;;  %v1554_v52 = vmul.f32 %v3585_v32, %v5995_v25  ;;  %v5165_v9 = vmul.f32 %v3599_v44, %v5969_v13  ;;  %v2567_v56 = vsel %vm1400_vm3, %v2564_v14, %v2566_v59  ;;  %v6030_v35 = vld [vmem:[#allocation76_spill] sm:$0xff] }
 0x1e0   : > { %v2158_v0 = vadd.f32 %v2126_v41, %v2090_v27  ;;  %v2682_v28 = vadd.f32 %v4837_v1, %v2631_v22  ;;  %v1724_v23 = vrot.slane %v5149_v2, 1  ;;  %v1968_v41 = vrot.slane %v5153_v31, 2 }
 0x1e1   : > { %v1415_v60 = vsel %vm1400_vm3, %v1412_v42, %v6024_v53  ;;  %v2181_v50 = vmul.f32 %v3599_v44, %v6025_v61  ;;  %v5177_v16 = vmul.f32 %v4752_v17, %v5969_v13  ;;  %v2110_v39 = vmul.f32 %v3597_v43, %v5969_v13 }
 0x1e2   : > { %v1518_v51 = vadd.f32 %v1415_v60, %v1273_v5  ;;  %v2402_v30 = vadd.f32 %v2323_v57, %v2158_v0  ;;  %v2684_v15 = vmax.f32 %v2682_v28, 0.0  ;;  %v2280_v55 = vrot.slane %v5165_v9, 1  ;;  %v6028_v57 = vld [vmem:[#allocation30_spill] sm:$0xff] }
 0x1e3   : > { %v6027_v26 = vrot.slane %v6026_v3, 1  ;;  %v2282_v27 = vrot.slane %v2181_v50, 1  ;;  %v2425_v45 = vmul.f32 %v4752_v17, %v6025_v61  ;;  %v6029_v0 = vrot.slane %v6028_v57, 2 }
 0x1e4   : > { %v1586_v48 = vadd.f32 %v1554_v52, %v1518_v51  ;;  %v2646_v4 = vadd.f32 %v2567_v56, %v2402_v30  ;;  %v2686_v5 = vmin.f32 %v2684_v15, 6.0  ;;  %v1089_v53 = vmul.f32 %v3570_v62, %v6030_v35 }
 0x1e5   : > { %v1727_v59 = vsel %vm1155_vm2, %v1724_v23, %v6027_v26  ;;  %v1971_v13 = vsel %vm1400_vm3, %v1968_v41, %v6029_v0  ;;  %v2524_v52 = vrot.slane %v5177_v16, 2  ;;  %v2526_v28 = vrot.slane %v2425_v45, 2  ;;  %v6031_v45 = vld [vmem:[#allocation77_spill] sm:$0xff] }
 0x1e6   : > { %v1830_v22 = vadd.f32 %v1727_v59, %v1586_v48  ;;  %v2725_v60 = vadd.f32 %v4837_v1, %v2646_v4  ;;  %v1334_v51 = vmul.f32 %v3572_v63, %v6030_v35  ;;  %3235 = vmatpush3.xpose.msk.msra.mxu1 %vm2767_vm4, %v2686_v5  ;;  %v1043_v56 = vmul.f32 %v3576_v10, %v6030_v35 }
 0x1e7   : > { %v1206_v61 = vrot.slane %v1089_v53, 1  ;;  %v1647_v50 = vmul.f32 %v3587_v33, %v6005_v20  ;;  %v2283_v48 = vsel %vm1155_vm2, %v2280_v55, %v2282_v27  ;;  %v1891_v3 = vmul.f32 %v3593_v38, %v6005_v20 }
 0x1e8   : > { %v2074_v30 = vadd.f32 %v1971_v13, %v1830_v22  ;;  %v2727_v15 = vmax.f32 %v2725_v60, 0.0  ;;  %v1451_v4 = vrot.slane %v1334_v51, 2  ;;  %v2527_v59 = vsel %vm1400_vm3, %v2524_v52, %v2526_v28 }
 0x1e9   : > { %v6032_v5 = vrot.slane %v6031_v45, 1  ;;  %v1569_v57 = vmul.f32 %v3585_v32, %v6005_v20  ;;  %v1763_v53 = vrot.slane %v1647_v50, 1  ;;  %v2125_v27 = vmul.f32 %v3597_v43, %v5978_v49  ;;  %v6033_v50 = vld [vmem:[#allocation23_spill] sm:$0xff] }
 0x1ea   : > { %v2142_v26 = vadd.f32 %v2110_v39, %v2074_v30  ;;  %v2729_v0 = vmin.f32 %v2727_v15, 6.0  ;;  %v1453_v39 = vsel %vm1400_vm3, %v1451_v4, %v1452_v34  ;;  %v2203_v28 = vmul.f32 %v3599_v44, %v5978_v49 }
 0x1eb   : > { %v1208_v22 = vsel %vm1155_vm2, %v1206_v61, %v6032_v5  ;;  %v2447_v51 = vmul.f32 %v4752_v17, %v5978_v49  ;;  %v2007_v61 = vrot.slane %v1891_v3, 2  ;;  %v1065_v15 = vmul.f32 %v3570_v62, %v6033_v50 }
 0x1ec   : > { %v1288_v13 = vadd.f32 %v1208_v22, %v1043_v56  ;;  %v2386_v60 = vadd.f32 %v2283_v48, %v2142_v26  ;;  %3236 = vmatprep.subr.msk.mxu1 %vm2767_vm4, %v2729_v0  ;;  %v1765_v56 = vsel %vm1155_vm2, %v1763_v53, %v1764_v36  ;;  %v2319_v48 = vrot.slane %v2203_v28, 1 }
 0x1ed   : > { %v2563_v34 = vrot.slane %v2447_v51, 2  ;;  %v1310_v4 = vmul.f32 %v3572_v63, %v6033_v50  ;;  %v2009_v49 = vsel %vm1400_vm3, %v2007_v61, %v2008_v46  ;;  %v1166_v45 = vrot.slane %v1065_v15, 1 }
 0x1ee   : > { %v1533_v30 = vadd.f32 %v1453_v39, %v1288_v13  ;;  %v2630_v8 = vadd.f32 %v2527_v59, %v2386_v60  ;;  %v1623_v12 = vmul.f32 %v3587_v33, %v6006_v7  ;;  %v1027_v3 = vmul.f32 %v3576_v10, %v6033_v50 }
 0x1ef   : > { %v1411_v59 = vrot.slane %v1310_v4, 2  ;;  %v1553_v5 = vmul.f32 %v3585_v32, %v6006_v7  ;;  %v2321_v18 = vsel %vm1155_vm2, %v2319_v48, %v2320_v11  ;;  %v1867_v13 = vmul.f32 %v3593_v38, %v6006_v7  ;;  %v6036_v48 = vld [vmem:[#allocation73_spill] sm:$0xff] }
 0x1f0   : > { %v1601_v26 = vadd.f32 %v1569_v57, %v1533_v30  ;;  %v2677_v36 = vadd.f32 %v4837_v1, %v2630_v8  ;;  %v6034_v57 = vld [vmem:[#allocation19_spill] sm:$0xff]  ;;  %v2565_v60 = vsel %vm1400_vm3, %v2563_v34, %v2564_v14  ;;  %v1723_v28 = vrot.slane %v1623_v12, 1 }
 0x1f1   : > { %v6035_v46 = vrot.slane %v6034_v57, 1  ;;  %v1413_v37 = vsel %vm1400_vm3, %v1411_v59, %v1412_v42  ;;  %v2109_v11 = vmul.f32 %v3597_v43, %v5981_v54  ;;  %v2179_v30 = vmul.f32 %v3599_v44, %v5981_v54 }
 0x1f2   : > { %v1845_v22 = vadd.f32 %v1765_v56, %v1601_v26  ;;  %v2679_v53 = vmax.f32 %v2677_v36, 0.0  ;;  %v1725_v24 = vsel %vm1155_vm2, %v1723_v28, %v1724_v23  ;;  %v2423_v14 = vmul.f32 %v4752_v17, %v5981_v54 }
 0x1f3   : > { %v1168_v0 = vsel %vm1155_vm2, %v1166_v45, %v6035_v46  ;;  %v1967_v8 = vrot.slane %v1867_v13, 2  ;;  %v2279_v40 = vrot.slane %v2179_v30, 1  ;;  %v5270_v42 = vmul.f32 %v3570_v62, %v6036_v48 }
 0x1f4   : > { %v1272_v39 = vadd.f32 %v1168_v0, %v1027_v3  ;;  %v2089_v51 = vadd.f32 %v2009_v49, %v1845_v22  ;;  %v2681_v56 = vmin.f32 %v2679_v53, 6.0  ;;  %v2523_v4 = vrot.slane %v2423_v14, 2 }
 0x1f5   : > { %v1042_v26 = vmul.f32 %v3576_v10, %v6036_v48  ;;  %v5277_v2 = vmul.f32 %v3572_v63, %v6036_v48  ;;  %v1969_v54 = vsel %vm1400_vm3, %v1967_v8, %v1968_v41  ;;  %v5285_v49 = vmul.f32 %v3587_v33, %v6009_v21 }
 0x1f6   : > { %v1517_v61 = vadd.f32 %v1413_v37, %v1272_v39  ;;  %v2157_v15 = vadd.f32 %v2125_v27, %v2089_v51  ;;  %3237 = vmatpush3.xpose.msk.msra.mxu1 %vm2767_vm4, %v2681_v56  ;;  %v1202_v27 = vrot.slane %v5270_v42, 1  ;;  %v1568_v36 = vmul.f32 %v3585_v32, %v6009_v21 }
 0x1f7   : > { %v1447_v12 = vrot.slane %v5277_v2, 2  ;;  %v5292_v3 = vmul.f32 %v3593_v38, %v6009_v21  ;;  %v2281_v31 = vsel %vm1155_vm2, %v2279_v40, %v2280_v55  ;;  %v2525_v41 = vsel %vm1400_vm3, %v2523_v4, %v2524_v52  ;;  %v6039_v55 = vld [vmem:[#allocation70_spill] sm:$0xff] }
 0x1f8   : > { %v1585_v34 = vadd.f32 %v1553_v5, %v1517_v61  ;;  %v2401_v23 = vadd.f32 %v2321_v18, %v2157_v15  ;;  %v6037_v5 = vld [vmem:[#allocation69_spill] sm:$0xff]  ;;  %v1759_v0 = vrot.slane %v5285_v49, 1  ;;  %v2124_v13 = vmul.f32 %v3597_v43, %v5985_v19 }
 0x1f9   : > { %v6038_v22 = vrot.slane %v6037_v5, 1  ;;  %v6040_v53 = vrot.slane %v6039_v55, 2  ;;  %v5316_v52 = vmul.f32 %v3599_v44, %v5985_v19  ;;  %v2003_v37 = vrot.slane %v5292_v3, 2  ;;  %v6042_v61 = vld [vmem:[#allocation81_spill] sm:$0xff] }
 0x1fa   : > { %v1829_v45 = vadd.f32 %v1725_v24, %v1585_v34  ;;  %v2645_v59 = vadd.f32 %v2565_v60, %v2401_v23  ;;  %v6041_v60 = vld [vmem:[#allocation83_spill] sm:$0xff]  ;;  %v5323_v30 = vmul.f32 %v4752_v17, %v5985_v19  ;;  %v6043_v24 = vrot.slane %v6042_v61, 1  ;;  %v6044_v34 = vld [vmem:[#allocation82_spill] sm:$0xff] }
 0x1fb   : > { %v1205_v18 = vsel %vm1155_vm2, %v1202_v27, %v6038_v22  ;;  %v1450_v16 = vsel %vm1400_vm3, %v1447_v12, %v6040_v53  ;;  %v2202_v39 = vmul.f32 %v3599_v44, %v6041_v60  ;;  %v2315_v15 = vrot.slane %v5316_v52, 1 }
 0x1fc   : > { %v2073_v57 = vadd.f32 %v1969_v54, %v1829_v45  ;;  %v1287_v46 = vadd.f32 %v1205_v18, %v1042_v26  ;;  %v2724_v9 = vadd.f32 %v4837_v1, %v2645_v59  ;;  %v1762_v14 = vsel %vm1155_vm2, %v1759_v0, %v6043_v24  ;;  %v6046_v26 = vld [vmem:[#allocation7_spill] sm:$0xff]  ;;  %v6051_v24 = vld [vmem:[#allocation22_spill] sm:$0xff] }
 0x1fd   : > { %v2446_v8 = vmul.f32 %v4752_v17, %v6041_v60  ;;  %v6045_v4 = vrot.slane %v6044_v34, 2  ;;  %v6047_v23 = vrot.slane %v6046_v26, 2  ;;  %v6048_v54 = vld [vmem:[#allocation11_spill] sm:$0xff]  ;;  %v2317_v22 = vrot.slane %v2202_v39, 1 }
 0x1fe   : > { %v2141_v28 = vadd.f32 %v2109_v11, %v2073_v57  ;;  %v1532_v51 = vadd.f32 %v1450_v16, %v1287_v46  ;;  %v2726_v56 = vmax.f32 %v2724_v9, 0.0  ;;  %v6049_v45 = vrot.slane %v6048_v54, 2  ;;  %v6050_v57 = vld [vmem:[#allocation16_spill] sm:$0xff] }
 0x1ff   : > { %v2006_v19 = vsel %vm1400_vm3, %v2003_v37, %v6045_v4  ;;  %v2559_v18 = vrot.slane %v5323_v30, 2  ;;  %v1552_v9 = vmul.f32 %v3585_v32, %v6019_v47  ;;  %v5349_v55 = vmul.f32 %v3587_v33, %v6019_v47  ;;  %v6052_v4 = vld [vmem:[#allocation21_spill] sm:$0xff] }
 0x200   : > { %v2385_v11 = vadd.f32 %v2281_v31, %v2141_v28  ;;  %v1600_v40 = vadd.f32 %v1568_v36, %v1532_v51  ;;  %v1410_v59 = vsel %vm1400_vm3, %v6049_v45, %v6047_v23  ;;  %v2728_v5 = vmin.f32 %v2726_v56, 6.0 }
 0x201   : > { %v1516_v46 = vadd.f32 %v1410_v59, %v6050_v57  ;;  %v2318_v53 = vsel %vm1155_vm2, %v2315_v15, %v2317_v22  ;;  %v2561_v16 = vrot.slane %v2446_v8, 2  ;;  %v5357_v60 = vmul.f32 %v3593_v38, %v6019_v47 }
 0x202   : > { %v2629_v31 = vadd.f32 %v2525_v41, %v2385_v11  ;;  %v1844_v36 = vadd.f32 %v1762_v14, %v1600_v40  ;;  %3238 = vmatprep.subr.msk.mxu1 %vm2767_vm4, %v2728_v5  ;;  %v5361_v41 = vmul.f32 %v3599_v44, %v5995_v25  ;;  %v1719_v56 = vrot.slane %v5349_v55, 1 }
 0x203   : > { %v1584_v51 = vadd.f32 %v1552_v9, %v1516_v46  ;;  %v1963_v61 = vrot.slane %v5357_v60, 2  ;;  %v2178_v14 = vmul.f32 %v3599_v44, %v6051_v24  ;;  %v5371_v11 = vmul.f32 %v4752_v17, %v5995_v25  ;;  %v6054_v46 = vld [vmem:[#allocation24_spill] sm:$0xff] }
 0x204   : > { %v2676_v39 = vadd.f32 %v4837_v1, %v2629_v31  ;;  %v2088_v28 = vadd.f32 %v2006_v19, %v1844_v36  ;;  %v2275_v8 = vrot.slane %v5361_v41, 1  ;;  %v6053_v26 = vrot.slane %v6052_v4, 1 }
 0x205   : > { %v2422_v23 = vmul.f32 %v4752_v17, %v6051_v24  ;;  %v2562_v45 = vsel %vm1400_vm3, %v2559_v18, %v2561_v16  ;;  %v2108_v5 = vmul.f32 %v3597_v43, %v5995_v25  ;;  %v2519_v22 = vrot.slane %v5371_v11, 2  ;;  %v6056_v24 = vld [vmem:[#allocation67_spill] sm:$0xff] }
 0x206   : > { %v2678_v40 = vmax.f32 %v2676_v39, 0.0  ;;  %v2156_v34 = vadd.f32 %v2124_v13, %v2088_v28  ;;  %v1722_v19 = vsel %vm1155_vm2, %v1719_v56, %v6053_v26  ;;  %v6055_v31 = vrot.slane %v6054_v46, 2 }
 0x207   : > { %v1828_v59 = vadd.f32 %v1722_v19, %v1584_v51  ;;  %v2277_v9 = vrot.slane %v2178_v14, 1  ;;  %v2521_v28 = vrot.slane %v2422_v23, 2  ;;  %v1086_v16 = vmul.f32 %v3570_v62, %v6056_v24 }
 0x208   : > { %v2680_v13 = vmin.f32 %v2678_v40, 6.0  ;;  %v2400_v57 = vadd.f32 %v2318_v53, %v2156_v34  ;;  %v1966_v36 = vsel %vm1400_vm3, %v1963_v61, %v6055_v31  ;;  %v1331_v51 = vmul.f32 %v3572_v63, %v6056_v24 }
 0x209   : > { %v2072_v39 = vadd.f32 %v1966_v36, %v1828_v59  ;;  %v2278_v53 = vsel %vm1155_vm2, %v2275_v8, %v2277_v9  ;;  %v1041_v40 = vmul.f32 %v3576_v10, %v6056_v24  ;;  %v1644_v14 = vmul.f32 %v3587_v33, %v6030_v35 }
 0x20a   : > { %3239 = vmatpush3.xpose.msk.msra.mxu1 %vm2767_vm4, %v2680_v13  ;;  %v2644_v25 = vadd.f32 %v2562_v45, %v2400_v57  ;;  %v2522_v4 = vsel %vm1400_vm3, %v2519_v22, %v2521_v28  ;;  %v1201_v26 = vrot.slane %v1086_v16, 1  ;;  %v1888_v19 = vmul.f32 %v3593_v38, %v6030_v35 }
 0x20b   : > { %v2140_v34 = vadd.f32 %v2108_v5, %v2072_v39  ;;  %v1446_v45 = vrot.slane %v1331_v51, 2  ;;  %v1758_v59 = vrot.slane %v1644_v14, 1  ;;  %v2200_v13 = vmul.f32 %v3599_v44, %v6005_v20  ;;  %v6057_v51 = vld [vmem:[#allocation4_spill] sm:$0xff] }
 0x20c   : > { %v2719_v23 = vadd.f32 %v4837_v1, %v2644_v25  ;;  %v1203_v5 = vsel %vm1155_vm2, %v1201_v26, %v1202_v27  ;;  %v1567_v46 = vmul.f32 %v3585_v32, %v6030_v35  ;;  %v2002_v31 = vrot.slane %v1888_v19, 2  ;;  %v6058_v25 = vld [vmem:[#allocation14_spill] sm:$0xff] }
 0x20d   : > { %v2384_v57 = vadd.f32 %v2278_v53, %v2140_v34  ;;  %v1286_v9 = vadd.f32 %v1203_v5, %v1041_v40  ;;  %v1448_v39 = vsel %vm1400_vm3, %v1446_v45, %v1447_v12  ;;  %v2123_v28 = vmul.f32 %v3597_v43, %v6005_v20  ;;  %v6060_v12 = vld [vmem:[#allocation5_spill] sm:$0xff] }
 0x20e   : > { %v2721_v36 = vmax.f32 %v2719_v23, 0.0  ;;  %v1760_v42 = vsel %vm1155_vm2, %v1758_v59, %v1759_v0  ;;  %v2444_v27 = vmul.f32 %v4752_v17, %v6005_v20  ;;  %v1270_v53 = vadd.f32 %v6058_v25, %v6057_v51 }
 0x20f   : > { %v2628_v16 = vadd.f32 %v2522_v4, %v2384_v57  ;;  %v1531_v40 = vadd.f32 %v1448_v39, %v1286_v9  ;;  %v2314_v34 = vrot.slane %v2200_v13, 1  ;;  %v6059_v2 = vrot.slane %v6048_v54, 2 }
 0x210   : > { %v2723_v14 = vmin.f32 %v2721_v36, 6.0  ;;  %v6061_v26 = vrot.slane %v6060_v12, 2  ;;  %v2004_v49 = vsel %vm1400_vm3, %v2002_v31, %v2003_v37  ;;  %v1551_v20 = vmul.f32 %v3585_v32, %v6033_v50 }
 0x211   : > { %v2671_v4 = vadd.f32 %v4837_v1, %v2628_v16  ;;  %v1599_v23 = vadd.f32 %v1567_v46, %v1531_v40  ;;  %v2316_v54 = vsel %vm1155_vm2, %v2314_v34, %v2315_v15  ;;  %v1620_v45 = vmul.f32 %v3587_v33, %v6033_v50  ;;  %v6063_v34 = vld [vmem:[#allocation68_spill] sm:$0xff] }
 0x212   : > { %v1408_v19 = vsel %vm1400_vm3, %v6061_v26, %v6059_v2  ;;  %3240 = vmatprep.subr.msk.mxu1 %vm2767_vm4, %v2723_v14  ;;  %v1864_v59 = vmul.f32 %v3593_v38, %v6033_v50  ;;  %v2558_v13 = vrot.slane %v2444_v27, 2  ;;  %v2176_v57 = vmul.f32 %v3599_v44, %v6006_v7 }
 0x213   : > { %v1515_v0 = vadd.f32 %v1408_v19, %v1270_v53  ;;  %v2673_v3 = vmax.f32 %v2671_v4, 0.0  ;;  %v1843_v5 = vadd.f32 %v1760_v42, %v1599_v23  ;;  %v1718_v31 = vrot.slane %v1620_v45, 1  ;;  %v6062_v53 = vld [vmem:[#allocation74_spill] sm:$0xff] }
 0x214   : > { %v1962_v36 = vrot.slane %v1864_v59, 2  ;;  %v2420_v52 = vmul.f32 %v4752_v17, %v6006_v7  ;;  %v2107_v15 = vmul.f32 %v3597_v43, %v6006_v7  ;;  %v1040_v9 = vmul.f32 %v3576_v10, %v3885_v6 }
 0x215   : > { %v1583_v37 = vadd.f32 %v1551_v20, %v1515_v0  ;;  %v2675_v46 = vmin.f32 %v2673_v3, 6.0  ;;  %v5457_v39 = vmul.f32 %v3572_v63, %v3885_v6  ;;  %v2087_v16 = vadd.f32 %v2004_v49, %v1843_v5  ;;  %v6065_v0 = vld [vmem:[#allocation79_spill] sm:$0xff] }
 0x216   : > { %v2560_v42 = vsel %vm1400_vm3, %v2558_v13, %v2559_v18  ;;  %v1720_v27 = vsel %vm1155_vm2, %v1718_v31, %v1719_v56  ;;  %v2274_v51 = vrot.slane %v2176_v57, 1  ;;  %v1964_v25 = vsel %vm1400_vm3, %v1962_v36, %v1963_v61  ;;  %v5514_v31 = vld [vmem:[%s5657_s2 + $0x8] ss:$0 sm:$0xff] }
 0x217   : > { %3241 = vmatpush3.xpose.msk.msra.mxu1 %vm2767_vm4, %v2675_v46  ;;  %v1827_v7 = vadd.f32 %v1720_v27, %v1583_v37  ;;  %v1285_v6 = vadd.f32 %v6062_v53, %v1040_v9  ;;  %v1442_v14 = vrot.slane %v5457_v39, 2  ;;  %v2155_v40 = vadd.f32 %v2123_v28, %v2087_v16  ;;  %v6069_v46 = vld [vmem:[#allocation18_spill] sm:$0xff]  ;;  %v6070_v16 = vld [vmem:[#allocation72_spill] sm:$0xff] }
 0x218   : > { %v2276_v30 = vsel %vm1155_vm2, %v2274_v51, %v2275_v8  ;;  %v2518_v18 = vrot.slane %v2420_v52, 2  ;;  %v5476_v55 = vmul.f32 %v3587_v33, %v6036_v48  ;;  %v6064_v2 = vrot.slane %v6063_v34, 2  ;;  %v6068_v52 = vld [vmem:[#allocation13_spill] sm:$0xff]  ;;  %v6072_v51 = vld [vmem:[#allocation8_spill] sm:$0xff]  ;;  %v6078_v34 = vld [vmem:[#allocation15_spill] sm:$0xff] }
 0x219   : > { %v2071_v56 = vadd.f32 %v1964_v25, %v1827_v7  ;;  %v1566_v61 = vmul.f32 %v3585_v32, %v6036_v48  ;;  %v5487_v41 = vmul.f32 %v3593_v38, %v6036_v48  ;;  %v2399_v8 = vadd.f32 %v2316_v54, %v2155_v40  ;;  %v6066_v54 = vld [vmem:[#allocation71_spill] sm:$0xff]  ;;  %v6074_v25 = vld [vmem:[#allocation12_spill] sm:$0xff] }
 0x21a   : > { %v1445_v60 = vsel %vm1400_vm3, %v1442_v14, %v6064_v2  ;;  %v1754_v12 = vrot.slane %v5476_v55, 1  ;;  %v5492_v26 = vmul.f32 %v3599_v44, %v6009_v21  ;;  %v2520_v4 = vsel %vm1400_vm3, %v2518_v18, %v2519_v22  ;;  %v6076_v18 = vld [vmem:[#allocation9_spill] sm:$0xff] }
 0x21b   : > { %v1530_v28 = vadd.f32 %v1445_v60, %v1285_v6  ;;  %v2139_v19 = vadd.f32 %v2107_v15, %v2071_v56  ;;  %v1998_v49 = vrot.slane %v5487_v41, 2  ;;  %v2199_v20 = vmul.f32 %v3599_v44, %v6065_v0 }
 0x21c   : > { %v2643_v48 = vadd.f32 %v2560_v42, %v2399_v8  ;;  %v6067_v45 = vrot.slane %v6066_v54, 1  ;;  %v2122_v3 = vmul.f32 %v3597_v43, %v6009_v21  ;;  %v2310_v11 = vrot.slane %v5492_v26, 1 }
 0x21d   : > { %v1598_v23 = vadd.f32 %v1566_v61, %v1530_v28  ;;  %v2383_v13 = vadd.f32 %v2276_v30, %v2139_v19  ;;  %v2312_v22 = vrot.slane %v2199_v20, 1  ;;  %v2443_v37 = vmul.f32 %v4752_v17, %v6065_v0 }
 0x21e   : > { %v1757_v59 = vsel %vm1155_vm2, %v1754_v12, %v6067_v45  ;;  %v2718_v57 = vadd.f32 %v4837_v1, %v2643_v48  ;;  %v5518_v36 = vmul.f32 %v5514_v31, %v6009_v21  ;;  %v1582_v15 = vadd.f32 %v6069_v46, %v6068_v52  ;;  %v6080_v48 = vld [vmem:[#allocation17_spill] sm:$0xff] }
 0x21f   : > { %v1842_v5 = vadd.f32 %v1757_v59, %v1598_v23  ;;  %v2627_v9 = vadd.f32 %v2520_v4, %v2383_v13  ;;  %v6071_v42 = vrot.slane %v6070_v16, 2  ;;  %v2313_v27 = vsel %vm1155_vm2, %v2310_v11, %v2312_v22 }
 0x220   : > { %v6073_v7 = vrot.slane %v6072_v51, 1  ;;  %v6075_v53 = vrot.slane %v6074_v25, 1  ;;  %v2720_v6 = vmax.f32 %v2718_v57, 0.0  ;;  %v6077_v56 = vrot.slane %v6076_v18, 2  ;;  %v6082_v18 = vld [vmem:[#allocation66_spill] sm:$0xff] }
 0x221   : > { %v2001_v17 = vsel %vm1400_vm3, %v1998_v49, %v6071_v42  ;;  %v6079_v2 = vrot.slane %v6078_v34, 2  ;;  %v2670_v61 = vadd.f32 %v4837_v1, %v2627_v9  ;;  %v2556_v8 = vrot.slane %v2443_v37, 2 }
 0x222   : > { %v1717_v21 = vsel %vm1155_vm2, %v6075_v53, %v6073_v7  ;;  %v2086_v40 = vadd.f32 %v2001_v17, %v1842_v5  ;;  %v2106_v28 = vmul.f32 %v3597_v43, %v6019_v47  ;;  %v5545_v19 = vmul.f32 %v3599_v44, %v6019_v47  ;;  %v6081_v17 = vld [vmem:[#allocation2_spill] sm:$0xff] }
 0x223   : > { %v1826_v30 = vadd.f32 %v1717_v21, %v1582_v15  ;;  %v1961_v60 = vsel %vm1400_vm3, %v6079_v2, %v6077_v56  ;;  %v2722_v4 = vmin.f32 %v2720_v6, 6.0  ;;  %v2175_v23 = vmul.f32 %v3599_v44, %v6080_v48 }
 0x224   : > { %v2154_v0 = vadd.f32 %v2122_v3, %v2086_v40  ;;  %v2672_v54 = vmax.f32 %v2670_v61, 0.0  ;;  %v2554_v45 = vrot.slane %v5518_v36, 2  ;;  %v5552_v59 = vmul.f32 %v5514_v31, %v6019_v47 }
 0x225   : > { %v2070_v20 = vadd.f32 %v1961_v60, %v1826_v30  ;;  %v2419_v13 = vmul.f32 %v5514_v31, %v6080_v48  ;;  %3242 = vmatprep.subr.msk.mxu1 %vm2767_vm4, %v2722_v4  ;;  %v2270_v3 = vrot.slane %v5545_v19, 1  ;;  %v2272_v57 = vrot.slane %v2175_v23, 1  ;;  %v6084_v60 = vld [vmem:[#allocation6_spill] sm:$0xff] }
 0x226   : > { %v2398_v22 = vadd.f32 %v2313_v27, %v2154_v0  ;;  %v2674_v5 = vmin.f32 %v2672_v54, 6.0  ;;  %v2557_v52 = vsel %vm1400_vm3, %v2554_v45, %v2556_v8  ;;  %v1083_v47 = vmul.f32 %v3570_v62, %v5927_v29  ;;  %v6085_v54 = vld [vmem:[#allocation3_spill] sm:$0xff]  ;;  %v3364_v19 = vld [vmem:[%s5658_s3] ss:$0 sm:$0xff] }
 0x227   : > { %v2138_v37 = vadd.f32 %v2106_v28, %v2070_v20  ;;  %v2516_v46 = vrot.slane %v2419_v13, 2  ;;  %v2273_v9 = vsel %vm1155_vm2, %v2270_v3, %v2272_v57  ;;  %v2514_v16 = vrot.slane %v5552_v59, 2 }
 0x228   : > { %v2642_v15 = vadd.f32 %v2557_v52, %v2398_v22  ;;  %v1328_v42 = vmul.f32 %v3572_v63, %v5927_v29  ;;  %v1861_v27 = vmul.f32 %v3593_v38, %v6081_v17  ;;  %3243 = vmatpush3.xpose.msk.msra.mxu1 %vm2767_vm4, %v2674_v5  ;;  %v1196_v7 = vrot.slane %v1083_v47, 1  ;;  %v2761_v52 = vld [vmem:[%s5660_s5] sm:$0xf] }
 0x229   : > { %v2382_v51 = vadd.f32 %v2273_v9, %v2138_v37  ;;  %v1641_v62 = vmul.f32 %v3587_v33, %v6056_v24  ;;  %v2517_v21 = vsel %vm1400_vm3, %v2514_v16, %v2516_v46  ;;  %v1039_v6 = vmul.f32 %v3576_v10, %v5927_v29 }
 0x22a   : > { %v2713_v53 = vadd.f32 %v4837_v1, %v2642_v15  ;;  %v1441_v40 = vrot.slane %v1328_v42, 2  ;;  %v1549_v63 = vmul.f32 %v3585_v32, %v6081_v17  ;;  %v6083_v56 = vrot.slane %v6082_v18, 1 }
 0x22b   : > { %v2626_v30 = vadd.f32 %v2517_v21, %v2382_v51  ;;  %v1713_v61 = vrot.slane %v6084_v60, 1  ;;  %v1885_v28 = vmul.f32 %v3593_v38, %v6056_v24  ;;  %v1957_v4 = vrot.slane %v1861_v27, 2 }
 0x22c   : > { %v1198_v2 = vsel %vm1155_vm2, %v1196_v7, %v6083_v56  ;;  %v2715_v8 = vmax.f32 %v2713_v53, 0.0  ;;  %v1443_v10 = vsel %vm1400_vm3, %v1441_v40, %v1442_v14  ;;  %v1753_v29 = vrot.slane %v1641_v62, 1 }
 0x22d   : > { %v1284_v33 = vadd.f32 %v1198_v2, %v1039_v6  ;;  %v2665_v0 = vadd.f32 %v4837_v1, %v2626_v30  ;;  %v1565_v23 = vmul.f32 %v3585_v32, %v6056_v24  ;;  %v1581_v59 = vadd.f32 %v1549_v63, %v6085_v54 }
 0x22e   : > { %v2717_v20 = vmin.f32 %v2715_v8, 6.0  ;;  %v1755_v38 = vsel %vm1155_vm2, %v1753_v29, %v1754_v12  ;;  %v2197_v1 = vmul.f32 %v3599_v44, %v6030_v35  ;;  %v6086_v39 = vrot.slane %v6074_v25, 1 }
 0x22f   : > { %v1529_v48 = vadd.f32 %v1443_v10, %v1284_v33  ;;  %v2667_v13 = vmax.f32 %v2665_v0, 0.0  ;;  %v1997_v37 = vrot.slane %v1885_v28, 2  ;;  %v6087_v32 = vrot.slane %v6078_v34, 2 }
 0x230   : > { %v1715_v14 = vsel %vm1155_vm2, %v1713_v61, %v6086_v39  ;;  %3244 = vmatprep.subr.msk.mxu1 %vm2767_vm4, %v2717_v20  ;;  %v2441_v55 = vmul.f32 %v5514_v31, %v6030_v35  ;;  %v2173_v12 = vmul.f32 %v3599_v44, %v6033_v50  ;;  %v2417_v25 = vmul.f32 %v5514_v31, %v6033_v50 }
 0x231   : > { %v1597_v22 = vadd.f32 %v1565_v23, %v1529_v48  ;;  %v1825_v57 = vadd.f32 %v1715_v14, %v1581_v59  ;;  %v1959_v24 = vsel %vm1400_vm3, %v1957_v4, %v6087_v32  ;;  %v2669_v5 = vmin.f32 %v2667_v13, 6.0 }
 0x232   : > { %v2105_v34 = vmul.f32 %v3597_v43, %v6033_v50  ;;  %v1999_v15 = vsel %vm1400_vm3, %v1997_v37, %v1998_v49  ;;  %v2309_v9 = vrot.slane %v2197_v1, 1  ;;  %v2269_v44 = vrot.slane %v2173_v12, 1 }
 0x233   : > { %v1841_v46 = vadd.f32 %v1755_v38, %v1597_v22  ;;  %v2069_v47 = vadd.f32 %v1959_v24, %v1825_v57  ;;  %3245 = vmatpush3.xpose.msk.msra.mxu1 %vm2767_vm4, %v2669_v5  ;;  %v2513_v42 = vrot.slane %v2417_v25, 2  ;;  %v3389_v17 = vmov 0  }
 0x234   : > { %3359 = vset.pattern.permute.xlu0 %v3389_v17  ;;  %v2121_v27 = vmul.f32 %v3597_v43, %v6030_v35  ;;  %v2553_v7 = vrot.slane %v2441_v55, 2  ;;  %v2271_v50 = vsel %vm1155_vm2, %v2269_v44, %v2270_v3  ;;  %v2311_v49 = vsel %vm1155_vm2, %v2309_v9, %v2310_v11 }
 0x235   : > { %v2085_v31 = vadd.f32 %v1999_v15, %v1841_v46  ;;  %v2137_v51 = vadd.f32 %v2105_v34, %v2069_v47  ;;  %2764 = vperm.xlu0 %3359, %v2761_v52   ;;  %v2515_v53 = vsel %vm1400_vm3, %v2513_v42, %v2514_v16 }
 0x236   : > { %v2555_v43 = vsel %vm1400_vm3, %v2553_v7, %v2554_v45  ;;  %v2938_v45 = vld [vmem:[%s340_s13] sm:$0xff] }
 0x237   : > { %v2153_v62 = vadd.f32 %v2121_v27, %v2085_v31  ;;  %v2381_v41 = vadd.f32 %v2271_v50, %v2137_v51  ;;  %v2940_v56 = vcombine.high %v2938_v45, %v2938_v45 }
 0x239   : > { %v2397_v21 = vadd.f32 %v2311_v49, %v2153_v62  ;;  %v2625_v6 = vadd.f32 %v2515_v53, %v2381_v41 }
 0x23b   : > { %v2641_v35 = vadd.f32 %v2555_v43, %v2397_v21  ;;  %v2664_v3 = vadd.f32 %v3364_v19, %v2625_v6 }
 0x23d   : > { %v2712_v40 = vadd.f32 %v3364_v19, %v2641_v35  ;;  %v2666_v63 = vmax.f32 %v2664_v3, 0.0 }
 0x23f   : > { %v2714_v26 = vmax.f32 %v2712_v40, 0.0  ;;  %v2668_v11 = vmin.f32 %v2666_v63, 6.0 }
 0x241   : > { %v2716_v30 = vmin.f32 %v2714_v26, 6.0 }
 0x243   : > { %3246 = vmatprep.subr.msk.mxu1 %vm2767_vm4, %v2716_v30 }
 0x244   : > { %3247 = vmatpush3.xpose.msk.msra.mxu1 %vm2767_vm4, %v2668_v11 }
 0x247   : > { %3249 = vmatmul.mubr.msk.f32.vlgmr.msra.gmra.mxu1 %vm2767_vm4, %v4953_v58 }
 0x2b0   : > { %v2765_v36 = vpop.permute.xlu0 %2764 }
 0x307   : > { %v2933_v16 = vpop.f32.mrf.mxu1 }
 0x308   : > { %v2934_v18 = vadd.f32 %v2933_v16, %v2765_v36 }
 0x309   : > { %v2935_v2 = vpop.f32.mrf.mxu1 }
 0x30a   : > { %v2936_v60 = vadd.f32 %v2935_v2, %v2765_v36  ;;  %v2942_v61 = vadd.f32 %v2938_v45, %v2934_v18 }
 0x30c   : > { %v2943_v8 = vadd.f32 %v2940_v56, %v2936_v60 }
 0x30e   : > { %v2946_v33 = vcombine.low %v2942_v61, %v2943_v8 }
 0x310   : > { %2948 = vst [vmem:[%s350_s16] sm:$0xff] %v2946_v33 }
 0x311 PF: > { %s17_s26 = sadd.s32 1, %s3387_s26   ;;  %s6088_s24 = smov %s3383_s25 }
 0x312   : > { %p14_p5 = scmp.ge.s32.totalorder %s17_s26, 4   ;;  %s6089_s25 = smov %s6091_s27 }
 0x314   :  { %16 = sbr.rel (!%p14_p5) target bundleno = 2 (0x2), region = 81 }

</bundles_post_ra>
